<compile_context>
chip_gen: v7x
topology: tpu7x:2x2x1
jax: 0.10.0
libtpu: 0.0.40
codegen_flags: <defaults>
</compile_context>

<pallas_src>
import functools

import jax
import jax.numpy as jnp
from jax.experimental import pallas as pl
from jax.experimental.pallas import tpu as pltpu


def make_divisible(v, divisor=8, min_value=None):
    if min_value is None:
        min_value = divisor
    new_v = max(min_value, int(v + divisor / 2) // divisor * divisor)
    if new_v < 0.9 * v:
        new_v += divisor
    return new_v


def _hswish(x):
    # Hswish(x) = x * relu6(x + 3) / 6
    return x * jnp.clip(x + 3.0, 0.0, 6.0) * (1.0 / 6.0)


# --------------------------------------------------------------------------
# Path A: large spatial extent -> pixel axis tiled, pooled sum accumulated in
# a full-lane-width VMEM scratch; tail runs once under the last-tile pl.when.
# --------------------------------------------------------------------------
def relation_network_kernel(x_ref, w1_ref, b1_ref, w2_ref, b2_ref, w3_ref,
                            b3_ref, o_ref, acc_ref, *, p_total, tp):
    # x_ref : (1, Cin, TP)  f32  activations (channels on sublanes, pixels on lanes)
    # w1_ref: (C1, Cin)     bf16 1x1-conv weight with BatchNorm folded in
    # b1_ref: (C1, 1)       f32  folded BatchNorm bias
    # w2_ref: (C1, C2)      f32  second 1x1-conv weight (in, out)
    # b2_ref: (1, C2)       f32  second conv bias
    # w3_ref: (1, C2)       f32  final Linear weight
    # b3_ref: (1, 1)        f32  final Linear bias
    # o_ref : (1, 1, 1)     f32  sigmoid output for this batch element
    # acc_ref: (C1, TP)     f32  running elementwise pooled sum (VMEM scratch)
    pj = pl.program_id(1)
    last = pl.num_programs(1) - 1

    @pl.when(pj == 0)
    def _init():
        acc_ref[...] = jnp.zeros_like(acc_ref)

    # In-kernel bf16 cast of the MXU operand (no extra HBM pass in the wrapper).
    xb = x_ref[0].astype(jnp.bfloat16)                       # (Cin, TP)
    # conv_1x1_bn (BN pre-folded): (C1, Cin) @ (Cin, TP) -> (C1, TP), f32 acc.
    h = jax.lax.dot_general(
        w1_ref[...], xb,
        dimension_numbers=(((1,), (0,)), ((), ())),
        preferred_element_type=jnp.float32)
    h = _hswish(h + b1_ref[...])                             # (C1, TP) f32

    # AdaptiveAvgPool2d(1): elementwise VPU accumulation into the full-width
    # scratch; the single lane reduce happens once in the finalize.
    if p_total % tp != 0:
        @pl.when(pj != last)
        def _acc_full():
            acc_ref[...] += h

        @pl.when(pj == last)
        def _acc_masked():
            # Remainder tile only: zero out lanes past the true spatial extent
            # so the pooled average stays unbiased (divisor is the true P).
            valid = p_total - pj * tp
            col = jax.lax.broadcasted_iota(jnp.int32, h.shape, 1)
            acc_ref[...] += jnp.where(col < valid, h, 0.0)
    else:
        acc_ref[...] += h

    @pl.when(pj == last)
    def _finalize():
        pooled = jnp.sum(acc_ref[...], axis=1, keepdims=True) * (1.0 / p_total)
        # Conv2d(C1 -> C2, k=1) + Hswish on one pooled vector (once per image).
        h2 = jnp.sum(w2_ref[...] * pooled, axis=0, keepdims=True) + b2_ref[...]
        h2 = _hswish(h2)                                     # (1, C2)
        # Flatten -> Dropout(0.8) -> Linear(C2, 1) -> Sigmoid.
        # TODO(synk): Dropout(p=0.8) is identity in eval mode; training-mode random mask not implemented.
        logit = jnp.sum(h2 * w3_ref[...], axis=1, keepdims=True) + b3_ref[...]
        o_ref[...] = jax.nn.sigmoid(logit).reshape(1, 1, 1)


# --------------------------------------------------------------------------
# Path B: small spatial extent -> NB batch elements folded into the lane axis;
# per-image pooling via an MXU segment-sum dot; whole tail on the MXU.
# --------------------------------------------------------------------------
def relation_network_small_p_kernel(x_ref, w1_ref, b1_ref, seg_ref, w2t_ref,
                                    b2t_ref, w3t_ref, b3_ref, o_ref, *, p):
    # x_ref  : (1, Cin, NB*P) f32   NB images folded into lanes
    # seg_ref: (NB*P, NB)     bf16  seg[l, b] = 1 if lane l belongs to image b
    # w2t_ref: (C2, C1) f32 ; b2t_ref: (C2, 1) f32 ; w3t_ref: (C2, 1) f32
    # o_ref  : (1, 1, NB)     f32
    xb = x_ref[0].astype(jnp.bfloat16)                       # (Cin, NB*P)
    h = jax.lax.dot_general(
        w1_ref[...], xb,
        dimension_numbers=(((1,), (0,)), ((), ())),
        preferred_element_type=jnp.float32)
    h = _hswish(h + b1_ref[...])                             # (C1, NB*P) f32

    # Per-image AdaptiveAvgPool2d(1) as an MXU segment-sum (no XLU reduce).
    pooled = jax.lax.dot_general(
        h.astype(jnp.bfloat16), seg_ref[...],
        dimension_numbers=(((1,), (0,)), ((), ())),
        preferred_element_type=jnp.float32) * (1.0 / p)      # (C1, NB)

    # Conv2d(C1 -> C2, k=1) + Hswish on all NB pooled vectors at once (MXU).
    h2 = jax.lax.dot_general(
        w2t_ref[...], pooled,
        dimension_numbers=(((1,), (0,)), ((), ())),
        preferred_element_type=jnp.float32) + b2t_ref[...]   # (C2, NB)
    h2 = _hswish(h2)
    # Flatten -> Dropout (identity in eval) -> Linear(C2, 1) -> Sigmoid.
    logit = jnp.sum(w3t_ref[...] * h2, axis=0, keepdims=True) + b3_ref[...]
    o_ref[...] = jax.nn.sigmoid(logit).reshape(1, 1, -1)     # (1, 1, NB)


# --------------------------------------------------------------------------
# Parameters (BN folded into the first conv weight).
# --------------------------------------------------------------------------
def init_params(key, factor=1.0):
    cin = make_divisible(96 * factor * 2)       # 192
    last_conv = make_divisible(576 * factor)    # 576
    cmid = make_divisible(128 * factor)         # 128
    ks = jax.random.split(key, 9)

    w1 = jax.random.normal(ks[0], (last_conv, cin), jnp.float32) * 0.05
    bn_gamma = jax.random.uniform(ks[1], (last_conv,), jnp.float32, 0.5, 1.5)
    bn_beta = jax.random.normal(ks[2], (last_conv,), jnp.float32) * 0.1
    bn_mean = jax.random.normal(ks[3], (last_conv,), jnp.float32) * 0.1
    bn_var = jax.random.uniform(ks[4], (last_conv,), jnp.float32, 0.5, 1.5)
    eps = 1e-5
    scale = bn_gamma / jnp.sqrt(bn_var + eps)
    w1t = (w1 * scale[:, None]).astype(jnp.bfloat16)          # (C1, Cin) bf16
    b1 = (bn_beta - bn_mean * scale)[:, None]                 # (C1, 1)  f32

    w2 = jax.random.normal(ks[5], (last_conv, cmid), jnp.float32) * 0.05
    b2 = (jax.random.normal(ks[6], (cmid,), jnp.float32) * 0.05)[None, :]

    w3 = jax.random.normal(ks[7], (1, cmid), jnp.float32) * 0.05
    b3 = (jax.random.normal(ks[8], (1,), jnp.float32) * 0.05)[None, :]

    return dict(w1t=w1t, b1=b1, w2=w2, b2=b2, w3=w3, b3=b3, cin=cin)


# --------------------------------------------------------------------------
# Wrappers.
# --------------------------------------------------------------------------
def _forward_tiled(x, params, tp):
    N, Cin, P = x.shape
    if P <= tp:
        TP = P
    else:
        TP = max(256, (tp // 256) * 256)          # lane-aligned tile
    num_pt = pl.cdiv(P, TP)

    C1 = params["w1t"].shape[0]
    C2 = params["w2"].shape[1]

    kernel = functools.partial(relation_network_kernel, p_total=P, tp=TP)

    grid_spec = pltpu.PrefetchScalarGridSpec(
        num_scalar_prefetch=0,
        grid=(N, num_pt),
        in_specs=[
            pl.BlockSpec((1, Cin, TP), lambda n, pj: (n, 0, pj)),   # x tile (f32)
            pl.BlockSpec((C1, Cin), lambda n, pj: (0, 0)),          # w1 (resident)
            pl.BlockSpec((C1, 1), lambda n, pj: (0, 0)),            # b1
            pl.BlockSpec((C1, C2), lambda n, pj: (0, 0)),           # w2
            pl.BlockSpec((1, C2), lambda n, pj: (0, 0)),            # b2
            pl.BlockSpec((1, C2), lambda n, pj: (0, 0)),            # w3
            pl.BlockSpec((1, 1), lambda n, pj: (0, 0)),             # b3
        ],
        out_specs=pl.BlockSpec((1, 1, 1), lambda n, pj: (n, 0, 0)),
        scratch_shapes=[pltpu.VMEM((C1, TP), jnp.float32)],
    )

    flops = 2 * N * P * Cin * C1 + 2 * N * C1 * C2 + 2 * N * C2
    bytes_accessed = (x.size * 4 + params["w1t"].size * 2
                      + 4 * (params["b1"].size + params["w2"].size
                             + params["b2"].size + params["w3"].size
                             + params["b3"].size)
                      + 4 * N)

    out = pl.pallas_call(
        kernel,
        out_shape=jax.ShapeDtypeStruct((N, 1, 1), jnp.float32),
        grid_spec=grid_spec,
        compiler_params=pltpu.CompilerParams(
            dimension_semantics=("parallel", "arbitrary"),
            vmem_limit_bytes=48 * 1024 * 1024),
        cost_estimate=pl.CostEstimate(
            flops=flops,
            transcendentals=N * (C2 + 8),
            bytes_accessed=bytes_accessed),
    )(x, params["w1t"], params["b1"], params["w2"], params["b2"],
      params["w3"], params["b3"])
    return out.reshape(N, 1)


def _forward_small_p(x, params, nb_lanes):
    N, Cin, P = x.shape
    C1 = params["w1t"].shape[0]
    C2 = params["w2"].shape[1]

    # Fold NB images into the lane axis (target ~nb_lanes lanes per step).
    NB = int(min(N, max(1, nb_lanes // P)))
    G = (N + NB - 1) // NB
    n_pad = G * NB - N
    if n_pad:
        x = jnp.concatenate([x, jnp.zeros((n_pad, Cin, P), x.dtype)], axis=0)
    # (G*NB, Cin, P) -> (G, Cin, NB*P): tiny data, cheap host-side relayout.
    xf = x.reshape(G, NB, Cin, P).transpose(0, 2, 1, 3).reshape(G, Cin, NB * P)
    L = NB * P

    # Segment-indicator matrix for per-image pooled sums on the MXU.
    seg = (jnp.arange(L)[:, None] // P == jnp.arange(NB)[None, :]
           ).astype(jnp.bfloat16)                                   # (L, NB)

    w2t = params["w2"].T            # (C2, C1)
    b2t = params["b2"].T            # (C2, 1)
    w3t = params["w3"].T            # (C2, 1)
    b3 = params["b3"]               # (1, 1)

    kernel = functools.partial(relation_network_small_p_kernel, p=P)

    grid_spec = pltpu.PrefetchScalarGridSpec(
        num_scalar_prefetch=0,
        grid=(G,),
        in_specs=[
            pl.BlockSpec((1, Cin, L), lambda g: (g, 0, 0)),   # folded x (f32)
            pl.BlockSpec((C1, Cin), lambda g: (0, 0)),        # w1
            pl.BlockSpec((C1, 1), lambda g: (0, 0)),          # b1
            pl.BlockSpec((L, NB), lambda g: (0, 0)),          # seg matrix
            pl.BlockSpec((C2, C1), lambda g: (0, 0)),         # w2^T
            pl.BlockSpec((C2, 1), lambda g: (0, 0)),          # b2^T
            pl.BlockSpec((C2, 1), lambda g: (0, 0)),          # w3^T
            pl.BlockSpec((1, 1), lambda g: (0, 0)),           # b3
        ],
        out_specs=pl.BlockSpec((1, 1, NB), lambda g: (g, 0, 0)),
    )

    flops = 2 * G * (C1 * Cin * L + C1 * L * NB + C2 * C1 * NB + C2 * NB)
    bytes_accessed = (xf.size * 4 + params["w1t"].size * 2 + seg.size * 2
                      + 4 * (params["b1"].size + w2t.size + b2t.size
                             + w3t.size + b3.size)
                      + 4 * G * NB)

    out = pl.pallas_call(
        kernel,
        out_shape=jax.ShapeDtypeStruct((G, 1, NB), jnp.float32),
        grid_spec=grid_spec,
        compiler_params=pltpu.CompilerParams(
            dimension_semantics=("parallel",),
            vmem_limit_bytes=48 * 1024 * 1024),
        cost_estimate=pl.CostEstimate(
            flops=flops,
            transcendentals=G * NB * (C2 + 8),
            bytes_accessed=bytes_accessed),
    )(xf, params["w1t"], params["b1"], seg, w2t, b2t, w3t, b3)
    return out.reshape(G * NB, 1)[:N]


def relation_network_forward(x_nchw, params, tp=2048, small_p_threshold=256,
                             nb_lanes=2048):
    N, Cin, H, W = x_nchw.shape
    P = H * W
    # No HBM transpose and no wrapper-side dtype cast: contiguous reshape only.
    x = x_nchw.reshape(N, Cin, P)
    if P <= small_p_threshold:
        return _forward_small_p(x, params, nb_lanes)
    return _forward_tiled(x, params, tp)


# --------------------------------------------------------------------------
# Pure-f32 JAX reference of the module forward (eval mode).
# --------------------------------------------------------------------------
def reference_forward(x_nchw, params):
    N, Cin, H, W = x_nchw.shape
    P = H * W
    x = x_nchw.reshape(N, Cin, P)
    w1 = params["w1t"].astype(jnp.float32)
    h = jnp.einsum("oc,ncp->nop", w1, x)
    h = _hswish(h + params["b1"][None])                         # (N, C1, P)
    pooled = jnp.mean(h, axis=2, keepdims=True)                 # (N, C1, 1)
    h2 = jnp.sum(params["w2"] * pooled, axis=1) + params["b2"]  # (N, C2)
    h2 = _hswish(h2)
    logit = jnp.sum(h2 * params["w3"], axis=-1, keepdims=True) + params["b3"]
    return jax.nn.sigmoid(logit)


if __name__ == "__main__":
    key = jax.random.PRNGKey(0)
    pkey, xkey1, xkey2, xkey3 = jax.random.split(key, 4)

    params = init_params(pkey, factor=1.0)
    cin = params["cin"]   # 192, dictated by the module

    ATOL, RTOL = 3e-3, 3e-2

    # 1) Tiny spatial (4x4): small-P path, batch folded into lanes, 1 grid step.
    x_small = jax.random.normal(xkey1, (2, cin, 4, 4), jnp.float32)
    out_small = jax.block_until_ready(relation_network_forward(x_small, params))
    ref_small = reference_forward(x_small, params)
    assert out_small.shape == (2, 1)
    assert jnp.allclose(out_small, ref_small, atol=ATOL, rtol=RTOL)

    # 1b) small-P path with batch grouping + padding (N=5, NB=3 -> 2 groups).
    x_group = jax.random.normal(xkey2, (5, cin, 4, 4), jnp.float32)
    out_group = jax.block_until_ready(
        relation_network_forward(x_group, params, nb_lanes=48))
    ref_group = reference_forward(x_group, params)
    assert out_group.shape == (5, 1)
    assert jnp.allclose(out_group, ref_group, atol=ATOL, rtol=RTOL)

    # 2) Larger spatial (20x20, P=400): tiled path, single pixel tile (P <= tp).
    x_big = jax.random.normal(xkey3, (2, cin, 20, 20), jnp.float32)
    out_big = jax.block_until_ready(relation_network_forward(x_big, params))
    ref_big = reference_forward(x_big, params)
    assert out_big.shape == (2, 1)
    assert jnp.allclose(out_big, ref_big, atol=ATOL, rtol=RTOL)

    # 3) Same input, forced multi-tile path with a remainder tile
    #    (TP=256 -> 2 tiles, last tile 144 valid pixels, masked accumulate).
    out_tiled = jax.block_until_ready(
        relation_network_forward(x_big, params, tp=256))
    assert out_tiled.shape == (2, 1)
    assert jnp.allclose(out_tiled, ref_big, atol=ATOL, rtol=RTOL)

    print("KERNEL_OK")
</pallas_src>

<mosaic_0001>
module attributes {stable_mosaic.version = 11 : i64} {
  func.func @relation_network_small_p_kernel(%arg0: i32, %arg1: memref<1x192x32xf32, #tpu.memory_space<vmem>>, %arg2: memref<576x192xbf16, #tpu.memory_space<vmem>>, %arg3: memref<576x1xf32, #tpu.memory_space<vmem>>, %arg4: memref<32x2xbf16, #tpu.memory_space<vmem>>, %arg5: memref<128x576xf32, #tpu.memory_space<vmem>>, %arg6: memref<128x1xf32, #tpu.memory_space<vmem>>, %arg7: memref<128x1xf32, #tpu.memory_space<vmem>>, %arg8: memref<1x1xf32, #tpu.memory_space<vmem>>, %arg9: memref<1x1x2xf32, #tpu.memory_space<vmem>>) attributes {dimension_semantics = [#tpu.dimension_semantics<parallel>], iteration_bounds = array<i64: 1>, scalar_prefetch = 0 : i64, scratch_operands = 0 : i64, tpu.core_type = #tpu.core_type<tc>, window_params = [{transform_indices = @transform_0, window_bounds = array<i64: 1, 192, 32>}, {pipeline_mode = #tpu.pipeline_mode<synchronous>, transform_indices = @transform_1, window_bounds = array<i64: 576, 192>}, {pipeline_mode = #tpu.pipeline_mode<synchronous>, transform_indices = @transform_2, window_bounds = array<i64: 576, 1>}, {pipeline_mode = #tpu.pipeline_mode<synchronous>, transform_indices = @transform_3, window_bounds = array<i64: 32, 2>}, {pipeline_mode = #tpu.pipeline_mode<synchronous>, transform_indices = @transform_4, window_bounds = array<i64: 128, 576>}, {pipeline_mode = #tpu.pipeline_mode<synchronous>, transform_indices = @transform_5, window_bounds = array<i64: 128, 1>}, {pipeline_mode = #tpu.pipeline_mode<synchronous>, transform_indices = @transform_6, window_bounds = array<i64: 128, 1>}, {pipeline_mode = #tpu.pipeline_mode<synchronous>, transform_indices = @transform_7, window_bounds = array<i64: 1, 1>}, {transform_indices = @transform_8, window_bounds = array<i64: 1, 1, 2>}]} {
    %c0 = arith.constant 0 : index
    %c0_0 = arith.constant 0 : index
    %c0_1 = arith.constant 0 : index
    %0 = vector.load %arg1[%c0, %c0_0, %c0_1] : memref<1x192x32xf32, #tpu.memory_space<vmem>>, vector<1x192x32xf32>
    %1 = vector.shape_cast %0 : vector<1x192x32xf32> to vector<192x32xf32>
    %2 = arith.truncf %1 : vector<192x32xf32> to vector<192x32xbf16>
    %c0_2 = arith.constant 0 : index
    %c0_3 = arith.constant 0 : index
    %3 = vector.load %arg2[%c0_2, %c0_3] : memref<576x192xbf16, #tpu.memory_space<vmem>>, vector<576x192xbf16>
    %cst = arith.constant dense<0.000000e+00> : vector<576x32xf32>
    %4 = tpu.matmul %3, %2, %cst {dimension_numbers = #tpu.dot_dimension_numbers<[1], [0], [0], [1], [0, 0, 1, 1], [], []>} : vector<576x192xbf16>, vector<192x32xbf16>, vector<576x32xf32> -> vector<576x32xf32>
    %c0_4 = arith.constant 0 : index
    %c0_5 = arith.constant 0 : index
    %5 = vector.load %arg3[%c0_4, %c0_5] : memref<576x1xf32, #tpu.memory_space<vmem>>, vector<576x1xf32>
    %6 = vector.broadcast %5 : vector<576x1xf32> to vector<576x32xf32>
    %7 = arith.addf %4, %6 : vector<576x32xf32>
    %cst_6 = arith.constant 3.000000e+00 : f32
    %8 = vector.broadcast %cst_6 : f32 to vector<576x32xf32>
    %9 = arith.addf %7, %8 : vector<576x32xf32>
    %cst_7 = arith.constant 0.000000e+00 : f32
    %cst_8 = arith.constant 6.000000e+00 : f32
    %10 = vector.broadcast %cst_7 : f32 to vector<576x32xf32>
    %11 = arith.maximumf %10, %9 : vector<576x32xf32>
    %12 = vector.broadcast %cst_8 : f32 to vector<576x32xf32>
    %13 = arith.minimumf %12, %11 : vector<576x32xf32>
    %14 = arith.mulf %7, %13 : vector<576x32xf32>
    %cst_9 = arith.constant 0.166666672 : f32
    %15 = vector.broadcast %cst_9 : f32 to vector<576x32xf32>
    %16 = arith.mulf %14, %15 : vector<576x32xf32>
    %17 = arith.truncf %16 : vector<576x32xf32> to vector<576x32xbf16>
    %c0_10 = arith.constant 0 : index
    %c0_11 = arith.constant 0 : index
    %18 = vector.load %arg4[%c0_10, %c0_11] : memref<32x2xbf16, #tpu.memory_space<vmem>>, vector<32x2xbf16>
    %cst_12 = arith.constant dense<0.000000e+00> : vector<576x2xf32>
    %19 = tpu.matmul %17, %18, %cst_12 {dimension_numbers = #tpu.dot_dimension_numbers<[1], [0], [0], [1], [0, 0, 1, 1], [], []>} : vector<576x32xbf16>, vector<32x2xbf16>, vector<576x2xf32> -> vector<576x2xf32>
    %cst_13 = arith.constant 6.250000e-02 : f32
    %20 = vector.broadcast %cst_13 : f32 to vector<576x2xf32>
    %21 = arith.mulf %19, %20 : vector<576x2xf32>
    %c0_14 = arith.constant 0 : index
    %c0_15 = arith.constant 0 : index
    %22 = vector.load %arg5[%c0_14, %c0_15] : memref<128x576xf32, #tpu.memory_space<vmem>>, vector<128x576xf32>
    %cst_16 = arith.constant dense<0.000000e+00> : vector<128x2xf32>
    %23 = tpu.matmul %22, %21, %cst_16 {dimension_numbers = #tpu.dot_dimension_numbers<[1], [0], [0], [1], [0, 0, 1, 1], [], []>} : vector<128x576xf32>, vector<576x2xf32>, vector<128x2xf32> -> vector<128x2xf32>
    %c0_17 = arith.constant 0 : index
    %c0_18 = arith.constant 0 : index
    %24 = vector.load %arg6[%c0_17, %c0_18] : memref<128x1xf32, #tpu.memory_space<vmem>>, vector<128x1xf32>
    %25 = vector.broadcast %24 : vector<128x1xf32> to vector<128x2xf32>
    %26 = arith.addf %23, %25 : vector<128x2xf32>
    %cst_19 = arith.constant 3.000000e+00 : f32
    %27 = vector.broadcast %cst_19 : f32 to vector<128x2xf32>
    %28 = arith.addf %26, %27 : vector<128x2xf32>
    %cst_20 = arith.constant 0.000000e+00 : f32
    %cst_21 = arith.constant 6.000000e+00 : f32
    %29 = vector.broadcast %cst_20 : f32 to vector<128x2xf32>
    %30 = arith.maximumf %29, %28 : vector<128x2xf32>
    %31 = vector.broadcast %cst_21 : f32 to vector<128x2xf32>
    %32 = arith.minimumf %31, %30 : vector<128x2xf32>
    %33 = arith.mulf %26, %32 : vector<128x2xf32>
    %cst_22 = arith.constant 0.166666672 : f32
    %34 = vector.broadcast %cst_22 : f32 to vector<128x2xf32>
    %35 = arith.mulf %33, %34 : vector<128x2xf32>
    %c0_23 = arith.constant 0 : index
    %c0_24 = arith.constant 0 : index
    %36 = vector.load %arg7[%c0_23, %c0_24] : memref<128x1xf32, #tpu.memory_space<vmem>>, vector<128x1xf32>
    %37 = vector.broadcast %36 : vector<128x1xf32> to vector<128x2xf32>
    %38 = arith.mulf %37, %35 : vector<128x2xf32>
    %cst_25 = arith.constant dense<0.000000e+00> : vector<2xf32>
    %39 = vector.multi_reduction <add>, %38, %cst_25 [0] : vector<128x2xf32> to vector<2xf32>
    %40 = vector.shape_cast %39 : vector<2xf32> to vector<1x2xf32>
    %c0_26 = arith.constant 0 : index
    %c0_27 = arith.constant 0 : index
    %41 = vector.load %arg8[%c0_26, %c0_27] : memref<1x1xf32, #tpu.memory_space<vmem>>, vector<1x1xf32>
    %42 = vector.broadcast %41 : vector<1x1xf32> to vector<1x2xf32>
    %43 = arith.addf %40, %42 : vector<1x2xf32>
    %44 = arith.negf %43 : vector<1x2xf32>
    %45 = math.exp %44 : vector<1x2xf32>
    %cst_28 = arith.constant 1.000000e+00 : f32
    %46 = vector.broadcast %cst_28 : f32 to vector<1x2xf32>
    %47 = arith.addf %46, %45 : vector<1x2xf32>
    %48 = arith.divf %46, %47 : vector<1x2xf32>
    %49 = vector.shape_cast %48 : vector<1x2xf32> to vector<1x1x2xf32>
    %c0_29 = arith.constant 0 : index
    %c0_30 = arith.constant 0 : index
    %c0_31 = arith.constant 0 : index
    %50 = vector.load %arg9[%c0_29, %c0_30, %c0_31] : memref<1x1x2xf32, #tpu.memory_space<vmem>>, vector<1x1x2xf32>
    tpu.vector_store %arg9[%c0_29, %c0_30, %c0_31], %49 {strides = array<i32>} : memref<1x1x2xf32, #tpu.memory_space<vmem>>, vector<1x1x2xf32>,
    return
  }
  func.func @transform_0(%arg0: i32) -> (i32, i32, i32) {
    %c0_i32 = arith.constant 0 : i32
    %c0_i32_0 = arith.constant 0 : i32
    %c0_i32_1 = arith.constant 0 : i32
    return %arg0, %c0_i32, %c0_i32_0 : i32, i32, i32
  }
  func.func @transform_1(%arg0: i32) -> (i32, i32) {
    %c0_i32 = arith.constant 0 : i32
    %c0_i32_0 = arith.constant 0 : i32
    %c0_i32_1 = arith.constant 0 : i32
    return %c0_i32, %c0_i32_0 : i32, i32
  }
  func.func @transform_2(%arg0: i32) -> (i32, i32) {
    %c0_i32 = arith.constant 0 : i32
    %c0_i32_0 = arith.constant 0 : i32
    %c0_i32_1 = arith.constant 0 : i32
    return %c0_i32, %c0_i32_0 : i32, i32
  }
  func.func @transform_3(%arg0: i32) -> (i32, i32) {
    %c0_i32 = arith.constant 0 : i32
    %c0_i32_0 = arith.constant 0 : i32
    %c0_i32_1 = arith.constant 0 : i32
    return %c0_i32, %c0_i32_0 : i32, i32
  }
  func.func @transform_4(%arg0: i32) -> (i32, i32) {
    %c0_i32 = arith.constant 0 : i32
    %c0_i32_0 = arith.constant 0 : i32
    %c0_i32_1 = arith.constant 0 : i32
    return %c0_i32, %c0_i32_0 : i32, i32
  }
  func.func @transform_5(%arg0: i32) -> (i32, i32) {
    %c0_i32 = arith.constant 0 : i32
    %c0_i32_0 = arith.constant 0 : i32
    %c0_i32_1 = arith.constant 0 : i32
    return %c0_i32, %c0_i32_0 : i32, i32
  }
  func.func @transform_6(%arg0: i32) -> (i32, i32) {
    %c0_i32 = arith.constant 0 : i32
    %c0_i32_0 = arith.constant 0 : i32
    %c0_i32_1 = arith.constant 0 : i32
    return %c0_i32, %c0_i32_0 : i32, i32
  }
  func.func @transform_7(%arg0: i32) -> (i32, i32) {
    %c0_i32 = arith.constant 0 : i32
    %c0_i32_0 = arith.constant 0 : i32
    %c0_i32_1 = arith.constant 0 : i32
    return %c0_i32, %c0_i32_0 : i32, i32
  }
  func.func @transform_8(%arg0: i32) -> (i32, i32, i32) {
    %c0_i32 = arith.constant 0 : i32
    %c0_i32_0 = arith.constant 0 : i32
    %c0_i32_1 = arith.constant 0 : i32
    return %arg0, %c0_i32, %c0_i32_0 : i32, i32, i32
  }
}

</mosaic_0001>

<bundles_post_ra>
// kernel: tpu_custom_call.1
= control target key start
LH: loop header
LB: loop body
LE: loop exit
PB: predicated region body
PF: predicated region fallthrough
CT: control target
= control target key end

     0   :  { %s5155_s0 = inlined_call_operand.vmem [shape: f32[1,192,32], index: 0, kind: input, shape index: {}]   ;;  %s5156_s1 = inlined_call_operand.vmem [shape: bf16[576,192], index: 1, kind: input, shape index: {}]   ;;  %s5157_s2 = inlined_call_operand.vmem [shape: f32[576,1], index: 2, kind: input, shape index: {}]   ;;  %s5158_s3 = inlined_call_operand.vmem [shape: bf16[32,2], index: 3, kind: input, shape index: {}]   ;;  %s5159_s4 = inlined_call_operand.vmem [shape: f32[128,576], index: 4, kind: input, shape index: {}]   ;;  %s5160_s5 = inlined_call_operand.vmem [shape: f32[128,1], index: 5, kind: input, shape index: {}]   ;;  %s5161_s6 = inlined_call_operand.vmem [shape: f32[128,1], index: 6, kind: input, shape index: {}]   ;;  %s5162_s7 = inlined_call_operand.<no memory space> [shape: f32[1,1], index: 7, kind: input, shape index: {}]   ;;  %s5163_s8 = inlined_call_operand.hbm [shape: f32[1,1,2], index: 8, kind: output, shape index: {}]  }
   0x1   :  { %v13_v0 = vstv %s5162_s7 }
   0x2   :  { %14 = vst [vmem:[#allocation2] sm:$0x1] %v13_v0 }
   0x3   :  { %v143_v1 = vld [vmem:[%s5157_s2 + $0x10] sm:$0xff]  ;;  %v141_v2 = vld [vmem:[%s5157_s2] sm:$0xff]  ;;  %v3886_v4 = vmov 0   ;;  %v34_v5 = vld [vmem:[%s5155_s0 + $0x8] sm:$0xff]  ;;  %vm897_vm0 = vcmask 523264  }
   0x4   :  { %v33_v3 = vld [vmem:[%s5155_s0] sm:$0xff]  ;;  %3747 = vset.pattern.permute.xlu1 %v3886_v4  ;;  %3746 = vset.pattern.permute.xlu0 %v3886_v4  ;;  %v35_v7 = vld [vmem:[%s5155_s0 + $0x10] sm:$0xff]  ;;  %v36_v8 = vld [vmem:[%s5155_s0 + $0x18] sm:$0xff] }
   0x5   :  { %1006 = vmatprep.subr.bf16.mxu0 %v3886_v4  ;;  %225 = vperm.xlu1 %3747, %v143_v1   ;;  %v57_v6 = vpack.c.bf16 %v34_v5, %v33_v3  ;;  %v144_v9 = vld [vmem:[%s5157_s2 + $0x18] sm:$0xff]  ;;  %v142_v10 = vld [vmem:[%s5157_s2 + $0x8] sm:$0xff]  ;;  %v58_v11 = vpack.c.bf16 %v36_v8, %v35_v7  ;;  %v37_v12 = vld [vmem:[%s5155_s0 + $0x20] sm:$0xff] }
   0x6   :  { %215 = vperm.xlu0 %3746, %v141_v2   ;;  %v38_v13 = vld [vmem:[%s5155_s0 + $0x28] sm:$0xff]  ;;  %v145_v15 = vld [vmem:[%s5157_s2 + $0x20] sm:$0xff]  ;;  %v39_v17 = vld [vmem:[%s5155_s0 + $0x30] sm:$0xff] }
   0x7   :  { %1007 = vmatpush1.bf16.msra.mxu0 %v57_v6  ;;  %v146_v14 = vld [vmem:[%s5157_s2 + $0x28] sm:$0xff]  ;;  %v59_v16 = vpack.c.bf16 %v38_v13, %v37_v12  ;;  %v40_v18 = vld [vmem:[%s5155_s0 + $0x38] sm:$0xff]  ;;  %v147_v20 = vld [vmem:[%s5157_s2 + $0x30] sm:$0xff] }
   0x8   :  { %1008 = vmatprep.subr.bf16.mxu0 %v3886_v4  ;;  %v148_v19 = vld [vmem:[%s5157_s2 + $0x38] sm:$0xff]  ;;  %v60_v21 = vpack.c.bf16 %v40_v18, %v39_v17  ;;  %v41_v22 = vld [vmem:[%s5155_s0 + $0x40] sm:$0xff]  ;;  %v42_v23 = vld [vmem:[%s5155_s0 + $0x48] sm:$0xff] }
   0x9   :  { %230 = vperm.xlu1 %3747, %v144_v9   ;;  %v150_v24 = vld [vmem:[%s5157_s2 + $0x48] sm:$0xff]  ;;  %v149_v25 = vld [vmem:[%s5157_s2 + $0x40] sm:$0xff]  ;;  %v61_v26 = vpack.c.bf16 %v42_v23, %v41_v22  ;;  %v43_v27 = vld [vmem:[%s5155_s0 + $0x50] sm:$0xff] }
   0xa   :  { %220 = vperm.xlu0 %3746, %v142_v10   ;;  %v44_v28 = vld [vmem:[%s5155_s0 + $0x58] sm:$0xff]  ;;  %v3750_v29 = vld [vmem:[%s5156_s1 + $0x4] ss:$8 sps:$4 sm:$0xff]   ;;  %v151_v31 = vld [vmem:[%s5157_s2 + $0x50] sm:$0xff] }
   0xb   :  { %1009 = vmatpush1.bf16.msra.mxu0 %v58_v11  ;;  %v152_v30 = vld [vmem:[%s5157_s2 + $0x58] sm:$0xff]  ;;  %3235 = vmatprep.mubr.msk.bf16.mxu0 %vm897_vm0, %v3750_v29  ;;  %v62_v32 = vpack.c.bf16 %v44_v28, %v43_v27  ;;  %v45_v33 = vld [vmem:[%s5155_s0 + $0x60] sm:$0xff]  ;;  %v46_v34 = vld [vmem:[%s5155_s0 + $0x68] sm:$0xff] }
   0xc   :  { %1010 = vmatprep.subr.bf16.mxu0 %v3886_v4  ;;  %v154_v35 = vld [vmem:[%s5157_s2 + $0x68] sm:$0xff]  ;;  %v153_v36 = vld [vmem:[%s5157_s2 + $0x60] sm:$0xff]  ;;  %v63_v37 = vpack.c.bf16 %v46_v34, %v45_v33  ;;  %v47_v38 = vld [vmem:[%s5155_s0 + $0x70] sm:$0xff] }
   0xd   :  { %240 = vperm.xlu1 %3747, %v146_v14   ;;  %v48_v39 = vld [vmem:[%s5155_s0 + $0x78] sm:$0xff]  ;;  %v155_v41 = vld [vmem:[%s5157_s2 + $0x70] sm:$0xff]  ;;  %v49_v43 = vld [vmem:[%s5155_s0 + $0x80] sm:$0xff] }
   0xe   :  { %235 = vperm.xlu0 %3746, %v145_v15   ;;  %v156_v40 = vld [vmem:[%s5157_s2 + $0x78] sm:$0xff]  ;;  %v64_v42 = vpack.c.bf16 %v48_v39, %v47_v38  ;;  %v50_v44 = vld [vmem:[%s5155_s0 + $0x88] sm:$0xff]  ;;  %v157_v46 = vld [vmem:[%s5157_s2 + $0x80] sm:$0xff] }
   0xf   :  { %1011 = vmatpush1.bf16.msra.mxu0 %v59_v16  ;;  %v158_v45 = vld [vmem:[%s5157_s2 + $0x88] sm:$0xff]  ;;  %v65_v47 = vpack.c.bf16 %v50_v44, %v49_v43  ;;  %v51_v48 = vld [vmem:[%s5155_s0 + $0x90] sm:$0xff]  ;;  %v52_v49 = vld [vmem:[%s5155_s0 + $0x98] sm:$0xff] }
  0x10   :  { %1012 = vmatprep.subr.bf16.mxu0 %v3886_v4  ;;  %v160_v50 = vld [vmem:[%s5157_s2 + $0x98] sm:$0xff]  ;;  %v159_v51 = vld [vmem:[%s5157_s2 + $0x90] sm:$0xff]  ;;  %v66_v52 = vpack.c.bf16 %v52_v49, %v51_v48  ;;  %v53_v53 = vld [vmem:[%s5155_s0 + $0xa0] sm:$0xff] }
  0x11   :  { %250 = vperm.xlu1 %3747, %v148_v19   ;;  %v54_v54 = vld [vmem:[%s5155_s0 + $0xa8] sm:$0xff]  ;;  %v161_v56 = vld [vmem:[%s5157_s2 + $0xa0] sm:$0xff]  ;;  %v55_v58 = vld [vmem:[%s5155_s0 + $0xb0] sm:$0xff] }
  0x12   :  { %245 = vperm.xlu0 %3746, %v147_v20   ;;  %v162_v55 = vld [vmem:[%s5157_s2 + $0xa8] sm:$0xff]  ;;  %v67_v57 = vpack.c.bf16 %v54_v54, %v53_v53  ;;  %v56_v59 = vld [vmem:[%s5155_s0 + $0xb8] sm:$0xff]  ;;  %v163_v61 = vld [vmem:[%s5157_s2 + $0xb0] sm:$0xff] }
  0x13   :  { %1013 = vmatpush1.bf16.msra.mxu0 %v60_v21  ;;  %v164_v60 = vld [vmem:[%s5157_s2 + $0xb8] sm:$0xff]  ;;  %v68_v62 = vpack.c.bf16 %v56_v59, %v55_v58  ;;  %v3748_v63 = vld [vmem:[%s5156_s1] ss:$8 sps:$4 sm:$0xff]   ;;  %v3754_v8 = vld [vmem:[%s5156_s1 + $0x24] ss:$8 sps:$4 sm:$0xff]  }
  0x14   :  { %1014 = vmatprep.subr.bf16.mxu0 %v3886_v4  ;;  %v166_v0 = vld [vmem:[%s5157_s2 + $0xc8] sm:$0xff]  ;;  %v165_v1 = vld [vmem:[%s5157_s2 + $0xc0] sm:$0xff]  ;;  %v3751_v2 = vld [vmem:[%s5156_s1 + $0x14] ss:$8 sps:$4 sm:$0xff]  }
  0x15   :  { %260 = vperm.xlu1 %3747, %v150_v24   ;;  %v168_v3 = vld [vmem:[%s5157_s2 + $0xd8] sm:$0xff]  ;;  %v170_v5 = vld [vmem:[%s5157_s2 + $0xe8] sm:$0xff]  ;;  %v169_v6 = vld [vmem:[%s5157_s2 + $0xe0] sm:$0xff] }
  0x16   :  { %255 = vperm.xlu0 %3746, %v149_v25   ;;  %v3753_v7 = vld [vmem:[%s5156_s1 + $0x10] ss:$8 sps:$4 sm:$0xff]   ;;  %v174_v11 = vld [vmem:[%s5157_s2 + $0x108] sm:$0xff]  ;;  %v173_v12 = vld [vmem:[%s5157_s2 + $0x100] sm:$0xff] }
  0x17   :  { %1015 = vmatpush1.bf16.msra.mxu0 %v61_v26  ;;  %v172_v9 = vld [vmem:[%s5157_s2 + $0xf8] sm:$0xff]  ;;  %v171_v10 = vld [vmem:[%s5157_s2 + $0xf0] sm:$0xff]  ;;  %v3756_v13 = vld [vmem:[%s5156_s1 + $0x20] ss:$8 sps:$4 sm:$0xff]  }
  0x18   :  { %1016 = vmatprep.subr.bf16.mxu0 %v3886_v4  ;;  %v3757_v14 = vld [vmem:[%s5156_s1 + $0x34] ss:$8 sps:$4 sm:$0xff]   ;;  %v178_v17 = vld [vmem:[%s5157_s2 + $0x128] sm:$0xff]  ;;  %v177_v18 = vld [vmem:[%s5157_s2 + $0x120] sm:$0xff] }
  0x19   :  { %270 = vperm.xlu1 %3747, %v152_v30   ;;  %v176_v15 = vld [vmem:[%s5157_s2 + $0x118] sm:$0xff]  ;;  %v175_v16 = vld [vmem:[%s5157_s2 + $0x110] sm:$0xff]  ;;  %v3760_v20 = vld [vmem:[%s5156_s1 + $0x44] ss:$8 sps:$4 sm:$0xff]  }
  0x1a   :  { %265 = vperm.xlu0 %3746, %v151_v31   ;;  %v3759_v19 = vld [vmem:[%s5156_s1 + $0x30] ss:$8 sps:$4 sm:$0xff]   ;;  %v182_v23 = vld [vmem:[%s5157_s2 + $0x148] sm:$0xff]  ;;  %v181_v24 = vld [vmem:[%s5157_s2 + $0x140] sm:$0xff] }
  0x1b   :  { %1017 = vmatpush1.bf16.msra.mxu0 %v62_v32  ;;  %v180_v21 = vld [vmem:[%s5157_s2 + $0x138] sm:$0xff]  ;;  %v179_v22 = vld [vmem:[%s5157_s2 + $0x130] sm:$0xff]  ;;  %v3762_v25 = vld [vmem:[%s5156_s1 + $0x40] ss:$8 sps:$4 sm:$0xff]  }
  0x1c   :  { %1018 = vmatprep.subr.bf16.mxu0 %v3886_v4  ;;  %v3763_v26 = vld [vmem:[%s5156_s1 + $0x54] ss:$8 sps:$4 sm:$0xff]  }
  0x1d   :  { %280 = vperm.xlu1 %3747, %v154_v35  }
  0x1e   :  { %275 = vperm.xlu0 %3746, %v153_v36  }
  0x1f   :  { %1019 = vmatpush1.bf16.msra.mxu0 %v63_v37 }
  0x20   :  { %1020 = vmatprep.subr.bf16.mxu0 %v3886_v4 }
  0x21   :  { %290 = vperm.xlu1 %3747, %v156_v40  }
  0x22   :  { %285 = vperm.xlu0 %3746, %v155_v41  }
  0x23   :  { %1021 = vmatpush1.bf16.msra.mxu0 %v64_v42 }
  0x24   :  { %1022 = vmatprep.subr.bf16.mxu0 %v3886_v4 }
  0x25   :  { %300 = vperm.xlu1 %3747, %v158_v45  }
  0x26   :  { %295 = vperm.xlu0 %3746, %v157_v46  }
  0x27   :  { %1023 = vmatpush1.bf16.msra.mxu0 %v65_v47 }
  0x28   :  { %1024 = vmatprep.subr.bf16.mxu0 %v3886_v4 }
  0x29   :  { %310 = vperm.xlu1 %3747, %v160_v50  }
  0x2a   :  { %305 = vperm.xlu0 %3746, %v159_v51  }
  0x2b   :  { %1025 = vmatpush1.bf16.msra.mxu0 %v66_v52 }
  0x2c   :  { %1026 = vmatprep.subr.bf16.mxu0 %v3886_v4 }
  0x2d   :  { %320 = vperm.xlu1 %3747, %v162_v55  }
  0x2e   :  { %315 = vperm.xlu0 %3746, %v161_v56  }
  0x2f   :  { %1027 = vmatpush1.bf16.msra.mxu0 %v67_v57 }
  0x30   :  { %1028 = vmatprep.subr.bf16.mxu0 %v3886_v4  ;;  %v167_v4 = vld [vmem:[%s5157_s2 + $0xd0] sm:$0xff] }
  0x31   :  { %330 = vperm.xlu1 %3747, %v164_v60  }
  0x32   :  { %325 = vperm.xlu0 %3746, %v163_v61  }
  0x33   :  { %1029 = vmatpush1.bf16.msra.mxu0 %v68_v62 }
  0x35   :  { %340 = vperm.xlu1 %3747, %v166_v0  }
  0x36   :  { %335 = vperm.xlu0 %3746, %v165_v1   ;;  %1039 = vmatmul.mubr.bf16.vlgmr.msra.gmra.mrb[0].mxu0 %v3748_v63 }
  0x37   :  { %3236 = vmatprep.mubr.msk.bf16.mxu0 %vm897_vm0, %v3751_v2 }
  0x39   :  { %350 = vperm.xlu1 %3747, %v168_v3  }
  0x3a   :  { %345 = vperm.xlu0 %3746, %v167_v4  }
  0x3d   :  { %360 = vperm.xlu1 %3747, %v170_v5  }
  0x3e   :  { %355 = vperm.xlu0 %3746, %v169_v6   ;;  %1047 = vmatmul.mubr.bf16.gmra.mrb[4].mxu0 %v3753_v7 }
  0x3f   :  { %3237 = vmatprep.mubr.msk.bf16.mxu0 %vm897_vm0, %v3754_v8 }
  0x41   :  { %370 = vperm.xlu1 %3747, %v172_v9  }
  0x42   :  { %365 = vperm.xlu0 %3746, %v171_v10  }
  0x45   :  { %380 = vperm.xlu1 %3747, %v174_v11  }
  0x46   :  { %375 = vperm.xlu0 %3746, %v173_v12   ;;  %1055 = vmatmul.mubr.bf16.gmra.mrb[8].mxu0 %v3756_v13 }
  0x47   :  { %3238 = vmatprep.mubr.msk.bf16.mxu0 %vm897_vm0, %v3757_v14 }
  0x49   :  { %390 = vperm.xlu1 %3747, %v176_v15  }
  0x4a   :  { %385 = vperm.xlu0 %3746, %v175_v16  }
  0x4d   :  { %400 = vperm.xlu1 %3747, %v178_v17  }
  0x4e   :  { %395 = vperm.xlu0 %3746, %v177_v18   ;;  %1063 = vmatmul.mubr.bf16.gmra.mrb[12].mxu0 %v3759_v19 }
  0x4f   :  { %3239 = vmatprep.mubr.msk.bf16.mxu0 %vm897_vm0, %v3760_v20 }
  0x51   :  { %410 = vperm.xlu1 %3747, %v180_v21  }
  0x52   :  { %405 = vperm.xlu0 %3746, %v179_v22  }
  0x55   :  { %420 = vperm.xlu1 %3747, %v182_v23  }
  0x56   :  { %15 = vsyncpa [#allocation4], 0  ;;  %415 = vperm.xlu0 %3746, %v181_v24   ;;  %1071 = vmatmul.mubr.bf16.gmra.mrb[16].mxu0 %v3762_v25  ;;  %v184_v27 = vld [vmem:[%s5157_s2 + $0x158] sm:$0xff]  ;;  %v183_v28 = vld [vmem:[%s5157_s2 + $0x150] sm:$0xff]  ;;  %vm1739_vm1 = vcmask 261120   ;;  %vm3092_vm2 = vcmask 15360  }
  0x57   :  { %3240 = vmatprep.mubr.msk.bf16.mxu0 %vm897_vm0, %v3763_v26  ;;  %v186_v29 = vld [vmem:[%s5157_s2 + $0x168] sm:$0xff]  ;;  %v3765_v30 = vld [vmem:[%s5156_s1 + $0x50] ss:$8 sps:$4 sm:$0xff]   ;;  %v185_v31 = vld [vmem:[%s5157_s2 + $0x160] sm:$0xff]  ;;  %vm3147_vm3 = vcmask 8192  }
  0x58   :  { %v3766_v32 = vld [vmem:[%s5156_s1 + $0x64] ss:$8 sps:$4 sm:$0xff]   ;;  %v188_v33 = vld [vmem:[%s5157_s2 + $0x178] sm:$0xff]  ;;  %v187_v34 = vld [vmem:[%s5157_s2 + $0x170] sm:$0xff] }
  0x59   :  { %430 = vperm.xlu1 %3747, %v184_v27   ;;  %v190_v35 = vld [vmem:[%s5157_s2 + $0x188] sm:$0xff]  ;;  %v189_v37 = vld [vmem:[%s5157_s2 + $0x180] sm:$0xff]  ;;  %v3769_v38 = vld [vmem:[%s5156_s1 + $0x74] ss:$8 sps:$4 sm:$0xff]  }
  0x5a   :  { %425 = vperm.xlu0 %3746, %v183_v28   ;;  %v3768_v36 = vld [vmem:[%s5156_s1 + $0x60] ss:$8 sps:$4 sm:$0xff]   ;;  %v192_v39 = vld [vmem:[%s5157_s2 + $0x198] sm:$0xff]  ;;  %v191_v40 = vld [vmem:[%s5157_s2 + $0x190] sm:$0xff] }
  0x5b   :  { %v194_v41 = vld [vmem:[%s5157_s2 + $0x1a8] sm:$0xff]  ;;  %v3771_v42 = vld [vmem:[%s5156_s1 + $0x70] ss:$8 sps:$4 sm:$0xff]   ;;  %v193_v43 = vld [vmem:[%s5157_s2 + $0x1a0] sm:$0xff] }
  0x5c   :  { %v3772_v44 = vld [vmem:[%s5156_s1 + $0x84] ss:$8 sps:$4 sm:$0xff]   ;;  %v196_v45 = vld [vmem:[%s5157_s2 + $0x1b8] sm:$0xff]  ;;  %v195_v46 = vld [vmem:[%s5157_s2 + $0x1b0] sm:$0xff] }
  0x5d   :  { %440 = vperm.xlu1 %3747, %v186_v29   ;;  %v198_v47 = vld [vmem:[%s5157_s2 + $0x1c8] sm:$0xff]  ;;  %v197_v49 = vld [vmem:[%s5157_s2 + $0x1c0] sm:$0xff]  ;;  %v3775_v50 = vld [vmem:[%s5156_s1 + $0x94] ss:$8 sps:$4 sm:$0xff]  }
  0x5e   :  { %435 = vperm.xlu0 %3746, %v185_v31   ;;  %1079 = vmatmul.mubr.bf16.gmra.mrb[20].mxu0 %v3765_v30  ;;  %v3774_v48 = vld [vmem:[%s5156_s1 + $0x80] ss:$8 sps:$4 sm:$0xff]   ;;  %v200_v51 = vld [vmem:[%s5157_s2 + $0x1d8] sm:$0xff]  ;;  %v199_v52 = vld [vmem:[%s5157_s2 + $0x1d0] sm:$0xff] }
  0x5f   :  { %3241 = vmatprep.mubr.msk.bf16.mxu0 %vm897_vm0, %v3766_v32  ;;  %v202_v53 = vld [vmem:[%s5157_s2 + $0x1e8] sm:$0xff]  ;;  %v3777_v54 = vld [vmem:[%s5156_s1 + $0x90] ss:$8 sps:$4 sm:$0xff]   ;;  %v201_v55 = vld [vmem:[%s5157_s2 + $0x1e0] sm:$0xff] }
  0x60   :  { %v3778_v56 = vld [vmem:[%s5156_s1 + $0xa4] ss:$8 sps:$4 sm:$0xff]   ;;  %v204_v57 = vld [vmem:[%s5157_s2 + $0x1f8] sm:$0xff]  ;;  %v203_v58 = vld [vmem:[%s5157_s2 + $0x1f0] sm:$0xff] }
  0x61   :  { %450 = vperm.xlu1 %3747, %v188_v33   ;;  %v206_v59 = vld [vmem:[%s5157_s2 + $0x208] sm:$0xff]  ;;  %v205_v61 = vld [vmem:[%s5157_s2 + $0x200] sm:$0xff]  ;;  %v3781_v62 = vld [vmem:[%s5156_s1 + $0xb4] ss:$8 sps:$4 sm:$0xff]  }
  0x62   :  { %445 = vperm.xlu0 %3746, %v187_v34   ;;  %v3780_v60 = vld [vmem:[%s5156_s1 + $0xa0] ss:$8 sps:$4 sm:$0xff]   ;;  %v208_v63 = vld [vmem:[%s5157_s2 + $0x218] sm:$0xff]  ;;  %v207_v0 = vld [vmem:[%s5157_s2 + $0x210] sm:$0xff] }
  0x63   :  { %v210_v1 = vld [vmem:[%s5157_s2 + $0x228] sm:$0xff]  ;;  %v3783_v2 = vld [vmem:[%s5156_s1 + $0xb0] ss:$8 sps:$4 sm:$0xff]   ;;  %v209_v3 = vld [vmem:[%s5157_s2 + $0x220] sm:$0xff] }
  0x64   :  { %v3784_v4 = vld [vmem:[%s5156_s1 + $0xc4] ss:$8 sps:$4 sm:$0xff]   ;;  %v212_v5 = vld [vmem:[%s5157_s2 + $0x238] sm:$0xff]  ;;  %v211_v6 = vld [vmem:[%s5157_s2 + $0x230] sm:$0xff] }
  0x65   :  { %460 = vperm.xlu1 %3747, %v190_v35   ;;  %v2322_v7 = vld [vmem:[%s5160_s5 + $0x8] sm:$0xff]  ;;  %v2321_v9 = vld [vmem:[%s5160_s5] sm:$0xff]  ;;  %v3787_v10 = vld [vmem:[%s5156_s1 + $0xd4] ss:$8 sps:$4 sm:$0xff]  }
  0x66   :  { %455 = vperm.xlu0 %3746, %v189_v37   ;;  %1087 = vmatmul.mubr.bf16.gmra.mrb[24].mxu0 %v3768_v36  ;;  %v3786_v8 = vld [vmem:[%s5156_s1 + $0xc0] ss:$8 sps:$4 sm:$0xff]   ;;  %v2324_v11 = vld [vmem:[%s5160_s5 + $0x18] sm:$0xff]  ;;  %v2323_v12 = vld [vmem:[%s5160_s5 + $0x10] sm:$0xff] }
  0x67   :  { %3242 = vmatprep.mubr.msk.bf16.mxu0 %vm897_vm0, %v3769_v38  ;;  %v3835_v13 = vld [vmem:[%s5158_s3] sm:$0xff]   ;;  %v2326_v14 = vld [vmem:[%s5160_s5 + $0x28] sm:$0xff]  ;;  %v3789_v15 = vld [vmem:[%s5156_s1 + $0xd0] ss:$8 sps:$4 sm:$0xff]  }
  0x68   :  { %3548 = vmatprep.subr.bf16.mxu1 %v3835_v13  ;;  %v2325_v16 = vld [vmem:[%s5160_s5 + $0x20] sm:$0xff]  ;;  %v3839_v18 = vld [vmem:[%s5158_s3 + $0x8] sm:$0xff]   ;;  %v2328_v19 = vld [vmem:[%s5160_s5 + $0x38] sm:$0xff] }
  0x69   :  { %470 = vperm.xlu1 %3747, %v192_v39   ;;  %v3790_v17 = vld [vmem:[%s5156_s1 + $0xe4] ss:$8 sps:$4 sm:$0xff]   ;;  %3549 = vmatpush3.bf16.msra.mxu1 %v3835_v13  ;;  %v2327_v20 = vld [vmem:[%s5160_s5 + $0x30] sm:$0xff]  ;;  %v3792_v22 = vld [vmem:[%s5156_s1 + $0xe0] ss:$8 sps:$4 sm:$0xff]  }
  0x6a   :  { %465 = vperm.xlu0 %3746, %v191_v40   ;;  %3550 = vmatprep.subr.bf16.mxu1 %v3839_v18  ;;  %v2330_v21 = vld [vmem:[%s5160_s5 + $0x48] sm:$0xff]  ;;  %v2329_v23 = vld [vmem:[%s5160_s5 + $0x40] sm:$0xff]  ;;  %v3793_v24 = vld [vmem:[%s5156_s1 + $0xf4] ss:$8 sps:$4 sm:$0xff]  }
  0x6b   :  { %v2981_v25 = vld [vmem:[%s5161_s6 + $0x8] sm:$0xff]  ;;  %v2980_v26 = vld [vmem:[%s5161_s6] sm:$0xff]  ;;  %v2982_v27 = vld [vmem:[%s5161_s6 + $0x10] sm:$0xff] }
  0x6c   :  { %v3795_v28 = vld [vmem:[%s5156_s1 + $0xf0] ss:$8 sps:$4 sm:$0xff]   ;;  %v3796_v30 = vld [vmem:[%s5156_s1 + $0x104] ss:$8 sps:$4 sm:$0xff]   ;;  %v3798_v34 = vld [vmem:[%s5156_s1 + $0x100] ss:$8 sps:$4 sm:$0xff]  }
  0x6d   :  { %480 = vperm.xlu1 %3747, %v194_v41   ;;  %3551 = vmatpush3.bf16.msra.mxu1 %v3839_v18  ;;  %v2331_v29 = vld [vmem:[%s5160_s5 + $0x50] sm:$0xff]  ;;  %v2983_v31 = vld [vmem:[%s5161_s6 + $0x18] sm:$0xff]  ;;  %v2984_v33 = vld [vmem:[%s5161_s6 + $0x20] sm:$0xff] }
  0x6e   :  { %475 = vperm.xlu0 %3746, %v193_v43   ;;  %1095 = vmatmul.mubr.bf16.gmra.mrb[28].mxu0 %v3771_v42  ;;  %v2332_v32 = vld [vmem:[%s5160_s5 + $0x58] sm:$0xff]  ;;  %v2333_v35 = vld [vmem:[%s5160_s5 + $0x60] sm:$0xff]  ;;  %v2985_v37 = vld [vmem:[%s5161_s6 + $0x28] sm:$0xff] }
  0x6f   :  { %3243 = vmatprep.mubr.msk.bf16.mxu0 %vm897_vm0, %v3772_v44  ;;  %v3799_v36 = vld [vmem:[%s5156_s1 + $0x114] ss:$8 sps:$4 sm:$0xff]   ;;  %v2334_v38 = vld [vmem:[%s5160_s5 + $0x68] sm:$0xff]  ;;  %v3801_v40 = vld [vmem:[%s5156_s1 + $0x110] ss:$8 sps:$4 sm:$0xff]  }
  0x70   :  { %v2986_v39 = vld [vmem:[%s5161_s6 + $0x30] sm:$0xff]  ;;  %v3802_v42 = vld [vmem:[%s5156_s1 + $0x124] ss:$8 sps:$4 sm:$0xff]   ;;  %v2987_v43 = vld [vmem:[%s5161_s6 + $0x38] sm:$0xff] }
  0x71   :  { %490 = vperm.xlu1 %3747, %v196_v45   ;;  %v2335_v41 = vld [vmem:[%s5160_s5 + $0x70] sm:$0xff]  ;;  %v2336_v44 = vld [vmem:[%s5160_s5 + $0x78] sm:$0xff]  ;;  %v2989_v45 = vld [vmem:[%s5161_s6 + $0x48] sm:$0xff] }
  0x72   :  { %485 = vperm.xlu0 %3746, %v195_v46   ;;  %v3804_v46 = vld [vmem:[%s5156_s1 + $0x120] ss:$8 sps:$4 sm:$0xff]   ;;  %v3831_v18 = vld [vmem:[%s5156_s1 + $0x1b0] ss:$8 sps:$4 sm:$0xff]  }
  0x73   :  { %v3828_v13 = vld [vmem:[%s5156_s1 + $0x1a0] ss:$8 sps:$4 sm:$0xff]  }
  0x75   :  { %500 = vperm.xlu1 %3747, %v198_v47   ;;  %v2988_v47 = vld [vmem:[%s5161_s6 + $0x40] sm:$0xff] }
  0x76   :  { %495 = vperm.xlu0 %3746, %v197_v49   ;;  %1103 = vmatmul.mubr.bf16.gmra.mrb[32].mxu0 %v3774_v48  ;;  %v3805_v48 = vld [vmem:[%s5156_s1 + $0x134] ss:$8 sps:$4 sm:$0xff]  }
  0x77   :  { %3244 = vmatprep.mubr.msk.bf16.mxu0 %vm897_vm0, %v3775_v50 }
  0x79   :  { %510 = vperm.xlu1 %3747, %v200_v51   ;;  %v2991_v51 = vld [vmem:[%s5161_s6 + $0x58] sm:$0xff] }
  0x7a   :  { %505 = vperm.xlu0 %3746, %v199_v52   ;;  %v2990_v52 = vld [vmem:[%s5161_s6 + $0x50] sm:$0xff] }
  0x7d   :  { %520 = vperm.xlu1 %3747, %v202_v53  }
  0x7e   :  { %515 = vperm.xlu0 %3746, %v201_v55   ;;  %1111 = vmatmul.mubr.bf16.gmra.mrb[36].mxu0 %v3777_v54  ;;  %v2993_v54 = vld [vmem:[%s5161_s6 + $0x68] sm:$0xff]  ;;  %v3807_v55 = vld [vmem:[%s5156_s1 + $0x130] ss:$8 sps:$4 sm:$0xff]  }
  0x7f   :  { %3245 = vmatprep.mubr.msk.bf16.mxu0 %vm897_vm0, %v3778_v56 }
  0x81   :  { %530 = vperm.xlu1 %3747, %v204_v57   ;;  %v2992_v57 = vld [vmem:[%s5161_s6 + $0x60] sm:$0xff] }
  0x82   :  { %525 = vperm.xlu0 %3746, %v203_v58   ;;  %v3808_v58 = vld [vmem:[%s5156_s1 + $0x144] ss:$8 sps:$4 sm:$0xff]  }
  0x84   :  { %v4458_v50 = vpop.permute.xlu1 %225 }
  0x85   :  { %540 = vperm.xlu1 %3747, %v206_v59   ;;  %v216_v49 = vpop.permute.xlu0 %215  ;;  %v2995_v59 = vld [vmem:[%s5161_s6 + $0x78] sm:$0xff] }
  0x86   :  { %535 = vperm.xlu0 %3746, %v205_v61   ;;  %1119 = vmatmul.mubr.bf16.gmra.mrb[40].mxu0 %v3780_v60  ;;  %v2994_v60 = vld [vmem:[%s5161_s6 + $0x70] sm:$0xff] }
  0x87   :  { %3246 = vmatprep.mubr.msk.bf16.mxu0 %vm897_vm0, %v3781_v62 }
  0x88   :  { %v4473_v56 = vpop.permute.xlu1 %230 }
  0x89   :  { %550 = vperm.xlu1 %3747, %v208_v63   ;;  %v221_v53 = vpop.permute.xlu0 %220  ;;  %v3810_v63 = vld [vmem:[%s5156_s1 + $0x140] ss:$8 sps:$4 sm:$0xff]  }
  0x8a   :  { %545 = vperm.xlu0 %3746, %v207_v0   ;;  %v3130_v0 = vld [vmem:[#allocation2] sm:$0x1] }
  0x8c   :  { %v4490_v62 = vpop.permute.xlu1 %240 }
  0x8d   :  { %560 = vperm.xlu1 %3747, %v210_v1   ;;  %v4488_v61 = vpop.permute.xlu0 %235  ;;  %v3811_v1 = vld [vmem:[%s5156_s1 + $0x154] ss:$8 sps:$4 sm:$0xff]  }
  0x8e   :  { %555 = vperm.xlu0 %3746, %v209_v3   ;;  %1127 = vmatmul.mubr.bf16.gmra.mrb[44].mxu0 %v3783_v2  ;;  %v3813_v3 = vld [vmem:[%s5156_s1 + $0x150] ss:$8 sps:$4 sm:$0xff]  }
  0x8f   :  { %3247 = vmatprep.mubr.msk.bf16.mxu0 %vm897_vm0, %v3784_v4  ;;  %v3814_v4 = vld [vmem:[%s5156_s1 + $0x164] ss:$8 sps:$4 sm:$0xff]  }
  0x91   :  { %570 = vperm.xlu1 %3747, %v212_v5   ;;  %v4498_v2 = vpop.permute.xlu0 %245  ;;  %v3816_v5 = vld [vmem:[%s5156_s1 + $0x160] ss:$8 sps:$4 sm:$0xff]  }
  0x92   :  { %565 = vperm.xlu0 %3746, %v211_v6   ;;  %v3817_v6 = vld [vmem:[%s5156_s1 + $0x174] ss:$8 sps:$4 sm:$0xff]  }
  0x95   :  { %2344 = vperm.xlu1 %3747, %v2322_v7   ;;  %v3819_v7 = vld [vmem:[%s5156_s1 + $0x170] ss:$8 sps:$4 sm:$0xff]  }
  0x96   :  { %2339 = vperm.xlu0 %3746, %v2321_v9   ;;  %1135 = vmatmul.mubr.bf16.gmra.mrb[48].mxu0 %v3786_v8  ;;  %v3820_v8 = vld [vmem:[%s5156_s1 + $0x184] ss:$8 sps:$4 sm:$0xff]   ;;  %v3822_v9 = vld [vmem:[%s5156_s1 + $0x180] ss:$8 sps:$4 sm:$0xff]  }
  0x97   :  { %3248 = vmatprep.mubr.msk.bf16.mxu0 %vm897_vm0, %v3787_v10  ;;  %v3823_v10 = vld [vmem:[%s5156_s1 + $0x194] ss:$8 sps:$4 sm:$0xff]  }
  0x99   :  { %2354 = vperm.xlu1 %3747, %v2324_v11   ;;  %v3825_v11 = vld [vmem:[%s5156_s1 + $0x190] ss:$8 sps:$4 sm:$0xff]  }
  0x9a   :  { %2349 = vperm.xlu0 %3746, %v2323_v12   ;;  %v3826_v12 = vld [vmem:[%s5156_s1 + $0x1a4] ss:$8 sps:$4 sm:$0xff]  }
  0x9d   :  { %2364 = vperm.xlu1 %3747, %v2326_v14   ;;  %v3829_v14 = vld [vmem:[%s5156_s1 + $0x1b4] ss:$8 sps:$4 sm:$0xff]  }
  0x9e   :  { %2359 = vperm.xlu0 %3746, %v2325_v16   ;;  %1143 = vmatmul.mubr.bf16.gmra.mrb[52].mxu0 %v3789_v15 }
  0x9f   :  { %3249 = vmatprep.mubr.msk.bf16.mxu0 %vm897_vm0, %v3790_v17 }
  0xa1   :  { %2374 = vperm.xlu1 %3747, %v2328_v19  }
  0xa2   :  { %2369 = vperm.xlu0 %3746, %v2327_v20   ;;  %v3832_v20 = vld [vmem:[%s5156_s1 + $0x1c4] ss:$8 sps:$4 sm:$0xff]  }
  0xa5   :  { %2384 = vperm.xlu1 %3747, %v2330_v21  }
  0xa6   :  { %2379 = vperm.xlu0 %3746, %v2329_v23   ;;  %1151 = vmatmul.mubr.bf16.gmra.mrb[56].mxu0 %v3792_v22 }
  0xa7   :  { %3250 = vmatprep.mubr.msk.bf16.mxu0 %vm897_vm0, %v3793_v24 }
  0xa9   :  { %3003 = vperm.xlu1 %3747, %v2981_v25  }
  0xaa   :  { %2998 = vperm.xlu0 %3746, %v2980_v26  }
  0xad   :  { %3008 = vperm.xlu1 %3747, %v2982_v27  }
  0xae   :  { %2389 = vperm.xlu0 %3746, %v2331_v29   ;;  %1159 = vmatmul.mubr.bf16.gmra.mrb[60].mxu0 %v3795_v28 }
  0xaf   :  { %3251 = vmatprep.mubr.msk.bf16.mxu0 %vm897_vm0, %v3796_v30 }
  0xb1   :  { %3013 = vperm.xlu1 %3747, %v2983_v31  }
  0xb2   :  { %2394 = vperm.xlu0 %3746, %v2332_v32  }
  0xb5   :  { %3018 = vperm.xlu1 %3747, %v2984_v33   ;;  %v3834_v33 = vld [vmem:[%s5156_s1 + $0x1c0] ss:$8 sps:$4 sm:$0xff]  }
  0xb6   :  { %2399 = vperm.xlu0 %3746, %v2333_v35   ;;  %1167 = vmatmul.mubr.bf16.gmra.mrb[64].mxu0 %v3798_v34  ;;  %v3836_v35 = vld [vmem:[%s5156_s1 + $0x1d4] ss:$8 sps:$4 sm:$0xff]  }
  0xb7   :  { %3252 = vmatprep.mubr.msk.bf16.mxu0 %vm897_vm0, %v3799_v36 }
  0xb9   :  { %3023 = vperm.xlu1 %3747, %v2985_v37  }
  0xba   :  { %2404 = vperm.xlu0 %3746, %v2334_v38  }
  0xbd   :  { %3028 = vperm.xlu1 %3747, %v2986_v39  }
  0xbe   :  { %2409 = vperm.xlu0 %3746, %v2335_v41   ;;  %1175 = vmatmul.mubr.bf16.gmra.mrb[68].mxu0 %v3801_v40 }
  0xbf   :  { %3253 = vmatprep.mubr.msk.bf16.mxu0 %vm897_vm0, %v3802_v42 }
  0xc1   :  { %3033 = vperm.xlu1 %3747, %v2987_v43  }
  0xc2   :  { %2414 = vperm.xlu0 %3746, %v2336_v44  }
  0xc5   :  { %3043 = vperm.xlu1 %3747, %v2989_v45  }
  0xc6   :  { %3038 = vperm.xlu0 %3746, %v2988_v47   ;;  %1183 = vmatmul.mubr.bf16.gmra.mrb[72].mxu0 %v3804_v46 }
  0xc7   :  { %3254 = vmatprep.mubr.msk.bf16.mxu0 %vm897_vm0, %v3805_v48 }
  0xc9   :  { %3053 = vperm.xlu1 %3747, %v2991_v51  }
  0xca   :  { %3048 = vperm.xlu0 %3746, %v2990_v52   ;;  %v3838_v52 = vld [vmem:[%s5156_s1 + $0x1d0] ss:$8 sps:$4 sm:$0xff]  }
  0xcd   :  { %3063 = vperm.xlu1 %3747, %v2993_v54   ;;  %v3840_v54 = vld [vmem:[%s5156_s1 + $0x1e4] ss:$8 sps:$4 sm:$0xff]  }
  0xce   :  { %3058 = vperm.xlu0 %3746, %v2992_v57   ;;  %1191 = vmatmul.mubr.bf16.gmra.mrb[76].mxu0 %v3807_v55 }
  0xcf   :  { %3255 = vmatprep.mubr.msk.bf16.mxu0 %vm897_vm0, %v3808_v58 }
  0xd1   :  { %3073 = vperm.xlu1 %3747, %v2995_v59  }
  0xd2   :  { %3068 = vperm.xlu0 %3746, %v2994_v60  }
  0xd6   :  { %3133 = vperm.xlu0 %3746, %v3130_v0   ;;  %1199 = vmatmul.mubr.bf16.gmra.mrb[80].mxu0 %v3810_v63 }
  0xd7   :  { %3256 = vmatprep.mubr.msk.bf16.mxu0 %vm897_vm0, %v3811_v1 }
  0xde   :  { %1207 = vmatmul.mubr.bf16.gmra.mrb[84].mxu0 %v3813_v3 }
  0xdf   :  { %3257 = vmatprep.mubr.msk.bf16.mxu0 %vm897_vm0, %v3814_v4 }
  0xe6   :  { %1215 = vmatmul.mubr.bf16.gmra.mrb[88].mxu0 %v3816_v5 }
  0xe7   :  { %3258 = vmatprep.mubr.msk.bf16.mxu0 %vm897_vm0, %v3817_v6 }
  0xee   :  { %1223 = vmatmul.mubr.bf16.gmra.mrb[92].mxu0 %v3819_v7 }
  0xef   :  { %3259 = vmatprep.mubr.msk.bf16.mxu0 %vm897_vm0, %v3820_v8 }
  0xf6   :  { %1231 = vmatmul.mubr.bf16.gmra.mrb[96].mxu0 %v3822_v9  ;;  %v251_v9 = vpop.permute.xlu1 %250 }
  0xf7   :  { %3260 = vmatprep.mubr.msk.bf16.mxu0 %vm897_vm0, %v3823_v10 }
  0xfe   :  { %1239 = vmatmul.mubr.bf16.gmra.mrb[100].mxu0 %v3825_v11  ;;  %v3843_v11 = vld [vmem:[%s5156_s1 + $0x1f4] ss:$8 sps:$4 sm:$0xff]  }
  0xff   :  { %3261 = vmatprep.mubr.msk.bf16.mxu0 %vm897_vm0, %v3826_v12 }
 0x106   :  { %1247 = vmatmul.mubr.bf16.gmra.mrb[104].mxu0 %v3828_v13 }
 0x107   :  { %3262 = vmatprep.mubr.msk.bf16.mxu0 %vm897_vm0, %v3829_v14 }
 0x109   :  { %v1040_v15 = vpop.f32.mrb[0].mxu0 }
 0x10a   :  { %v1041_v16 = vadd.f32 %v1040_v15, %v216_v49  ;;  %v1042_v17 = vpop.f32.mrb[1].mxu0 }
 0x10b   :  { %v1043_v19 = vpop.f32.mrb[2].mxu0 }
 0x10c   :  { %v1327_v21 = vadd.f32 3.0, %v1041_v16  ;;  %v1044_v22 = vadd.f32 %v1043_v19, %v221_v53  ;;  %v1045_v23 = vpop.f32.mrb[3].mxu0 }
 0x10e   :  { %v1399_v24 = vmax.f32 %v1327_v21, 0.0  ;;  %v1328_v25 = vadd.f32 3.0, %v1044_v22  ;;  %1255 = vmatmul.mubr.bf16.gmra.mrb[108].mxu0 %v3831_v18 }
 0x10f   :  { %3263 = vmatprep.mubr.msk.bf16.mxu0 %vm897_vm0, %v3832_v20 }
 0x110   :  { %v1471_v26 = vmin.f32 %v1399_v24, 6.0  ;;  %v1400_v27 = vmax.f32 %v1328_v25, 0.0 }
 0x111   :  { %v1048_v28 = vpop.f32.mrb[4].mxu0 }
 0x112   :  { %v1543_v29 = vmul.f32 %v1471_v26, %v1041_v16  ;;  %v1472_v30 = vmin.f32 %v1400_v27, 6.0  ;;  %v1049_v31 = vadd.f32 %v1048_v28, %v4458_v50  ;;  %v1050_v32 = vpop.f32.mrb[5].mxu0  ;;  %v3845_v28 = vld [vmem:[%s5156_s1 + $0x1f0] ss:$8 sps:$4 sm:$0xff]  }
 0x113   :  { %v1051_v34 = vpop.f32.mrb[6].mxu0 }
 0x114   :  { %v1544_v36 = vmul.f32 %v1472_v30, %v1044_v22  ;;  %v1329_v37 = vadd.f32 3.0, %v1049_v31  ;;  %v1052_v38 = vadd.f32 %v1051_v34, %v4473_v56  ;;  %v1053_v39 = vpop.f32.mrb[7].mxu0  ;;  %v1615_v40 = vmul.f32 0.16666667, %v1543_v29  ;;  %v256_v22 = vpop.permute.xlu0 %255 }
 0x115   :  { %v261_v29 = vpop.permute.xlu1 %260 }
 0x116   :  { %v1616_v41 = vmul.f32 0.16666667, %v1544_v36  ;;  %v1401_v42 = vmax.f32 %v1329_v37, 0.0  ;;  %v1330_v43 = vadd.f32 3.0, %v1052_v38  ;;  %1263 = vmatmul.mubr.bf16.gmra.mrb[112].mxu0 %v3834_v33 }
 0x117   :  { %3264 = vmatprep.mubr.msk.bf16.mxu0 %vm897_vm0, %v3836_v35 }
 0x118   :  { %v1473_v44 = vmin.f32 %v1401_v42, 6.0  ;;  %v1402_v45 = vmax.f32 %v1330_v43, 0.0  ;;  %v1687_v46 = vpack.c.bf16 %v1616_v41, %v1615_v40  ;;  %v266_v43 = vpop.permute.xlu0 %265 }
 0x119   :  { %v1056_v47 = vpop.f32.mrb[8].mxu0 }
 0x11a   :  { %v1545_v48 = vmul.f32 %v1473_v44, %v1049_v31  ;;  %v1474_v49 = vmin.f32 %v1402_v45, 6.0  ;;  %v1057_v50 = vadd.f32 %v1056_v47, %v4488_v61  ;;  %v1058_v51 = vpop.f32.mrb[9].mxu0  ;;  %3552 = vmatprep.mubr.msk.bf16.mxu1 %vm1739_vm1, %v1687_v46  ;;  %v3846_v31 = vld [vmem:[%s5156_s1 + $0x204] ss:$8 sps:$4 sm:$0xff]  }
 0x11b   :  { %v1059_v53 = vpop.f32.mrb[10].mxu0 }
 0x11c   :  { %v1546_v55 = vmul.f32 %v1474_v49, %v1052_v38  ;;  %v1331_v56 = vadd.f32 3.0, %v1057_v50  ;;  %v1060_v57 = vadd.f32 %v1059_v53, %v4490_v62  ;;  %v1061_v58 = vpop.f32.mrb[11].mxu0  ;;  %v1617_v59 = vmul.f32 0.16666667, %v1545_v48  ;;  %v3842_v62 = vld [vmem:[%s5156_s1 + $0x1e0] ss:$8 sps:$4 sm:$0xff]  }
 0x11d   :  { %v3848_v49 = vld [vmem:[%s5156_s1 + $0x200] ss:$8 sps:$4 sm:$0xff]  }
 0x11e   :  { %v1618_v60 = vmul.f32 0.16666667, %v1546_v55  ;;  %v1403_v61 = vmax.f32 %v1331_v56, 0.0  ;;  %v1332_v63 = vadd.f32 3.0, %v1060_v57  ;;  %1271 = vmatmul.mubr.bf16.gmra.mrb[116].mxu0 %v3838_v52  ;;  %v3849_v52 = vld [vmem:[%s5156_s1 + $0x214] ss:$8 sps:$4 sm:$0xff]  }
 0x11f   :  { %3265 = vmatprep.mubr.msk.bf16.mxu0 %vm897_vm0, %v3840_v54 }
 0x120   :  { %v1688_v0 = vpack.c.bf16 %v1618_v60, %v1617_v59  ;;  %v1475_v1 = vmin.f32 %v1403_v61, 6.0  ;;  %v1404_v3 = vmax.f32 %v1332_v63, 0.0 }
 0x121   :  { %v1064_v4 = vpop.f32.mrb[12].mxu0 }
 0x122   :  { %v1547_v5 = vmul.f32 %v1475_v1, %v1057_v50  ;;  %v1476_v6 = vmin.f32 %v1404_v3, 6.0  ;;  %v1065_v7 = vadd.f32 %v1064_v4, %v4498_v2  ;;  %v1066_v8 = vpop.f32.mrb[13].mxu0  ;;  %3553 = vmatmul.mubr.msk.bf16.vlgmr.msra.gmra.mrb[0].mxu1 %vm1739_vm1, %v1688_v0  ;;  %v271_v50 = vpop.permute.xlu1 %270 }
 0x123   :  { %v1067_v10 = vpop.f32.mrb[14].mxu0  ;;  %v276_v1 = vpop.permute.xlu0 %275  ;;  %v3851_v8 = vld [vmem:[%s5156_s1 + $0x210] ss:$8 sps:$4 sm:$0xff]  }
 0x124   :  { %v1548_v12 = vmul.f32 %v1476_v6, %v1060_v57  ;;  %v1333_v13 = vadd.f32 3.0, %v1065_v7  ;;  %v1068_v14 = vadd.f32 %v1067_v10, %v251_v9  ;;  %v1069_v15 = vpop.f32.mrb[15].mxu0  ;;  %v1619_v16 = vmul.f32 0.16666667, %v1547_v5  ;;  %v3852_v10 = vld [vmem:[%s5156_s1 + $0x224] ss:$8 sps:$4 sm:$0xff]  }
 0x126   :  { %v1620_v17 = vmul.f32 0.16666667, %v1548_v12  ;;  %v1405_v2 = vmax.f32 %v1333_v13, 0.0  ;;  %v1334_v18 = vadd.f32 3.0, %v1068_v14  ;;  %1279 = vmatmul.mubr.bf16.gmra.mrb[120].mxu0 %v3842_v62  ;;  %v281_v62 = vpop.permute.xlu1 %280 }
 0x127   :  { %3266 = vmatprep.mubr.msk.bf16.mxu0 %vm897_vm0, %v3843_v11 }
 0x128   :  { %v1689_v19 = vpack.c.bf16 %v1620_v17, %v1619_v16  ;;  %v1477_v20 = vmin.f32 %v1405_v2, 6.0  ;;  %v1406_v21 = vmax.f32 %v1334_v18, 0.0 }
 0x129   :  { %v1072_v23 = vpop.f32.mrb[16].mxu0 }
 0x12a   :  { %v1549_v24 = vmul.f32 %v1477_v20, %v1065_v7  ;;  %v1478_v25 = vmin.f32 %v1406_v21, 6.0  ;;  %v1073_v26 = vadd.f32 %v1072_v23, %v256_v22  ;;  %v1074_v27 = vpop.f32.mrb[17].mxu0  ;;  %3556 = vmatprep.mubr.msk.bf16.mxu1 %vm1739_vm1, %v1689_v19  ;;  %v286_v21 = vpop.permute.xlu0 %285 }
 0x12b   :  { %v1075_v30 = vpop.f32.mrb[18].mxu0  ;;  %v3854_v27 = vld [vmem:[%s5156_s1 + $0x220] ss:$8 sps:$4 sm:$0xff]  }
 0x12c   :  { %v1550_v32 = vmul.f32 %v1478_v25, %v1068_v14  ;;  %v1335_v33 = vadd.f32 3.0, %v1073_v26  ;;  %v1076_v34 = vadd.f32 %v1075_v30, %v261_v29  ;;  %v1077_v35 = vpop.f32.mrb[19].mxu0  ;;  %v1621_v36 = vmul.f32 0.16666667, %v1549_v24  ;;  %v3855_v30 = vld [vmem:[%s5156_s1 + $0x234] ss:$8 sps:$4 sm:$0xff]  }
 0x12e   :  { %v1622_v37 = vmul.f32 0.16666667, %v1550_v32  ;;  %v1407_v38 = vmax.f32 %v1335_v33, 0.0  ;;  %v1336_v39 = vadd.f32 3.0, %v1076_v34  ;;  %1287 = vmatmul.mubr.bf16.gmra.mrb[124].mxu0 %v3845_v28  ;;  %v291_v28 = vpop.permute.xlu1 %290 }
 0x12f   :  { %3267 = vmatprep.mubr.msk.bf16.mxu0 %vm897_vm0, %v3846_v31 }
 0x130   :  { %v1690_v40 = vpack.c.bf16 %v1622_v37, %v1621_v36  ;;  %v1479_v41 = vmin.f32 %v1407_v38, 6.0  ;;  %v1408_v42 = vmax.f32 %v1336_v39, 0.0 }
 0x131   :  { %v1080_v44 = vpop.f32.mrb[20].mxu0 }
 0x132   :  { %v1551_v45 = vmul.f32 %v1479_v41, %v1073_v26  ;;  %v1480_v46 = vmin.f32 %v1408_v42, 6.0  ;;  %v1081_v47 = vadd.f32 %v1080_v44, %v266_v43  ;;  %v1082_v48 = vpop.f32.mrb[21].mxu0  ;;  %3557 = vmatmul.mubr.msk.bf16.gmra.mrb[4].mxu1 %vm1739_vm1, %v1690_v40  ;;  %v296_v42 = vpop.permute.xlu0 %295 }
 0x133   :  { %v1083_v51 = vpop.f32.mrb[22].mxu0  ;;  %v3857_v48 = vld [vmem:[%s5156_s1 + $0x230] ss:$8 sps:$4 sm:$0xff]  }
 0x134   :  { %v1552_v53 = vmul.f32 %v1480_v46, %v1076_v34  ;;  %v1337_v54 = vadd.f32 3.0, %v1081_v47  ;;  %v1084_v55 = vadd.f32 %v1083_v51, %v271_v50  ;;  %v1085_v56 = vpop.f32.mrb[23].mxu0  ;;  %v1623_v57 = vmul.f32 0.16666667, %v1551_v45 }
 0x136   :  { %v1624_v58 = vmul.f32 0.16666667, %v1552_v53  ;;  %v1409_v59 = vmax.f32 %v1337_v54, 0.0  ;;  %v1338_v60 = vadd.f32 3.0, %v1084_v55  ;;  %1295 = vmatmul.mubr.bf16.gmra.mrb[128].mxu0 %v3848_v49  ;;  %v301_v49 = vpop.permute.xlu1 %300 }
 0x137   :  { %3268 = vmatprep.mubr.msk.bf16.mxu0 %vm897_vm0, %v3849_v52 }
 0x138   :  { %v1691_v61 = vpack.c.bf16 %v1624_v58, %v1623_v57  ;;  %v1481_v63 = vmin.f32 %v1409_v59, 6.0  ;;  %v1410_v0 = vmax.f32 %v1338_v60, 0.0 }
 0x139   :  { %v1088_v3 = vpop.f32.mrb[24].mxu0 }
 0x13a   :  { %v1553_v4 = vmul.f32 %v1481_v63, %v1081_v47  ;;  %v1482_v5 = vmin.f32 %v1410_v0, 6.0  ;;  %v1089_v6 = vadd.f32 %v1088_v3, %v276_v1  ;;  %v1090_v7 = vpop.f32.mrb[25].mxu0  ;;  %3560 = vmatprep.mubr.msk.bf16.mxu1 %vm1739_vm1, %v1691_v61  ;;  %v306_v63 = vpop.permute.xlu0 %305 }
 0x13b   :  { %v1091_v9 = vpop.f32.mrb[26].mxu0 }
 0x13c   :  { %v1554_v11 = vmul.f32 %v1482_v5, %v1084_v55  ;;  %v1339_v12 = vadd.f32 3.0, %v1089_v6  ;;  %v1092_v13 = vadd.f32 %v1091_v9, %v281_v62  ;;  %v1093_v14 = vpop.f32.mrb[27].mxu0  ;;  %v1625_v15 = vmul.f32 0.16666667, %v1553_v4 }
 0x13e   :  { %v1626_v16 = vmul.f32 0.16666667, %v1554_v11  ;;  %v1411_v17 = vmax.f32 %v1339_v12, 0.0  ;;  %v1340_v2 = vadd.f32 3.0, %v1092_v13  ;;  %1303 = vmatmul.mubr.bf16.gmra.mrb[132].mxu0 %v3851_v8 }
 0x13f   :  { %3269 = vmatprep.mubr.msk.bf16.mxu0 %vm897_vm0, %v3852_v10 }
 0x140   :  { %v1692_v18 = vpack.c.bf16 %v1626_v16, %v1625_v15  ;;  %v1483_v19 = vmin.f32 %v1411_v17, 6.0  ;;  %v1412_v20 = vmax.f32 %v1340_v2, 0.0  ;;  %v316_v2 = vpop.permute.xlu0 %315 }
 0x141   :  { %v1096_v22 = vpop.f32.mrb[28].mxu0 }
 0x142   :  { %v1555_v23 = vmul.f32 %v1483_v19, %v1089_v6  ;;  %v1484_v24 = vmin.f32 %v1412_v20, 6.0  ;;  %v1097_v25 = vadd.f32 %v1096_v22, %v286_v21  ;;  %v1098_v26 = vpop.f32.mrb[29].mxu0  ;;  %3561 = vmatmul.mubr.msk.bf16.gmra.mrb[8].mxu1 %vm1739_vm1, %v1692_v18  ;;  %v311_v6 = vpop.permute.xlu1 %310 }
 0x143   :  { %v1099_v29 = vpop.f32.mrb[30].mxu0 }
 0x144   :  { %v1556_v31 = vmul.f32 %v1484_v24, %v1092_v13  ;;  %v1341_v32 = vadd.f32 3.0, %v1097_v25  ;;  %v1100_v33 = vadd.f32 %v1099_v29, %v291_v28  ;;  %v1101_v34 = vpop.f32.mrb[31].mxu0  ;;  %v1627_v35 = vmul.f32 0.16666667, %v1555_v23 }
 0x146   :  { %v1628_v36 = vmul.f32 0.16666667, %v1556_v31  ;;  %v1413_v37 = vmax.f32 %v1341_v32, 0.0  ;;  %v1342_v38 = vadd.f32 3.0, %v1100_v33  ;;  %1311 = vmatmul.mubr.bf16.gmra.mrb[136].mxu0 %v3854_v27  ;;  %v321_v23 = vpop.permute.xlu1 %320 }
 0x147   :  { %3270 = vmatprep.mubr.msk.bf16.mxu0 %vm897_vm0, %v3855_v30 }
 0x148   :  { %v1693_v39 = vpack.c.bf16 %v1628_v36, %v1627_v35  ;;  %v1485_v40 = vmin.f32 %v1413_v37, 6.0  ;;  %v1414_v41 = vmax.f32 %v1342_v38, 0.0  ;;  %v326_v36 = vpop.permute.xlu0 %325 }
 0x149   :  { %v1104_v43 = vpop.f32.mrb[32].mxu0 }
 0x14a   :  { %v1557_v44 = vmul.f32 %v1485_v40, %v1097_v25  ;;  %v1486_v45 = vmin.f32 %v1414_v41, 6.0  ;;  %v1105_v46 = vadd.f32 %v1104_v43, %v296_v42  ;;  %v1106_v47 = vpop.f32.mrb[33].mxu0  ;;  %3564 = vmatprep.mubr.msk.bf16.mxu1 %vm1739_vm1, %v1693_v39  ;;  %v331_v42 = vpop.permute.xlu1 %330 }
 0x14b   :  { %v1107_v50 = vpop.f32.mrb[34].mxu0 }
 0x14c   :  { %v1558_v51 = vmul.f32 %v1486_v45, %v1100_v33  ;;  %v1343_v52 = vadd.f32 3.0, %v1105_v46  ;;  %v1108_v53 = vadd.f32 %v1107_v50, %v301_v49  ;;  %v1109_v54 = vpop.f32.mrb[35].mxu0  ;;  %v1629_v55 = vmul.f32 0.16666667, %v1557_v44 }
 0x14e   :  { %v1630_v56 = vmul.f32 0.16666667, %v1558_v51  ;;  %v1415_v57 = vmax.f32 %v1343_v52, 0.0  ;;  %v1344_v58 = vadd.f32 3.0, %v1108_v53  ;;  %1319 = vmatmul.mubr.bf16.gmra.mrb[140].mxu0 %v3857_v48 }
 0x150   :  { %v1694_v59 = vpack.c.bf16 %v1630_v56, %v1629_v55  ;;  %v1487_v60 = vmin.f32 %v1415_v57, 6.0  ;;  %v1416_v61 = vmax.f32 %v1344_v58, 0.0  ;;  %v336_v55 = vpop.permute.xlu0 %335 }
 0x151   :  { %v1112_v0 = vpop.f32.mrb[36].mxu0 }
 0x152   :  { %v1559_v1 = vmul.f32 %v1487_v60, %v1105_v46  ;;  %v1488_v3 = vmin.f32 %v1416_v61, 6.0  ;;  %v1113_v4 = vadd.f32 %v1112_v0, %v306_v63  ;;  %v1114_v5 = vpop.f32.mrb[37].mxu0  ;;  %3565 = vmatmul.mubr.msk.bf16.gmra.mrb[12].mxu1 %vm1739_vm1, %v1694_v59  ;;  %v341_v61 = vpop.permute.xlu1 %340 }
 0x153   :  { %v1115_v7 = vpop.f32.mrb[38].mxu0 }
 0x154   :  { %v1560_v8 = vmul.f32 %v1488_v3, %v1108_v53  ;;  %v1345_v62 = vadd.f32 3.0, %v1113_v4  ;;  %v1116_v9 = vadd.f32 %v1115_v7, %v311_v6  ;;  %v1117_v10 = vpop.f32.mrb[39].mxu0  ;;  %v1631_v11 = vmul.f32 0.16666667, %v1559_v1 }
 0x156   :  { %v1632_v12 = vmul.f32 0.16666667, %v1560_v8  ;;  %v1417_v13 = vmax.f32 %v1345_v62, 0.0  ;;  %v1346_v14 = vadd.f32 3.0, %v1116_v9 }
 0x158   :  { %v1695_v15 = vpack.c.bf16 %v1632_v12, %v1631_v11  ;;  %v1489_v16 = vmin.f32 %v1417_v13, 6.0  ;;  %v1418_v17 = vmax.f32 %v1346_v14, 0.0  ;;  %v346_v11 = vpop.permute.xlu0 %345 }
 0x159   :  { %v1120_v18 = vpop.f32.mrb[40].mxu0 }
 0x15a   :  { %v1561_v19 = vmul.f32 %v1489_v16, %v1113_v4  ;;  %v1490_v20 = vmin.f32 %v1418_v17, 6.0  ;;  %v1121_v21 = vadd.f32 %v1120_v18, %v316_v2  ;;  %v1122_v22 = vpop.f32.mrb[41].mxu0  ;;  %3568 = vmatprep.mubr.msk.bf16.mxu1 %vm1739_vm1, %v1695_v15  ;;  %v351_v17 = vpop.permute.xlu1 %350 }
 0x15b   :  { %v1123_v24 = vpop.f32.mrb[42].mxu0 }
 0x15c   :  { %v1562_v25 = vmul.f32 %v1490_v20, %v1116_v9  ;;  %v1347_v26 = vadd.f32 3.0, %v1121_v21  ;;  %v1124_v27 = vadd.f32 %v1123_v24, %v321_v23  ;;  %v1125_v28 = vpop.f32.mrb[43].mxu0  ;;  %v1633_v29 = vmul.f32 0.16666667, %v1561_v19 }
 0x15e   :  { %v1634_v30 = vmul.f32 0.16666667, %v1562_v25  ;;  %v1419_v31 = vmax.f32 %v1347_v26, 0.0  ;;  %v1348_v32 = vadd.f32 3.0, %v1124_v27 }
 0x160   :  { %v1696_v33 = vpack.c.bf16 %v1634_v30, %v1633_v29  ;;  %v1491_v34 = vmin.f32 %v1419_v31, 6.0  ;;  %v1420_v35 = vmax.f32 %v1348_v32, 0.0  ;;  %v356_v29 = vpop.permute.xlu0 %355 }
 0x161   :  { %v1128_v37 = vpop.f32.mrb[44].mxu0 }
 0x162   :  { %v1563_v38 = vmul.f32 %v1491_v34, %v1121_v21  ;;  %v1492_v39 = vmin.f32 %v1420_v35, 6.0  ;;  %v1129_v40 = vadd.f32 %v1128_v37, %v326_v36  ;;  %v1130_v41 = vpop.f32.mrb[45].mxu0  ;;  %3569 = vmatmul.mubr.msk.bf16.gmra.mrb[16].mxu1 %vm1739_vm1, %v1696_v33  ;;  %v361_v35 = vpop.permute.xlu1 %360 }
 0x163   :  { %v1131_v43 = vpop.f32.mrb[46].mxu0 }
 0x164   :  { %v1564_v44 = vmul.f32 %v1492_v39, %v1124_v27  ;;  %v1349_v45 = vadd.f32 3.0, %v1129_v40  ;;  %v1132_v46 = vadd.f32 %v1131_v43, %v331_v42  ;;  %v1133_v47 = vpop.f32.mrb[47].mxu0  ;;  %v1635_v48 = vmul.f32 0.16666667, %v1563_v38 }
 0x166   :  { %v1636_v49 = vmul.f32 0.16666667, %v1564_v44  ;;  %v1421_v50 = vmax.f32 %v1349_v45, 0.0  ;;  %v1350_v51 = vadd.f32 3.0, %v1132_v46 }
 0x168   :  { %v1697_v52 = vpack.c.bf16 %v1636_v49, %v1635_v48  ;;  %v1493_v53 = vmin.f32 %v1421_v50, 6.0  ;;  %v1422_v54 = vmax.f32 %v1350_v51, 0.0  ;;  %v366_v48 = vpop.permute.xlu0 %365 }
 0x169   :  { %v1136_v56 = vpop.f32.mrb[48].mxu0 }
 0x16a   :  { %v1565_v57 = vmul.f32 %v1493_v53, %v1129_v40  ;;  %v1494_v58 = vmin.f32 %v1422_v54, 6.0  ;;  %v1137_v59 = vadd.f32 %v1136_v56, %v336_v55  ;;  %v1138_v60 = vpop.f32.mrb[49].mxu0  ;;  %3572 = vmatprep.mubr.msk.bf16.mxu1 %vm1739_vm1, %v1697_v52  ;;  %v371_v54 = vpop.permute.xlu1 %370 }
 0x16b   :  { %v1139_v63 = vpop.f32.mrb[50].mxu0 }
 0x16c   :  { %v1566_v0 = vmul.f32 %v1494_v58, %v1132_v46  ;;  %v1351_v1 = vadd.f32 3.0, %v1137_v59  ;;  %v1140_v3 = vadd.f32 %v1139_v63, %v341_v61  ;;  %v1141_v4 = vpop.f32.mrb[51].mxu0  ;;  %v1637_v5 = vmul.f32 0.16666667, %v1565_v57 }
 0x16e   :  { %v1638_v6 = vmul.f32 0.16666667, %v1566_v0  ;;  %v1423_v7 = vmax.f32 %v1351_v1, 0.0  ;;  %v1352_v8 = vadd.f32 3.0, %v1140_v3 }
 0x170   :  { %v1698_v62 = vpack.c.bf16 %v1638_v6, %v1637_v5  ;;  %v1495_v9 = vmin.f32 %v1423_v7, 6.0  ;;  %v1424_v10 = vmax.f32 %v1352_v8, 0.0  ;;  %v376_v5 = vpop.permute.xlu0 %375 }
 0x171   :  { %v1144_v12 = vpop.f32.mrb[52].mxu0 }
 0x172   :  { %v1567_v13 = vmul.f32 %v1495_v9, %v1137_v59  ;;  %v1496_v14 = vmin.f32 %v1424_v10, 6.0  ;;  %v1145_v15 = vadd.f32 %v1144_v12, %v346_v11  ;;  %v1146_v16 = vpop.f32.mrb[53].mxu0  ;;  %3573 = vmatmul.mubr.msk.bf16.gmra.mrb[20].mxu1 %vm1739_vm1, %v1698_v62  ;;  %v381_v10 = vpop.permute.xlu1 %380 }
 0x173   :  { %v1147_v2 = vpop.f32.mrb[54].mxu0 }
 0x174   :  { %v1568_v18 = vmul.f32 %v1496_v14, %v1140_v3  ;;  %v1353_v19 = vadd.f32 3.0, %v1145_v15  ;;  %v1148_v20 = vadd.f32 %v1147_v2, %v351_v17  ;;  %v1149_v21 = vpop.f32.mrb[55].mxu0  ;;  %v1639_v22 = vmul.f32 0.16666667, %v1567_v13 }
 0x176   :  { %v1640_v23 = vmul.f32 0.16666667, %v1568_v18  ;;  %v1425_v24 = vmax.f32 %v1353_v19, 0.0  ;;  %v1354_v25 = vadd.f32 3.0, %v1148_v20 }
 0x178   :  { %v1699_v26 = vpack.c.bf16 %v1640_v23, %v1639_v22  ;;  %v1497_v27 = vmin.f32 %v1425_v24, 6.0  ;;  %v1426_v28 = vmax.f32 %v1354_v25, 0.0  ;;  %v386_v22 = vpop.permute.xlu0 %385 }
 0x179   :  { %v1152_v30 = vpop.f32.mrb[56].mxu0 }
 0x17a   :  { %v1569_v31 = vmul.f32 %v1497_v27, %v1145_v15  ;;  %v1498_v32 = vmin.f32 %v1426_v28, 6.0  ;;  %v1153_v33 = vadd.f32 %v1152_v30, %v356_v29  ;;  %v1154_v34 = vpop.f32.mrb[57].mxu0  ;;  %3576 = vmatprep.mubr.msk.bf16.mxu1 %vm1739_vm1, %v1699_v26  ;;  %v391_v28 = vpop.permute.xlu1 %390 }
 0x17b   :  { %v1155_v36 = vpop.f32.mrb[58].mxu0 }
 0x17c   :  { %v1570_v37 = vmul.f32 %v1498_v32, %v1148_v20  ;;  %v1355_v38 = vadd.f32 3.0, %v1153_v33  ;;  %v1156_v39 = vadd.f32 %v1155_v36, %v361_v35  ;;  %v1157_v40 = vpop.f32.mrb[59].mxu0  ;;  %v1641_v41 = vmul.f32 0.16666667, %v1569_v31 }
 0x17e   :  { %v1642_v42 = vmul.f32 0.16666667, %v1570_v37  ;;  %v1427_v43 = vmax.f32 %v1355_v38, 0.0  ;;  %v1356_v44 = vadd.f32 3.0, %v1156_v39 }
 0x180   :  { %v1700_v45 = vpack.c.bf16 %v1642_v42, %v1641_v41  ;;  %v1499_v46 = vmin.f32 %v1427_v43, 6.0  ;;  %v1428_v47 = vmax.f32 %v1356_v44, 0.0  ;;  %v396_v41 = vpop.permute.xlu0 %395 }
 0x181   :  { %v1160_v49 = vpop.f32.mrb[60].mxu0 }
 0x182   :  { %v1571_v50 = vmul.f32 %v1499_v46, %v1153_v33  ;;  %v1500_v51 = vmin.f32 %v1428_v47, 6.0  ;;  %v1161_v52 = vadd.f32 %v1160_v49, %v366_v48  ;;  %v1162_v53 = vpop.f32.mrb[61].mxu0  ;;  %3577 = vmatmul.mubr.msk.bf16.gmra.mrb[24].mxu1 %vm1739_vm1, %v1700_v45  ;;  %v401_v47 = vpop.permute.xlu1 %400 }
 0x183   :  { %v1163_v55 = vpop.f32.mrb[62].mxu0 }
 0x184   :  { %v1572_v56 = vmul.f32 %v1500_v51, %v1156_v39  ;;  %v1357_v57 = vadd.f32 3.0, %v1161_v52  ;;  %v1164_v58 = vadd.f32 %v1163_v55, %v371_v54  ;;  %v1165_v59 = vpop.f32.mrb[63].mxu0  ;;  %v1643_v60 = vmul.f32 0.16666667, %v1571_v50 }
 0x186   :  { %v1644_v61 = vmul.f32 0.16666667, %v1572_v56  ;;  %v1429_v63 = vmax.f32 %v1357_v57, 0.0  ;;  %v1358_v0 = vadd.f32 3.0, %v1164_v58 }
 0x188   :  { %v1701_v1 = vpack.c.bf16 %v1644_v61, %v1643_v60  ;;  %v1501_v3 = vmin.f32 %v1429_v63, 6.0  ;;  %v1430_v4 = vmax.f32 %v1358_v0, 0.0  ;;  %v406_v60 = vpop.permute.xlu0 %405 }
 0x189   :  { %v1168_v6 = vpop.f32.mrb[64].mxu0 }
 0x18a   :  { %v1573_v7 = vmul.f32 %v1501_v3, %v1161_v52  ;;  %v1502_v8 = vmin.f32 %v1430_v4, 6.0  ;;  %v1169_v62 = vadd.f32 %v1168_v6, %v376_v5  ;;  %v1170_v9 = vpop.f32.mrb[65].mxu0  ;;  %3580 = vmatprep.mubr.msk.bf16.mxu1 %vm1739_vm1, %v1701_v1  ;;  %v411_v4 = vpop.permute.xlu1 %410 }
 0x18b   :  { %v1171_v11 = vpop.f32.mrb[66].mxu0 }
 0x18c   :  { %v1574_v12 = vmul.f32 %v1502_v8, %v1164_v58  ;;  %v1359_v13 = vadd.f32 3.0, %v1169_v62  ;;  %v1172_v14 = vadd.f32 %v1171_v11, %v381_v10  ;;  %v1173_v15 = vpop.f32.mrb[67].mxu0  ;;  %v1645_v16 = vmul.f32 0.16666667, %v1573_v7 }
 0x18e   :  { %v1646_v17 = vmul.f32 0.16666667, %v1574_v12  ;;  %v1431_v2 = vmax.f32 %v1359_v13, 0.0  ;;  %v1360_v18 = vadd.f32 3.0, %v1172_v14 }
 0x190   :  { %v1702_v19 = vpack.c.bf16 %v1646_v17, %v1645_v16  ;;  %v1503_v20 = vmin.f32 %v1431_v2, 6.0  ;;  %v1432_v21 = vmax.f32 %v1360_v18, 0.0  ;;  %v416_v16 = vpop.permute.xlu0 %415 }
 0x191   :  { %v1176_v23 = vpop.f32.mrb[68].mxu0 }
 0x192   :  { %v1575_v24 = vmul.f32 %v1503_v20, %v1169_v62  ;;  %v1504_v25 = vmin.f32 %v1432_v21, 6.0  ;;  %v1177_v26 = vadd.f32 %v1176_v23, %v386_v22  ;;  %v1178_v27 = vpop.f32.mrb[69].mxu0  ;;  %3581 = vmatmul.mubr.msk.bf16.gmra.mrb[28].mxu1 %vm1739_vm1, %v1702_v19  ;;  %v421_v21 = vpop.permute.xlu1 %420 }
 0x193   :  { %v1179_v29 = vpop.f32.mrb[70].mxu0 }
 0x194   :  { %v1576_v30 = vmul.f32 %v1504_v25, %v1172_v14  ;;  %v1361_v31 = vadd.f32 3.0, %v1177_v26  ;;  %v1180_v32 = vadd.f32 %v1179_v29, %v391_v28  ;;  %v1181_v33 = vpop.f32.mrb[71].mxu0  ;;  %v1647_v34 = vmul.f32 0.16666667, %v1575_v24 }
 0x196   :  { %v1648_v35 = vmul.f32 0.16666667, %v1576_v30  ;;  %v1433_v36 = vmax.f32 %v1361_v31, 0.0  ;;  %v1362_v37 = vadd.f32 3.0, %v1180_v32 }
 0x198   :  { %v1703_v38 = vpack.c.bf16 %v1648_v35, %v1647_v34  ;;  %v1505_v39 = vmin.f32 %v1433_v36, 6.0  ;;  %v1434_v40 = vmax.f32 %v1362_v37, 0.0  ;;  %v426_v34 = vpop.permute.xlu0 %425 }
 0x199   :  { %v1184_v42 = vpop.f32.mrb[72].mxu0 }
 0x19a   :  { %v1577_v43 = vmul.f32 %v1505_v39, %v1177_v26  ;;  %v1506_v44 = vmin.f32 %v1434_v40, 6.0  ;;  %v1185_v45 = vadd.f32 %v1184_v42, %v396_v41  ;;  %v1186_v46 = vpop.f32.mrb[73].mxu0  ;;  %3584 = vmatprep.mubr.msk.bf16.mxu1 %vm1739_vm1, %v1703_v38  ;;  %v431_v40 = vpop.permute.xlu1 %430 }
 0x19b   :  { %v1187_v48 = vpop.f32.mrb[74].mxu0 }
 0x19c   :  { %v1578_v49 = vmul.f32 %v1506_v44, %v1180_v32  ;;  %v1363_v50 = vadd.f32 3.0, %v1185_v45  ;;  %v1188_v51 = vadd.f32 %v1187_v48, %v401_v47  ;;  %v1189_v52 = vpop.f32.mrb[75].mxu0  ;;  %v1649_v53 = vmul.f32 0.16666667, %v1577_v43 }
 0x19e   :  { %v1650_v54 = vmul.f32 0.16666667, %v1578_v49  ;;  %v1435_v55 = vmax.f32 %v1363_v50, 0.0  ;;  %v1364_v56 = vadd.f32 3.0, %v1188_v51 }
 0x1a0   :  { %v1704_v57 = vpack.c.bf16 %v1650_v54, %v1649_v53  ;;  %v1507_v58 = vmin.f32 %v1435_v55, 6.0  ;;  %v1436_v59 = vmax.f32 %v1364_v56, 0.0  ;;  %v436_v53 = vpop.permute.xlu0 %435 }
 0x1a1   :  { %v1192_v61 = vpop.f32.mrb[76].mxu0 }
 0x1a2   :  { %v1579_v63 = vmul.f32 %v1507_v58, %v1185_v45  ;;  %v1508_v0 = vmin.f32 %v1436_v59, 6.0  ;;  %v1193_v1 = vadd.f32 %v1192_v61, %v406_v60  ;;  %v1194_v3 = vpop.f32.mrb[77].mxu0  ;;  %3585 = vmatmul.mubr.msk.bf16.gmra.mrb[32].mxu1 %vm1739_vm1, %v1704_v57  ;;  %v441_v59 = vpop.permute.xlu1 %440 }
 0x1a3   :  { %v1195_v5 = vpop.f32.mrb[78].mxu0 }
 0x1a4   :  { %v1580_v6 = vmul.f32 %v1508_v0, %v1188_v51  ;;  %v1365_v7 = vadd.f32 3.0, %v1193_v1  ;;  %v1196_v8 = vadd.f32 %v1195_v5, %v411_v4  ;;  %v1197_v62 = vpop.f32.mrb[79].mxu0  ;;  %v1651_v9 = vmul.f32 0.16666667, %v1579_v63 }
 0x1a6   :  { %v1652_v10 = vmul.f32 0.16666667, %v1580_v6  ;;  %v1437_v11 = vmax.f32 %v1365_v7, 0.0  ;;  %v1366_v12 = vadd.f32 3.0, %v1196_v8 }
 0x1a8   :  { %v1705_v13 = vpack.c.bf16 %v1652_v10, %v1651_v9  ;;  %v1509_v14 = vmin.f32 %v1437_v11, 6.0  ;;  %v1438_v15 = vmax.f32 %v1366_v12, 0.0  ;;  %v446_v9 = vpop.permute.xlu0 %445 }
 0x1a9   :  { %v1200_v17 = vpop.f32.mrb[80].mxu0 }
 0x1aa   :  { %v1581_v2 = vmul.f32 %v1509_v14, %v1193_v1  ;;  %v1510_v18 = vmin.f32 %v1438_v15, 6.0  ;;  %v1201_v19 = vadd.f32 %v1200_v17, %v416_v16  ;;  %v1202_v20 = vpop.f32.mrb[81].mxu0  ;;  %3588 = vmatprep.mubr.msk.bf16.mxu1 %vm1739_vm1, %v1705_v13  ;;  %v451_v15 = vpop.permute.xlu1 %450 }
 0x1ab   :  { %v1203_v22 = vpop.f32.mrb[82].mxu0 }
 0x1ac   :  { %v1582_v23 = vmul.f32 %v1510_v18, %v1196_v8  ;;  %v1367_v24 = vadd.f32 3.0, %v1201_v19  ;;  %v1204_v25 = vadd.f32 %v1203_v22, %v421_v21  ;;  %v1205_v26 = vpop.f32.mrb[83].mxu0  ;;  %v1653_v27 = vmul.f32 0.16666667, %v1581_v2 }
 0x1ae   :  { %v1654_v28 = vmul.f32 0.16666667, %v1582_v23  ;;  %v1439_v29 = vmax.f32 %v1367_v24, 0.0  ;;  %v1368_v30 = vadd.f32 3.0, %v1204_v25 }
 0x1b0   :  { %v1706_v31 = vpack.c.bf16 %v1654_v28, %v1653_v27  ;;  %v1511_v32 = vmin.f32 %v1439_v29, 6.0  ;;  %v1440_v33 = vmax.f32 %v1368_v30, 0.0  ;;  %v456_v27 = vpop.permute.xlu0 %455 }
 0x1b1   :  { %v1208_v35 = vpop.f32.mrb[84].mxu0 }
 0x1b2   :  { %v1583_v36 = vmul.f32 %v1511_v32, %v1201_v19  ;;  %v1512_v37 = vmin.f32 %v1440_v33, 6.0  ;;  %v1209_v38 = vadd.f32 %v1208_v35, %v426_v34  ;;  %v1210_v39 = vpop.f32.mrb[85].mxu0  ;;  %3589 = vmatmul.mubr.msk.bf16.gmra.mrb[36].mxu1 %vm1739_vm1, %v1706_v31  ;;  %v461_v33 = vpop.permute.xlu1 %460 }
 0x1b3   :  { %v1211_v41 = vpop.f32.mrb[86].mxu0 }
 0x1b4   :  { %v1584_v42 = vmul.f32 %v1512_v37, %v1204_v25  ;;  %v1369_v43 = vadd.f32 3.0, %v1209_v38  ;;  %v1212_v44 = vadd.f32 %v1211_v41, %v431_v40  ;;  %v1213_v45 = vpop.f32.mrb[87].mxu0  ;;  %v1655_v46 = vmul.f32 0.16666667, %v1583_v36 }
 0x1b6   :  { %v1656_v47 = vmul.f32 0.16666667, %v1584_v42  ;;  %v1441_v48 = vmax.f32 %v1369_v43, 0.0  ;;  %v1370_v49 = vadd.f32 3.0, %v1212_v44 }
 0x1b8   :  { %v1707_v50 = vpack.c.bf16 %v1656_v47, %v1655_v46  ;;  %v1513_v51 = vmin.f32 %v1441_v48, 6.0  ;;  %v1442_v52 = vmax.f32 %v1370_v49, 0.0  ;;  %v466_v46 = vpop.permute.xlu0 %465 }
 0x1b9   :  { %v1216_v54 = vpop.f32.mrb[88].mxu0 }
 0x1ba   :  { %v1585_v55 = vmul.f32 %v1513_v51, %v1209_v38  ;;  %v1514_v56 = vmin.f32 %v1442_v52, 6.0  ;;  %v1217_v57 = vadd.f32 %v1216_v54, %v436_v53  ;;  %v1218_v58 = vpop.f32.mrb[89].mxu0  ;;  %3592 = vmatprep.mubr.msk.bf16.mxu1 %vm1739_vm1, %v1707_v50  ;;  %v471_v52 = vpop.permute.xlu1 %470 }
 0x1bb   :  { %v1219_v60 = vpop.f32.mrb[90].mxu0 }
 0x1bc   :  { %v1586_v61 = vmul.f32 %v1514_v56, %v1212_v44  ;;  %v1371_v63 = vadd.f32 3.0, %v1217_v57  ;;  %v1220_v0 = vadd.f32 %v1219_v60, %v441_v59  ;;  %v1221_v1 = vpop.f32.mrb[91].mxu0  ;;  %v1657_v3 = vmul.f32 0.16666667, %v1585_v55 }
 0x1be   :  { %v1658_v4 = vmul.f32 0.16666667, %v1586_v61  ;;  %v1443_v5 = vmax.f32 %v1371_v63, 0.0  ;;  %v1372_v6 = vadd.f32 3.0, %v1220_v0 }
 0x1c0   :  { %v1708_v7 = vpack.c.bf16 %v1658_v4, %v1657_v3  ;;  %v1515_v8 = vmin.f32 %v1443_v5, 6.0  ;;  %v1444_v62 = vmax.f32 %v1372_v6, 0.0  ;;  %v476_v3 = vpop.permute.xlu0 %475 }
 0x1c1   :  { %v1224_v10 = vpop.f32.mrb[92].mxu0 }
 0x1c2   :  { %v1587_v11 = vmul.f32 %v1515_v8, %v1217_v57  ;;  %v1516_v12 = vmin.f32 %v1444_v62, 6.0  ;;  %v1225_v13 = vadd.f32 %v1224_v10, %v446_v9  ;;  %v1226_v14 = vpop.f32.mrb[93].mxu0  ;;  %3593 = vmatmul.mubr.msk.bf16.gmra.mrb[40].mxu1 %vm1739_vm1, %v1708_v7  ;;  %v481_v62 = vpop.permute.xlu1 %480 }
 0x1c3   :  { %v1227_v16 = vpop.f32.mrb[94].mxu0 }
 0x1c4   :  { %v1588_v17 = vmul.f32 %v1516_v12, %v1220_v0  ;;  %v1373_v2 = vadd.f32 3.0, %v1225_v13  ;;  %v1228_v18 = vadd.f32 %v1227_v16, %v451_v15  ;;  %v1229_v19 = vpop.f32.mrb[95].mxu0  ;;  %v1659_v20 = vmul.f32 0.16666667, %v1587_v11 }
 0x1c6   :  { %v1660_v21 = vmul.f32 0.16666667, %v1588_v17  ;;  %v1445_v22 = vmax.f32 %v1373_v2, 0.0  ;;  %v1374_v23 = vadd.f32 3.0, %v1228_v18 }
 0x1c8   :  { %v1709_v24 = vpack.c.bf16 %v1660_v21, %v1659_v20  ;;  %v1517_v25 = vmin.f32 %v1445_v22, 6.0  ;;  %v1446_v26 = vmax.f32 %v1374_v23, 0.0  ;;  %v486_v20 = vpop.permute.xlu0 %485 }
 0x1c9   :  { %v1232_v28 = vpop.f32.mrb[96].mxu0 }
 0x1ca   :  { %v1589_v29 = vmul.f32 %v1517_v25, %v1225_v13  ;;  %v1518_v30 = vmin.f32 %v1446_v26, 6.0  ;;  %v1233_v31 = vadd.f32 %v1232_v28, %v456_v27  ;;  %v1234_v32 = vpop.f32.mrb[97].mxu0  ;;  %3596 = vmatprep.mubr.msk.bf16.mxu1 %vm1739_vm1, %v1709_v24  ;;  %v491_v26 = vpop.permute.xlu1 %490 }
 0x1cb   :  { %v1235_v34 = vpop.f32.mrb[98].mxu0 }
 0x1cc   :  { %v1590_v35 = vmul.f32 %v1518_v30, %v1228_v18  ;;  %v1375_v36 = vadd.f32 3.0, %v1233_v31  ;;  %v1236_v37 = vadd.f32 %v1235_v34, %v461_v33  ;;  %v1237_v38 = vpop.f32.mrb[99].mxu0  ;;  %v1661_v39 = vmul.f32 0.16666667, %v1589_v29 }
 0x1ce   :  { %v1662_v40 = vmul.f32 0.16666667, %v1590_v35  ;;  %v1447_v41 = vmax.f32 %v1375_v36, 0.0  ;;  %v1376_v42 = vadd.f32 3.0, %v1236_v37 }
 0x1d0   :  { %v1710_v43 = vpack.c.bf16 %v1662_v40, %v1661_v39  ;;  %v1519_v44 = vmin.f32 %v1447_v41, 6.0  ;;  %v1448_v45 = vmax.f32 %v1376_v42, 0.0  ;;  %v496_v39 = vpop.permute.xlu0 %495 }
 0x1d1   :  { %v1240_v47 = vpop.f32.mrb[100].mxu0 }
 0x1d2   :  { %v1591_v48 = vmul.f32 %v1519_v44, %v1233_v31  ;;  %v1520_v49 = vmin.f32 %v1448_v45, 6.0  ;;  %v1241_v50 = vadd.f32 %v1240_v47, %v466_v46  ;;  %v1242_v51 = vpop.f32.mrb[101].mxu0  ;;  %3597 = vmatmul.mubr.msk.bf16.gmra.mrb[44].mxu1 %vm1739_vm1, %v1710_v43  ;;  %v501_v45 = vpop.permute.xlu1 %500 }
 0x1d3   :  { %v1243_v53 = vpop.f32.mrb[102].mxu0 }
 0x1d4   :  { %v1592_v54 = vmul.f32 %v1520_v49, %v1236_v37  ;;  %v1377_v55 = vadd.f32 3.0, %v1241_v50  ;;  %v1244_v56 = vadd.f32 %v1243_v53, %v471_v52  ;;  %v1245_v57 = vpop.f32.mrb[103].mxu0  ;;  %v1663_v58 = vmul.f32 0.16666667, %v1591_v48 }
 0x1d6   :  { %v1664_v59 = vmul.f32 0.16666667, %v1592_v54  ;;  %v1449_v60 = vmax.f32 %v1377_v55, 0.0  ;;  %v1378_v61 = vadd.f32 3.0, %v1244_v56 }
 0x1d8   :  { %v1711_v63 = vpack.c.bf16 %v1664_v59, %v1663_v58  ;;  %v1521_v0 = vmin.f32 %v1449_v60, 6.0  ;;  %v1450_v1 = vmax.f32 %v1378_v61, 0.0  ;;  %v506_v58 = vpop.permute.xlu0 %505 }
 0x1d9   :  { %v1248_v4 = vpop.f32.mrb[104].mxu0 }
 0x1da   :  { %v1593_v5 = vmul.f32 %v1521_v0, %v1241_v50  ;;  %v1522_v6 = vmin.f32 %v1450_v1, 6.0  ;;  %v1249_v7 = vadd.f32 %v1248_v4, %v476_v3  ;;  %v1250_v8 = vpop.f32.mrb[105].mxu0  ;;  %3600 = vmatprep.mubr.msk.bf16.mxu1 %vm1739_vm1, %v1711_v63  ;;  %v511_v1 = vpop.permute.xlu1 %510 }
 0x1db   :  { %v1251_v9 = vpop.f32.mrb[106].mxu0 }
 0x1dc   :  { %v1594_v10 = vmul.f32 %v1522_v6, %v1244_v56  ;;  %v1379_v11 = vadd.f32 3.0, %v1249_v7  ;;  %v1252_v12 = vadd.f32 %v1251_v9, %v481_v62  ;;  %v1253_v13 = vpop.f32.mrb[107].mxu0  ;;  %v1665_v14 = vmul.f32 0.16666667, %v1593_v5 }
 0x1de   :  { %v1666_v15 = vmul.f32 0.16666667, %v1594_v10  ;;  %v1451_v16 = vmax.f32 %v1379_v11, 0.0  ;;  %v1380_v17 = vadd.f32 3.0, %v1252_v12 }
 0x1e0   :  { %v1712_v2 = vpack.c.bf16 %v1666_v15, %v1665_v14  ;;  %v1523_v18 = vmin.f32 %v1451_v16, 6.0  ;;  %v1452_v19 = vmax.f32 %v1380_v17, 0.0 }
 0x1e1   :  { %v1256_v21 = vpop.f32.mrb[108].mxu0 }
 0x1e2   :  { %v1595_v22 = vmul.f32 %v1523_v18, %v1249_v7  ;;  %v1524_v23 = vmin.f32 %v1452_v19, 6.0  ;;  %v1257_v24 = vadd.f32 %v1256_v21, %v486_v20  ;;  %v1258_v25 = vpop.f32.mrb[109].mxu0  ;;  %3601 = vmatmul.mubr.msk.bf16.gmra.mrb[48].mxu1 %vm1739_vm1, %v1712_v2  ;;  %v516_v19 = vpop.permute.xlu0 %515 }
 0x1e3   :  { %v1259_v27 = vpop.f32.mrb[110].mxu0 }
 0x1e4   :  { %v1596_v28 = vmul.f32 %v1524_v23, %v1252_v12  ;;  %v1381_v29 = vadd.f32 3.0, %v1257_v24  ;;  %v1260_v30 = vadd.f32 %v1259_v27, %v491_v26  ;;  %v1261_v31 = vpop.f32.mrb[111].mxu0  ;;  %v1667_v32 = vmul.f32 0.16666667, %v1595_v22 }
 0x1e6   :  { %v1668_v33 = vmul.f32 0.16666667, %v1596_v28  ;;  %v1453_v34 = vmax.f32 %v1381_v29, 0.0  ;;  %v1382_v35 = vadd.f32 3.0, %v1260_v30  ;;  %v521_v28 = vpop.permute.xlu1 %520 }
 0x1e8   :  { %v1713_v36 = vpack.c.bf16 %v1668_v33, %v1667_v32  ;;  %v1525_v37 = vmin.f32 %v1453_v34, 6.0  ;;  %v1454_v38 = vmax.f32 %v1382_v35, 0.0 }
 0x1e9   :  { %v1264_v40 = vpop.f32.mrb[112].mxu0 }
 0x1ea   :  { %v1597_v41 = vmul.f32 %v1525_v37, %v1257_v24  ;;  %v1526_v42 = vmin.f32 %v1454_v38, 6.0  ;;  %v1265_v43 = vadd.f32 %v1264_v40, %v496_v39  ;;  %v1266_v44 = vpop.f32.mrb[113].mxu0  ;;  %3604 = vmatprep.mubr.msk.bf16.mxu1 %vm1739_vm1, %v1713_v36 }
 0x1eb   :  { %v1267_v46 = vpop.f32.mrb[114].mxu0 }
 0x1ec   :  { %v1598_v47 = vmul.f32 %v1526_v42, %v1260_v30  ;;  %v1383_v48 = vadd.f32 3.0, %v1265_v43  ;;  %v1268_v49 = vadd.f32 %v1267_v46, %v501_v45  ;;  %v1269_v50 = vpop.f32.mrb[115].mxu0  ;;  %v1669_v51 = vmul.f32 0.16666667, %v1597_v41  ;;  %v526_v42 = vpop.permute.xlu0 %525 }
 0x1ee   :  { %v1670_v52 = vmul.f32 0.16666667, %v1598_v47  ;;  %v1455_v53 = vmax.f32 %v1383_v48, 0.0  ;;  %v1384_v54 = vadd.f32 3.0, %v1268_v49  ;;  %v531_v48 = vpop.permute.xlu1 %530 }
 0x1f0   :  { %v1714_v55 = vpack.c.bf16 %v1670_v52, %v1669_v51  ;;  %v1527_v56 = vmin.f32 %v1455_v53, 6.0  ;;  %v1456_v57 = vmax.f32 %v1384_v54, 0.0 }
 0x1f1   :  { %v1272_v59 = vpop.f32.mrb[116].mxu0 }
 0x1f2   :  { %v1599_v60 = vmul.f32 %v1527_v56, %v1265_v43  ;;  %v1528_v61 = vmin.f32 %v1456_v57, 6.0  ;;  %v1273_v63 = vadd.f32 %v1272_v59, %v506_v58  ;;  %v1274_v0 = vpop.f32.mrb[117].mxu0  ;;  %3605 = vmatmul.mubr.msk.bf16.gmra.mrb[52].mxu1 %vm1739_vm1, %v1714_v55 }
 0x1f3   :  { %v1275_v3 = vpop.f32.mrb[118].mxu0 }
 0x1f4   :  { %v1600_v4 = vmul.f32 %v1528_v61, %v1268_v49  ;;  %v1385_v5 = vadd.f32 3.0, %v1273_v63  ;;  %v1276_v6 = vadd.f32 %v1275_v3, %v511_v1  ;;  %v1277_v7 = vpop.f32.mrb[119].mxu0  ;;  %v1671_v8 = vmul.f32 0.16666667, %v1599_v60 }
 0x1f5   :  { %v3554_v62 = vpop.f32.mrb[0].mxu1 }
 0x1f6   :  { %v1672_v9 = vmul.f32 0.16666667, %v1600_v4  ;;  %v1457_v10 = vmax.f32 %v1385_v5, 0.0  ;;  %v1386_v11 = vadd.f32 3.0, %v1276_v6  ;;  %v1882_v12 = vpop.f32.mrb[1].mxu1  ;;  %v4635_v13 = vmul.f32 0.0625, %v3554_v62  ;;  %v536_v5 = vpop.permute.xlu0 %535 }
 0x1f7   :  { %v3555_v14 = vpop.f32.mrb[2].mxu1  ;;  %v4639_v20 = vmul.f32 0.0625, %v1882_v12 }
 0x1f8   :  { %v1715_v15 = vpack.c.bf16 %v1672_v9, %v1671_v8  ;;  %v1529_v16 = vmin.f32 %v1457_v10, 6.0  ;;  %v1458_v17 = vmax.f32 %v1386_v11, 0.0  ;;  %v4637_v2 = vmul.f32 0.0625, %v3555_v14  ;;  %v1885_v18 = vpop.f32.mrb[3].mxu1  ;;  %v541_v14 = vpop.permute.xlu1 %540 }
 0x1f9   :  { %v4641_v21 = vmul.f32 0.0625, %v1885_v18  ;;  %v1280_v22 = vpop.f32.mrb[120].mxu0 }
 0x1fa   :  { %v1601_v23 = vmul.f32 %v1529_v16, %v1273_v63  ;;  %v1530_v24 = vmin.f32 %v1458_v17, 6.0  ;;  %v3670_v25 = vpack.c.bf16 %v4637_v2, %v4635_v13  ;;  %v1281_v26 = vadd.f32 %v1280_v22, %v516_v19  ;;  %v1282_v27 = vpop.f32.mrb[121].mxu0  ;;  %3608 = vmatprep.mubr.msk.bf16.mxu1 %vm1739_vm1, %v1715_v15 }
 0x1fb   :  { %v3666_v29 = vpack.c.bf16 %v4641_v21, %v4639_v20  ;;  %v1283_v30 = vpop.f32.mrb[122].mxu0 }
 0x1fc   :  { %v1602_v31 = vmul.f32 %v1530_v24, %v1276_v6  ;;  %v1387_v32 = vadd.f32 3.0, %v1281_v26  ;;  %v1284_v33 = vadd.f32 %v1283_v30, %v521_v28  ;;  %v1285_v34 = vpop.f32.mrb[123].mxu0  ;;  %v1673_v35 = vmul.f32 0.16666667, %v1601_v23 }
 0x1fe   :  { %v1674_v36 = vmul.f32 0.16666667, %v1602_v31  ;;  %v1459_v37 = vmax.f32 %v1387_v32, 0.0  ;;  %v1388_v38 = vadd.f32 3.0, %v1284_v33  ;;  %v546_v32 = vpop.permute.xlu0 %545 }
 0x200   :  { %v1716_v39 = vpack.c.bf16 %v1674_v36, %v1673_v35  ;;  %v1531_v40 = vmin.f32 %v1459_v37, 6.0  ;;  %v1460_v41 = vmax.f32 %v1388_v38, 0.0  ;;  %v551_v38 = vpop.permute.xlu1 %550 }
 0x201   :  { %v1288_v43 = vpop.f32.mrb[124].mxu0 }
 0x202   :  { %v1603_v44 = vmul.f32 %v1531_v40, %v1281_v26  ;;  %v1532_v45 = vmin.f32 %v1460_v41, 6.0  ;;  %v1289_v46 = vadd.f32 %v1288_v43, %v526_v42  ;;  %v1290_v47 = vpop.f32.mrb[125].mxu0  ;;  %3609 = vmatmul.mubr.msk.bf16.gmra.mrb[56].mxu1 %vm1739_vm1, %v1716_v39 }
 0x203   :  { %v1291_v49 = vpop.f32.mrb[126].mxu0 }
 0x204   :  { %v1604_v50 = vmul.f32 %v1532_v45, %v1284_v33  ;;  %v1389_v51 = vadd.f32 3.0, %v1289_v46  ;;  %v1292_v52 = vadd.f32 %v1291_v49, %v531_v48  ;;  %v1293_v53 = vpop.f32.mrb[127].mxu0  ;;  %v1675_v54 = vmul.f32 0.16666667, %v1603_v44 }
 0x205   :  { %v3558_v55 = vpop.f32.mrb[4].mxu1 }
 0x206   :  { %v1676_v56 = vmul.f32 0.16666667, %v1604_v50  ;;  %v1461_v57 = vmax.f32 %v1389_v51, 0.0  ;;  %v1390_v58 = vadd.f32 3.0, %v1292_v52  ;;  %v1898_v59 = vpop.f32.mrb[5].mxu1  ;;  %v4649_v60 = vmul.f32 0.0625, %v3558_v55 }
 0x207   :  { %v3559_v61 = vpop.f32.mrb[6].mxu1  ;;  %v4653_v6 = vmul.f32 0.0625, %v1898_v59 }
 0x208   :  { %v1717_v63 = vpack.c.bf16 %v1676_v56, %v1675_v54  ;;  %v1533_v0 = vmin.f32 %v1461_v57, 6.0  ;;  %v1462_v1 = vmax.f32 %v1390_v58, 0.0  ;;  %v4651_v3 = vmul.f32 0.0625, %v3559_v61  ;;  %v1901_v4 = vpop.f32.mrb[7].mxu1  ;;  %v556_v57 = vpop.permute.xlu0 %555 }
 0x209   :  { %v4655_v7 = vmul.f32 0.0625, %v1901_v4  ;;  %v1296_v8 = vpop.f32.mrb[128].mxu0 }
 0x20a   :  { %v1605_v62 = vmul.f32 %v1533_v0, %v1289_v46  ;;  %v1534_v9 = vmin.f32 %v1462_v1, 6.0  ;;  %v3678_v10 = vpack.c.bf16 %v4651_v3, %v4649_v60  ;;  %v1297_v11 = vadd.f32 %v1296_v8, %v536_v5  ;;  %v1298_v12 = vpop.f32.mrb[129].mxu0  ;;  %3612 = vmatprep.mubr.msk.bf16.mxu1 %vm1739_vm1, %v1717_v63  ;;  %v561_v8 = vpop.permute.xlu1 %560 }
 0x20b   :  { %v3674_v15 = vpack.c.bf16 %v4655_v7, %v4653_v6  ;;  %v1299_v16 = vpop.f32.mrb[130].mxu0 }
 0x20c   :  { %v1606_v17 = vmul.f32 %v1534_v9, %v1292_v52  ;;  %v1391_v18 = vadd.f32 3.0, %v1297_v11  ;;  %v1300_v19 = vadd.f32 %v1299_v16, %v541_v14  ;;  %v1301_v22 = vpop.f32.mrb[131].mxu0  ;;  %v1677_v23 = vmul.f32 0.16666667, %v1605_v62 }
 0x20e   :  { %v1678_v24 = vmul.f32 0.16666667, %v1606_v17  ;;  %v1463_v26 = vmax.f32 %v1391_v18, 0.0  ;;  %v1392_v27 = vadd.f32 3.0, %v1300_v19 }
 0x210   :  { %v1718_v28 = vpack.c.bf16 %v1678_v24, %v1677_v23  ;;  %v1535_v30 = vmin.f32 %v1463_v26, 6.0  ;;  %v1464_v31 = vmax.f32 %v1392_v27, 0.0  ;;  %v566_v27 = vpop.permute.xlu0 %565 }
 0x211   :  { %v1304_v33 = vpop.f32.mrb[132].mxu0 }
 0x212   :  { %v1607_v34 = vmul.f32 %v1535_v30, %v1297_v11  ;;  %v1536_v35 = vmin.f32 %v1464_v31, 6.0  ;;  %v1305_v36 = vadd.f32 %v1304_v33, %v546_v32  ;;  %v1306_v37 = vpop.f32.mrb[133].mxu0  ;;  %3613 = vmatmul.mubr.msk.bf16.gmra.mrb[60].mxu1 %vm1739_vm1, %v1718_v28 }
 0x213   :  { %v1307_v39 = vpop.f32.mrb[134].mxu0 }
 0x214   :  { %v1608_v40 = vmul.f32 %v1536_v35, %v1300_v19  ;;  %v1393_v41 = vadd.f32 3.0, %v1305_v36  ;;  %v1308_v42 = vadd.f32 %v1307_v39, %v551_v38  ;;  %v1309_v43 = vpop.f32.mrb[135].mxu0  ;;  %v1679_v44 = vmul.f32 0.16666667, %v1607_v34  ;;  %v571_v34 = vpop.permute.xlu1 %570 }
 0x215   :  { %v3562_v45 = vpop.f32.mrb[8].mxu1 }
 0x216   :  { %v1680_v46 = vmul.f32 0.16666667, %v1608_v40  ;;  %v1465_v47 = vmax.f32 %v1393_v41, 0.0  ;;  %v1394_v48 = vadd.f32 3.0, %v1308_v42  ;;  %v1914_v49 = vpop.f32.mrb[9].mxu1  ;;  %v4663_v50 = vmul.f32 0.0625, %v3562_v45 }
 0x217   :  { %v3563_v51 = vpop.f32.mrb[10].mxu1  ;;  %v4667_v58 = vmul.f32 0.0625, %v1914_v49 }
 0x218   :  { %v1719_v52 = vpack.c.bf16 %v1680_v46, %v1679_v44  ;;  %v1537_v53 = vmin.f32 %v1465_v47, 6.0  ;;  %v1466_v54 = vmax.f32 %v1394_v48, 0.0  ;;  %v4665_v55 = vmul.f32 0.0625, %v3563_v51  ;;  %v1917_v56 = vpop.f32.mrb[11].mxu1 }
 0x219   :  { %v4669_v59 = vmul.f32 0.0625, %v1917_v56  ;;  %v1312_v61 = vpop.f32.mrb[136].mxu0 }
 0x21a   :  { %v1609_v63 = vmul.f32 %v1537_v53, %v1305_v36  ;;  %v1538_v0 = vmin.f32 %v1466_v54, 6.0  ;;  %v3686_v1 = vpack.c.bf16 %v4665_v55, %v4663_v50  ;;  %v1313_v4 = vadd.f32 %v1312_v61, %v556_v57  ;;  %v1314_v5 = vpop.f32.mrb[137].mxu0  ;;  %3616 = vmatprep.mubr.msk.bf16.mxu1 %vm1739_vm1, %v1719_v52  ;;  %v2241_v50 = vld [vmem:[%s5159_s4] sm:$0xff]  ;;  %v2247_v55 = vld [vmem:[%s5159_s4 + $0x30] sm:$0xff] }
 0x21b   :  { %v3682_v62 = vpack.c.bf16 %v4669_v59, %v4667_v58  ;;  %v1315_v9 = vpop.f32.mrb[138].mxu0 }
 0x21c   :  { %v1610_v11 = vmul.f32 %v1538_v0, %v1308_v42  ;;  %v1395_v12 = vadd.f32 3.0, %v1313_v4  ;;  %v1316_v14 = vadd.f32 %v1315_v9, %v561_v8  ;;  %v1317_v16 = vpop.f32.mrb[139].mxu0  ;;  %v1681_v17 = vmul.f32 0.16666667, %v1609_v63 }
 0x21e   :  { %v1682_v18 = vmul.f32 0.16666667, %v1610_v11  ;;  %v1467_v19 = vmax.f32 %v1395_v12, 0.0  ;;  %v1396_v22 = vadd.f32 3.0, %v1316_v14  ;;  %v2242_v11 = vld [vmem:[%s5159_s4 + $0x8] sm:$0xff] }
 0x220   :  { %v1720_v23 = vpack.c.bf16 %v1682_v18, %v1681_v17  ;;  %v1539_v24 = vmin.f32 %v1467_v19, 6.0  ;;  %v1468_v26 = vmax.f32 %v1396_v22, 0.0 }
 0x221   :  { %v1320_v28 = vpop.f32.mrb[140].mxu0 }
 0x222   :  { %v1611_v30 = vmul.f32 %v1539_v24, %v1313_v4  ;;  %v1540_v31 = vmin.f32 %v1468_v26, 6.0  ;;  %v1321_v32 = vadd.f32 %v1320_v28, %v566_v27  ;;  %v1322_v33 = vpop.f32.mrb[141].mxu0  ;;  %3617 = vmatmul.mubr.msk.bf16.gmra.mrb[64].mxu1 %vm1739_vm1, %v1720_v23 }
 0x223   :  { %v1323_v35 = vpop.f32.mrb[142].mxu0 }
 0x224   :  { %v1612_v36 = vmul.f32 %v1540_v31, %v1316_v14  ;;  %v1397_v37 = vadd.f32 3.0, %v1321_v32  ;;  %v1324_v38 = vadd.f32 %v1323_v35, %v571_v34  ;;  %v1325_v39 = vpop.f32.mrb[143].mxu0  ;;  %v1683_v40 = vmul.f32 0.16666667, %v1611_v30 }
 0x225   :  { %v3566_v41 = vpop.f32.mrb[12].mxu1 }
 0x226   :  { %v1684_v42 = vmul.f32 0.16666667, %v1612_v36  ;;  %v1469_v43 = vmax.f32 %v1397_v37, 0.0  ;;  %v1398_v44 = vadd.f32 3.0, %v1324_v38  ;;  %v1930_v45 = vpop.f32.mrb[13].mxu1  ;;  %v4677_v46 = vmul.f32 0.0625, %v3566_v41 }
 0x227   :  { %v3567_v47 = vpop.f32.mrb[14].mxu1  ;;  %v4681_v54 = vmul.f32 0.0625, %v1930_v45 }
 0x228   :  { %v1721_v48 = vpack.c.bf16 %v1684_v42, %v1683_v40  ;;  %v1541_v49 = vmin.f32 %v1469_v43, 6.0  ;;  %v1470_v51 = vmax.f32 %v1398_v44, 0.0  ;;  %v4679_v52 = vmul.f32 0.0625, %v3567_v47  ;;  %v1933_v53 = vpop.f32.mrb[15].mxu1 }
 0x229   :  { %v4683_v56 = vmul.f32 0.0625, %v1933_v53 }
 0x22a   :  { %v1613_v57 = vmul.f32 %v1541_v49, %v1321_v32  ;;  %v1542_v61 = vmin.f32 %v1470_v51, 6.0  ;;  %v3694_v63 = vpack.c.bf16 %v4679_v52, %v4677_v46  ;;  %3620 = vmatprep.mubr.msk.bf16.mxu1 %vm1739_vm1, %v1721_v48  ;;  %v2252_v46 = vld [vmem:[%s5159_s4 + $0x58] sm:$0xff] }
 0x22b   :  { %v3690_v0 = vpack.c.bf16 %v4683_v56, %v4681_v54  ;;  %v2251_v54 = vld [vmem:[%s5159_s4 + $0x50] sm:$0xff] }
 0x22c   :  { %v1614_v4 = vmul.f32 %v1542_v61, %v1324_v38  ;;  %v1685_v5 = vmul.f32 0.16666667, %v1613_v57  ;;  %v2257_v57 = vld [vmem:[%s5159_s4 + $0x80] sm:$0xff]  ;;  %v2256_v61 = vld [vmem:[%s5159_s4 + $0x78] sm:$0xff] }
 0x22e   :  { %v1686_v8 = vmul.f32 0.16666667, %v1614_v4  ;;  %v2267_v4 = vld [vmem:[%s5159_s4 + $0xd0] sm:$0xff] }
 0x230   :  { %v1722_v9 = vpack.c.bf16 %v1686_v8, %v1685_v5 }
 0x232   :  { %3621 = vmatmul.mubr.msk.bf16.gmra.mrb[68].mxu1 %vm1739_vm1, %v1722_v9  ;;  %v2266_v9 = vld [vmem:[%s5159_s4 + $0xc8] sm:$0xff] }
 0x233   :  { %2529 = vmatprep.mubr.f32.mxu1 %v2242_v11 }
 0x235   :  { %v3570_v12 = vpop.f32.mrb[16].mxu1 }
 0x236   :  { %v1946_v14 = vpop.f32.mrb[17].mxu1  ;;  %v2187_v17 = vmul.f32 0.0625, %v3570_v12  ;;  %v2272_v12 = vld [vmem:[%s5159_s4 + $0xf8] sm:$0xff] }
 0x237   :  { %v3571_v16 = vpop.f32.mrb[18].mxu1  ;;  %v2185_v22 = vmul.f32 0.0625, %v1946_v14 }
 0x238   :  { %v2188_v18 = vmul.f32 0.0625, %v3571_v16  ;;  %v1949_v19 = vpop.f32.mrb[19].mxu1 }
 0x239   :  { %v2186_v23 = vmul.f32 0.0625, %v1949_v19 }
 0x23a   :  { %v3668_v24 = vpack.c.bf16 %v2188_v18, %v2187_v17 }
 0x23b   :  { %v3664_v26 = vpack.c.bf16 %v2186_v23, %v2185_v22  ;;  %v2271_v23 = vld [vmem:[%s5159_s4 + $0xf0] sm:$0xff] }
 0x23d   :  { %3665 = vmatprep.subr.bf16.mxu1 %v3664_v26  ;;  %v2277_v26 = vld [vmem:[%s5159_s4 + $0x120] sm:$0xff] }
 0x23e   :  { %3667 = vmatpush3.bf16.msra.mxu1 %v3666_v29 }
 0x23f   :  { %3669 = vmatprep.subr.bf16.mxu1 %v3668_v24 }
 0x242   :  { %3671 = vmatpush3.bf16.msra.mxu1 %v3670_v25 }
 0x245   :  { %v3574_v27 = vpop.f32.mrb[20].mxu1 }
 0x246   :  { %v1962_v28 = vpop.f32.mrb[21].mxu1  ;;  %v2191_v31 = vmul.f32 0.0625, %v3574_v27  ;;  %v2276_v27 = vld [vmem:[%s5159_s4 + $0x118] sm:$0xff] }
 0x247   :  { %v3575_v30 = vpop.f32.mrb[22].mxu1  ;;  %v2189_v34 = vmul.f32 0.0625, %v1962_v28  ;;  %v2282_v28 = vld [vmem:[%s5159_s4 + $0x148] sm:$0xff] }
 0x248   :  { %v2192_v32 = vmul.f32 0.0625, %v3575_v30  ;;  %v1965_v33 = vpop.f32.mrb[23].mxu1  ;;  %v2281_v30 = vld [vmem:[%s5159_s4 + $0x140] sm:$0xff] }
 0x249   :  { %v2190_v35 = vmul.f32 0.0625, %v1965_v33 }
 0x24a   :  { %v3676_v36 = vpack.c.bf16 %v2192_v32, %v2191_v31  ;;  %v2287_v31 = vld [vmem:[%s5159_s4 + $0x170] sm:$0xff] }
 0x24b   :  { %v3672_v37 = vpack.c.bf16 %v2190_v35, %v2189_v34  ;;  %v2286_v34 = vld [vmem:[%s5159_s4 + $0x168] sm:$0xff] }
 0x24d   :  { %3673 = vmatprep.subr.bf16.mxu1 %v3672_v37 }
 0x24e   :  { %3675 = vmatpush3.bf16.msra.mxu1 %v3674_v15 }
 0x24f   :  { %3677 = vmatprep.subr.bf16.mxu1 %v3676_v36  ;;  %v2292_v36 = vld [vmem:[%s5159_s4 + $0x198] sm:$0xff] }
 0x252   :  { %3679 = vmatpush3.bf16.msra.mxu1 %v3678_v10 }
 0x255   :  { %v3578_v13 = vpop.f32.mrb[24].mxu1 }
 0x256   :  { %v1978_v2 = vpop.f32.mrb[25].mxu1  ;;  %v2195_v21 = vmul.f32 0.0625, %v3578_v13 }
 0x257   :  { %v3579_v20 = vpop.f32.mrb[26].mxu1  ;;  %v2193_v38 = vmul.f32 0.0625, %v1978_v2 }
 0x258   :  { %v2196_v25 = vmul.f32 0.0625, %v3579_v20  ;;  %v1981_v29 = vpop.f32.mrb[27].mxu1 }
 0x259   :  { %v2194_v39 = vmul.f32 0.0625, %v1981_v29  ;;  %v2291_v29 = vld [vmem:[%s5159_s4 + $0x190] sm:$0xff] }
 0x25a   :  { %v3684_v40 = vpack.c.bf16 %v2196_v25, %v2195_v21 }
 0x25b   :  { %v3680_v41 = vpack.c.bf16 %v2194_v39, %v2193_v38  ;;  %v2297_v39 = vld [vmem:[%s5159_s4 + $0x1c0] sm:$0xff] }
 0x25d   :  { %3681 = vmatprep.subr.bf16.mxu1 %v3680_v41  ;;  %v2302_v41 = vld [vmem:[%s5159_s4 + $0x1e8] sm:$0xff] }
 0x25e   :  { %3683 = vmatpush3.bf16.msra.mxu1 %v3682_v62 }
 0x25f   :  { %3685 = vmatprep.subr.bf16.mxu1 %v3684_v40  ;;  %v2296_v40 = vld [vmem:[%s5159_s4 + $0x1b8] sm:$0xff] }
 0x262   :  { %3687 = vmatpush3.bf16.msra.mxu1 %v3686_v1  ;;  %v2246_v1 = vld [vmem:[%s5159_s4 + $0x28] sm:$0xff] }
 0x265   :  { %v3582_v60 = vpop.f32.mrb[28].mxu1 }
 0x266   :  { %v1994_v3 = vpop.f32.mrb[29].mxu1  ;;  %v2199_v7 = vmul.f32 0.0625, %v3582_v60  ;;  %v2301_v60 = vld [vmem:[%s5159_s4 + $0x1e0] sm:$0xff] }
 0x267   :  { %v3583_v6 = vpop.f32.mrb[30].mxu1  ;;  %v2197_v42 = vmul.f32 0.0625, %v1994_v3  ;;  %v2307_v3 = vld [vmem:[%s5159_s4 + $0x210] sm:$0xff] }
 0x268   :  { %v2200_v10 = vmul.f32 0.0625, %v3583_v6  ;;  %v1997_v15 = vpop.f32.mrb[31].mxu1 }
 0x269   :  { %v2198_v43 = vmul.f32 0.0625, %v1997_v15 }
 0x26a   :  { %v3692_v44 = vpack.c.bf16 %v2200_v10, %v2199_v7  ;;  %v2306_v10 = vld [vmem:[%s5159_s4 + $0x208] sm:$0xff] }
 0x26b   :  { %v3688_v45 = vpack.c.bf16 %v2198_v43, %v2197_v42  ;;  %v2312_v42 = vld [vmem:[%s5159_s4 + $0x238] sm:$0xff] }
 0x26d   :  { %3689 = vmatprep.subr.bf16.mxu1 %v3688_v45 }
 0x26e   :  { %3691 = vmatpush3.bf16.msra.mxu1 %v3690_v0  ;;  %v2261_v0 = vld [vmem:[%s5159_s4 + $0xa0] sm:$0xff] }
 0x26f   :  { %3693 = vmatprep.subr.bf16.mxu1 %v3692_v44 }
 0x272   :  { %3695 = vmatpush3.bf16.msra.mxu1 %v3694_v63  ;;  %v2262_v63 = vld [vmem:[%s5159_s4 + $0xa8] sm:$0xff] }
 0x275   :  { %v3586_v58 = vpop.f32.mrb[32].mxu1  ;;  %2530 = vmatmul.mubr.f32.vlgmr.msra.gmra.mrb[72].mxu1 %v2241_v50 }
 0x276   :  { %v2010_v59 = vpop.f32.mrb[33].mxu1  ;;  %2534 = vmatprep.mubr.f32.mxu1 %v2247_v55  ;;  %v4727_v47 = vmul.f32 0.0625, %v3586_v58 }
 0x277   :  { %v3587_v62 = vpop.f32.mrb[34].mxu1  ;;  %v4731_v51 = vmul.f32 0.0625, %v2010_v59  ;;  %v2311_v59 = vld [vmem:[%s5159_s4 + $0x230] sm:$0xff] }
 0x278   :  { %v4729_v48 = vmul.f32 0.0625, %v3587_v62  ;;  %v2013_v49 = vpop.f32.mrb[35].mxu1  ;;  %v2317_v62 = vld [vmem:[%s5159_s4 + $0x260] sm:$0xff] }
 0x279   :  { %v4733_v52 = vmul.f32 0.0625, %v2013_v49  ;;  %2535 = vmatmul.mubr.f32.gmra.mrb[74].mxu1 %v2246_v1  ;;  %v2244_v49 = vld [vmem:[%s5159_s4 + $0x18] sm:$0xff] }
 0x27a   :  { %v3702_v53 = vpack.c.bf16 %v4729_v48, %v4727_v47  ;;  %2539 = vmatprep.mubr.f32.mxu1 %v2252_v46  ;;  %v2316_v46 = vld [vmem:[%s5159_s4 + $0x258] sm:$0xff] }
 0x27b   :  { %v3698_v56 = vpack.c.bf16 %v4733_v52, %v4731_v51 }
 0x27d   :  { %2540 = vmatmul.mubr.f32.gmra.mrb[76].mxu1 %v2251_v54 }
 0x27e   :  { %2544 = vmatprep.mubr.f32.mxu1 %v2257_v57 }
 0x281   :  { %2545 = vmatmul.mubr.f32.gmra.mrb[78].mxu1 %v2256_v61 }
 0x282   :  { %2549 = vmatprep.mubr.f32.mxu1 %v2262_v63 }
 0x285   :  { %v3590_v5 = vpop.f32.mrb[36].mxu1  ;;  %2550 = vmatmul.mubr.f32.gmra.mrb[80].mxu1 %v2261_v0 }
 0x286   :  { %v2026_v8 = vpop.f32.mrb[37].mxu1  ;;  %2554 = vmatprep.mubr.f32.mxu1 %v2267_v4  ;;  %v4763_v14 = vmul.f32 0.0625, %v3590_v5 }
 0x287   :  { %v3591_v11 = vpop.f32.mrb[38].mxu1  ;;  %v4767_v18 = vmul.f32 0.0625, %v2026_v8 }
 0x288   :  { %v4765_v16 = vmul.f32 0.0625, %v3591_v11  ;;  %v2029_v17 = vpop.f32.mrb[39].mxu1 }
 0x289   :  { %v4769_v19 = vmul.f32 0.0625, %v2029_v17  ;;  %2555 = vmatmul.mubr.f32.gmra.mrb[82].mxu1 %v2266_v9 }
 0x28a   :  { %v3710_v22 = vpack.c.bf16 %v4765_v16, %v4763_v14  ;;  %2559 = vmatprep.mubr.f32.mxu1 %v2272_v12 }
 0x28b   :  { %v3706_v24 = vpack.c.bf16 %v4769_v19, %v4767_v18 }
 0x28d   :  { %2560 = vmatmul.mubr.f32.gmra.mrb[84].mxu1 %v2271_v23 }
 0x28e   :  { %2564 = vmatprep.mubr.f32.mxu1 %v2277_v26 }
 0x291   :  { %2565 = vmatmul.mubr.f32.gmra.mrb[86].mxu1 %v2276_v27 }
 0x292   :  { %2569 = vmatprep.mubr.f32.mxu1 %v2282_v28 }
 0x295   :  { %v3594_v32 = vpop.f32.mrb[40].mxu1  ;;  %2570 = vmatmul.mubr.f32.gmra.mrb[88].mxu1 %v2281_v30 }
 0x296   :  { %v2042_v33 = vpop.f32.mrb[41].mxu1  ;;  %2574 = vmatprep.mubr.f32.mxu1 %v2287_v31  ;;  %v4799_v37 = vmul.f32 0.0625, %v3594_v32 }
 0x297   :  { %v3595_v35 = vpop.f32.mrb[42].mxu1  ;;  %v4803_v20 = vmul.f32 0.0625, %v2042_v33 }
 0x298   :  { %v4801_v13 = vmul.f32 0.0625, %v3595_v35  ;;  %v2045_v2 = vpop.f32.mrb[43].mxu1 }
 0x299   :  { %v4805_v21 = vmul.f32 0.0625, %v2045_v2  ;;  %2575 = vmatmul.mubr.f32.gmra.mrb[90].mxu1 %v2286_v34 }
 0x29a   :  { %v3718_v25 = vpack.c.bf16 %v4801_v13, %v4799_v37  ;;  %2579 = vmatprep.mubr.f32.mxu1 %v2292_v36  ;;  %v2243_v37 = vld [vmem:[%s5159_s4 + $0x10] sm:$0xff]  ;;  %v2249_v13 = vld [vmem:[%s5159_s4 + $0x40] sm:$0xff] }
 0x29b   :  { %v3714_v38 = vpack.c.bf16 %v4805_v21, %v4803_v20 }
 0x29d   :  { %2580 = vmatmul.mubr.f32.gmra.mrb[92].mxu1 %v2291_v29 }
 0x29e   :  { %2584 = vmatprep.mubr.f32.mxu1 %v2297_v39 }
 0x2a1   :  { %2585 = vmatmul.mubr.f32.gmra.mrb[94].mxu1 %v2296_v40 }
 0x2a2   :  { %2589 = vmatprep.mubr.f32.mxu1 %v2302_v41 }
 0x2a5   :  { %v3598_v6 = vpop.f32.mrb[44].mxu1  ;;  %2590 = vmatmul.mubr.f32.gmra.mrb[96].mxu1 %v2301_v60  ;;  %v2254_v60 = vld [vmem:[%s5159_s4 + $0x68] sm:$0xff] }
 0x2a6   :  { %v2058_v7 = vpop.f32.mrb[45].mxu1  ;;  %2594 = vmatprep.mubr.f32.mxu1 %v2307_v3  ;;  %v4835_v43 = vmul.f32 0.0625, %v3598_v6 }
 0x2a7   :  { %v3599_v15 = vpop.f32.mrb[46].mxu1  ;;  %v4839_v50 = vmul.f32 0.0625, %v2058_v7 }
 0x2a8   :  { %v4837_v44 = vmul.f32 0.0625, %v3599_v15  ;;  %v2061_v45 = vpop.f32.mrb[47].mxu1 }
 0x2a9   :  { %v4841_v55 = vmul.f32 0.0625, %v2061_v45  ;;  %2595 = vmatmul.mubr.f32.gmra.mrb[98].mxu1 %v2306_v10  ;;  %v2259_v45 = vld [vmem:[%s5159_s4 + $0x90] sm:$0xff] }
 0x2aa   :  { %v3726_v58 = vpack.c.bf16 %v4837_v44, %v4835_v43  ;;  %2599 = vmatprep.mubr.f32.mxu1 %v2312_v42  ;;  %v2253_v43 = vld [vmem:[%s5159_s4 + $0x60] sm:$0xff] }
 0x2ab   :  { %v3722_v1 = vpack.c.bf16 %v4841_v55, %v4839_v50  ;;  %v2258_v50 = vld [vmem:[%s5159_s4 + $0x88] sm:$0xff]  ;;  %v2264_v55 = vld [vmem:[%s5159_s4 + $0xb8] sm:$0xff] }
 0x2ad   :  { %2600 = vmatmul.mubr.f32.gmra.mrb[100].mxu1 %v2311_v59  ;;  %v2269_v59 = vld [vmem:[%s5159_s4 + $0xe0] sm:$0xff] }
 0x2ae   :  { %2604 = vmatprep.mubr.f32.mxu1 %v2317_v62 }
 0x2b1   :  { %2605 = vmatmul.mubr.f32.gmra.mrb[102].mxu1 %v2316_v46  ;;  %v2268_v46 = vld [vmem:[%s5159_s4 + $0xd8] sm:$0xff] }
 0x2b2   :  { %2674 = vmatprep.mubr.f32.mxu1 %v2244_v49 }
 0x2b5   :  { %v3602_v54 = vpop.f32.mrb[48].mxu1 }
 0x2b6   :  { %v2074_v57 = vpop.f32.mrb[49].mxu1  ;;  %v2219_v63 = vmul.f32 0.0625, %v3602_v54  ;;  %v2274_v54 = vld [vmem:[%s5159_s4 + $0x108] sm:$0xff] }
 0x2b7   :  { %v3603_v61 = vpop.f32.mrb[50].mxu1  ;;  %v2217_v5 = vmul.f32 0.0625, %v2074_v57 }
 0x2b8   :  { %v2220_v0 = vmul.f32 0.0625, %v3603_v61  ;;  %v2077_v4 = vpop.f32.mrb[51].mxu1 }
 0x2b9   :  { %v2218_v8 = vmul.f32 0.0625, %v2077_v4 }
 0x2ba   :  { %v3700_v9 = vpack.c.bf16 %v2220_v0, %v2219_v63 }
 0x2bb   :  { %v3696_v11 = vpack.c.bf16 %v2218_v8, %v2217_v5  ;;  %v2273_v8 = vld [vmem:[%s5159_s4 + $0x100] sm:$0xff] }
 0x2bd   :  { %3697 = vmatprep.subr.bf16.mxu1 %v3696_v11  ;;  %v2279_v11 = vld [vmem:[%s5159_s4 + $0x130] sm:$0xff] }
 0x2be   :  { %3699 = vmatpush3.bf16.msra.mxu1 %v3698_v56 }
 0x2bf   :  { %3701 = vmatprep.subr.bf16.mxu1 %v3700_v9 }
 0x2c2   :  { %3703 = vmatpush3.bf16.msra.mxu1 %v3702_v53 }
 0x2c5   :  { %v3606_v12 = vpop.f32.mrb[52].mxu1 }
 0x2c6   :  { %v2090_v17 = vpop.f32.mrb[53].mxu1  ;;  %v2223_v26 = vmul.f32 0.0625, %v3606_v12  ;;  %v2278_v12 = vld [vmem:[%s5159_s4 + $0x128] sm:$0xff] }
 0x2c7   :  { %v3607_v23 = vpop.f32.mrb[54].mxu1  ;;  %v2221_v30 = vmul.f32 0.0625, %v2090_v17  ;;  %v2284_v17 = vld [vmem:[%s5159_s4 + $0x158] sm:$0xff] }
 0x2c8   :  { %v2224_v27 = vmul.f32 0.0625, %v3607_v23  ;;  %v2093_v28 = vpop.f32.mrb[55].mxu1  ;;  %v2283_v23 = vld [vmem:[%s5159_s4 + $0x150] sm:$0xff] }
 0x2c9   :  { %v2222_v31 = vmul.f32 0.0625, %v2093_v28  ;;  %v2294_v28 = vld [vmem:[%s5159_s4 + $0x1a8] sm:$0xff] }
 0x2ca   :  { %v3708_v32 = vpack.c.bf16 %v2224_v27, %v2223_v26  ;;  %v2289_v26 = vld [vmem:[%s5159_s4 + $0x180] sm:$0xff]  ;;  %v2288_v27 = vld [vmem:[%s5159_s4 + $0x178] sm:$0xff] }
 0x2cb   :  { %v3704_v33 = vpack.c.bf16 %v2222_v31, %v2221_v30  ;;  %v2293_v30 = vld [vmem:[%s5159_s4 + $0x1a0] sm:$0xff]  ;;  %v2299_v31 = vld [vmem:[%s5159_s4 + $0x1d0] sm:$0xff] }
 0x2cd   :  { %3705 = vmatprep.subr.bf16.mxu1 %v3704_v33  ;;  %v2304_v33 = vld [vmem:[%s5159_s4 + $0x1f8] sm:$0xff] }
 0x2ce   :  { %3707 = vmatpush3.bf16.msra.mxu1 %v3706_v24 }
 0x2cf   :  { %3709 = vmatprep.subr.bf16.mxu1 %v3708_v32  ;;  %v2298_v32 = vld [vmem:[%s5159_s4 + $0x1c8] sm:$0xff] }
 0x2d2   :  { %3711 = vmatpush3.bf16.msra.mxu1 %v3710_v22 }
 0x2d5   :  { %v3610_v47 = vpop.f32.mrb[56].mxu1 }
 0x2d6   :  { %v2106_v48 = vpop.f32.mrb[57].mxu1  ;;  %v2227_v52 = vmul.f32 0.0625, %v3610_v47  ;;  %v2303_v47 = vld [vmem:[%s5159_s4 + $0x1f0] sm:$0xff] }
 0x2d7   :  { %v3611_v51 = vpop.f32.mrb[58].mxu1  ;;  %v2225_v34 = vmul.f32 0.0625, %v2106_v48  ;;  %v2309_v48 = vld [vmem:[%s5159_s4 + $0x220] sm:$0xff] }
 0x2d8   :  { %v2228_v53 = vmul.f32 0.0625, %v3611_v51  ;;  %v2109_v56 = vpop.f32.mrb[59].mxu1  ;;  %v2308_v51 = vld [vmem:[%s5159_s4 + $0x218] sm:$0xff] }
 0x2d9   :  { %v2226_v35 = vmul.f32 0.0625, %v2109_v56  ;;  %v2319_v56 = vld [vmem:[%s5159_s4 + $0x270] sm:$0xff] }
 0x2da   :  { %v3716_v36 = vpack.c.bf16 %v2228_v53, %v2227_v52  ;;  %v2314_v52 = vld [vmem:[%s5159_s4 + $0x248] sm:$0xff]  ;;  %v2313_v53 = vld [vmem:[%s5159_s4 + $0x240] sm:$0xff] }
 0x2db   :  { %v3712_v2 = vpack.c.bf16 %v2226_v35, %v2225_v34  ;;  %v2318_v34 = vld [vmem:[%s5159_s4 + $0x268] sm:$0xff]  ;;  %v2245_v35 = vld [vmem:[%s5159_s4 + $0x20] sm:$0xff] }
 0x2dd   :  { %3713 = vmatprep.subr.bf16.mxu1 %v3712_v2  ;;  %v2255_v2 = vld [vmem:[%s5159_s4 + $0x70] sm:$0xff] }
 0x2de   :  { %3715 = vmatpush3.bf16.msra.mxu1 %v3714_v38 }
 0x2df   :  { %3717 = vmatprep.subr.bf16.mxu1 %v3716_v36  ;;  %v2250_v36 = vld [vmem:[%s5159_s4 + $0x48] sm:$0xff] }
 0x2e2   :  { %3719 = vmatpush3.bf16.msra.mxu1 %v3718_v25  ;;  %v2248_v25 = vld [vmem:[%s5159_s4 + $0x38] sm:$0xff] }
 0x2e5   :  { %v3614_v14 = vpop.f32.mrb[60].mxu1 }
 0x2e6   :  { %v2122_v16 = vpop.f32.mrb[61].mxu1  ;;  %v2231_v19 = vmul.f32 0.0625, %v3614_v14  ;;  %v2260_v14 = vld [vmem:[%s5159_s4 + $0x98] sm:$0xff] }
 0x2e7   :  { %v3615_v18 = vpop.f32.mrb[62].mxu1  ;;  %v2229_v29 = vmul.f32 0.0625, %v2122_v16  ;;  %v2265_v16 = vld [vmem:[%s5159_s4 + $0xc0] sm:$0xff] }
 0x2e8   :  { %v2232_v22 = vmul.f32 0.0625, %v3615_v18  ;;  %v2125_v24 = vpop.f32.mrb[63].mxu1  ;;  %v2270_v18 = vld [vmem:[%s5159_s4 + $0xe8] sm:$0xff] }
 0x2e9   :  { %v2230_v39 = vmul.f32 0.0625, %v2125_v24  ;;  %v2285_v24 = vld [vmem:[%s5159_s4 + $0x160] sm:$0xff] }
 0x2ea   :  { %v3724_v40 = vpack.c.bf16 %v2232_v22, %v2231_v19  ;;  %v2275_v19 = vld [vmem:[%s5159_s4 + $0x110] sm:$0xff]  ;;  %v2280_v22 = vld [vmem:[%s5159_s4 + $0x138] sm:$0xff] }
 0x2eb   :  { %v3720_v41 = vpack.c.bf16 %v2230_v39, %v2229_v29  ;;  %v2290_v29 = vld [vmem:[%s5159_s4 + $0x188] sm:$0xff]  ;;  %v2295_v39 = vld [vmem:[%s5159_s4 + $0x1b0] sm:$0xff] }
 0x2ed   :  { %3721 = vmatprep.subr.bf16.mxu1 %v3720_v41  ;;  %v2305_v41 = vld [vmem:[%s5159_s4 + $0x200] sm:$0xff] }
 0x2ee   :  { %3723 = vmatpush3.bf16.msra.mxu1 %v3722_v1 }
 0x2ef   :  { %3725 = vmatprep.subr.bf16.mxu1 %v3724_v40  ;;  %v2300_v40 = vld [vmem:[%s5159_s4 + $0x1d8] sm:$0xff] }
 0x2f2   :  { %3727 = vmatpush3.bf16.msra.mxu1 %v3726_v58  ;;  %v2263_v58 = vld [vmem:[%s5159_s4 + $0xb0] sm:$0xff] }
 0x2f5   :  { %v3618_v20 = vpop.f32.mrb[64].mxu1  ;;  %2675 = vmatmul.mubr.f32.vlgmr.msra.gmra.mrb[104].mxu1 %v2243_v37 }
 0x2f6   :  { %v2138_v21 = vpop.f32.mrb[65].mxu1  ;;  %2679 = vmatprep.mubr.f32.mxu1 %v2249_v13  ;;  %v2235_v3 = vmul.f32 0.0625, %v3618_v20 }
 0x2f7   :  { %v3619_v38 = vpop.f32.mrb[66].mxu1  ;;  %v2233_v10 = vmul.f32 0.0625, %v2138_v21  ;;  %v2310_v21 = vld [vmem:[%s5159_s4 + $0x228] sm:$0xff] }
 0x2f8   :  { %v2236_v6 = vmul.f32 0.0625, %v3619_v38  ;;  %v2141_v7 = vpop.f32.mrb[67].mxu1 }
 0x2f9   :  { %v2234_v15 = vmul.f32 0.0625, %v2141_v7  ;;  %2680 = vmatmul.mubr.f32.gmra.mrb[106].mxu1 %v2248_v25  ;;  %v2315_v25 = vld [vmem:[%s5159_s4 + $0x250] sm:$0xff] }
 0x2fa   :  { %v3732_v42 = vpack.c.bf16 %v2236_v6, %v2235_v3  ;;  %2684 = vmatprep.mubr.f32.mxu1 %v2254_v60  ;;  %v2320_v6 = vld [vmem:[%s5159_s4 + $0x278] sm:$0xff]  ;;  %s3887_s4 = smov [#allocation3]  }
 0x2fb   :  { %v3728_v44 = vpack.c.bf16 %v2234_v15, %v2233_v10  ;;  %s3155_s23 = sshll.u32 %s3887_s4, 4  ;;  %s3156_s23 = int_to_ptr.vmem [resolvable:$true] %s3155_s23 }
 0x2fc   :  { %s3862_s24 = scalar_lea.vmem %s3156_s23, 16  ;;  %s3866_s25 = scalar_lea.vmem %s3156_s23, 32 }
 0x2fd   :  { %2685 = vmatmul.mubr.f32.gmra.mrb[108].mxu1 %v2253_v43  ;;  %3729 = vmatprep.subr.bf16.mxu1 %v3728_v44  ;;  %p3863_p0 = scmp.ne.s32.totalorder %s3156_s23, %s3862_s24  ;;  %p3867_p1 = scmp.lt.s32.totalorder %s3156_s23, %s3156_s23 }
 0x2fe   :  { %3731 = vmatpush3.bf16.msra.mxu1 %v3728_v44  ;;  %2689 = vmatprep.mubr.f32.mxu1 %v2259_v45  ;;  %p3868_p2 = scmp.lt.s32.totalorder %s3866_s25, %s3862_s24 }
 0x2ff   :  { %3733 = vmatprep.subr.bf16.mxu1 %v3732_v42 }
 0x300   :  { %p3869_p3 = por %p3868_p2, %p3867_p1 }
 0x301   :  { %2690 = vmatmul.mubr.f32.gmra.mrb[110].mxu1 %v2258_v50 }
 0x302   :  { %3735 = vmatpush3.bf16.msra.mxu1 %v3732_v42  ;;  %2694 = vmatprep.mubr.f32.mxu1 %v2264_v55  ;;  %p3870_p4 = pnand %p3869_p3, %p3863_p0 }
 0x305   :  { %v3622_v1 = vpop.f32.mrb[68].mxu1  ;;  %2695 = vmatmul.mubr.f32.gmra.mrb[112].mxu1 %v2263_v58 }
 0x306   :  { %v2154_v62 = vpop.f32.mrb[69].mxu1  ;;  %2699 = vmatprep.mubr.f32.mxu1 %v2269_v59  ;;  %v2239_v57 = vmul.f32 0.0625, %v3622_v1 }
 0x307   :  { %v3623_v49 = vpop.f32.mrb[70].mxu1  ;;  %v2237_v0 = vmul.f32 0.0625, %v2154_v62 }
 0x308   :  { %v2240_v61 = vmul.f32 0.0625, %v3623_v49  ;;  %v2157_v63 = vpop.f32.mrb[71].mxu1 }
 0x309   :  { %v2238_v4 = vmul.f32 0.0625, %v2157_v63  ;;  %2700 = vmatmul.mubr.f32.gmra.mrb[114].mxu1 %v2268_v46 }
 0x30a   :  { %v3740_v5 = vpack.c.bf16 %v2240_v61, %v2239_v57  ;;  %2704 = vmatprep.mubr.f32.mxu1 %v2274_v54 }
 0x30b   :  { %v3736_v9 = vpack.c.bf16 %v2238_v4, %v2237_v0 }
 0x30d   :  { %2705 = vmatmul.mubr.f32.gmra.mrb[116].mxu1 %v2273_v8  ;;  %3737 = vmatprep.subr.bf16.mxu1 %v3736_v9 }
 0x30e   :  { %3739 = vmatpush3.bf16.msra.mxu1 %v3736_v9  ;;  %2709 = vmatprep.mubr.f32.mxu1 %v2279_v11 }
 0x30f   :  { %3741 = vmatprep.subr.bf16.mxu1 %v3740_v5 }
 0x311   :  { %2710 = vmatmul.mubr.f32.gmra.mrb[118].mxu1 %v2278_v12 }
 0x312   :  { %3743 = vmatpush3.bf16.msra.mxu1 %v3740_v5  ;;  %2714 = vmatprep.mubr.f32.mxu1 %v2284_v17 }
 0x315   :  { %2715 = vmatmul.mubr.f32.gmra.mrb[120].mxu1 %v2283_v23 }
 0x316   :  { %2719 = vmatprep.mubr.f32.mxu1 %v2289_v26 }
 0x319   :  { %2720 = vmatmul.mubr.f32.gmra.mrb[122].mxu1 %v2288_v27 }
 0x31a   :  { %2724 = vmatprep.mubr.f32.mxu1 %v2294_v28 }
 0x31d   :  { %2725 = vmatmul.mubr.f32.gmra.mrb[124].mxu1 %v2293_v30 }
 0x31e   :  { %2729 = vmatprep.mubr.f32.mxu1 %v2299_v31 }
 0x321   :  { %2730 = vmatmul.mubr.f32.gmra.mrb[126].mxu1 %v2298_v32 }
 0x322   :  { %2734 = vmatprep.mubr.f32.mxu1 %v2304_v33 }
 0x325   :  { %2735 = vmatmul.mubr.f32.gmra.mrb[128].mxu1 %v2303_v47 }
 0x326   :  { %2739 = vmatprep.mubr.f32.mxu1 %v2309_v48 }
 0x329   :  { %2740 = vmatmul.mubr.f32.gmra.mrb[130].mxu1 %v2308_v51 }
 0x32a   :  { %2744 = vmatprep.mubr.f32.mxu1 %v2314_v52 }
 0x32d   :  { %2745 = vmatmul.mubr.f32.gmra.mrb[132].mxu1 %v2313_v53 }
 0x32e   :  { %2749 = vmatprep.mubr.f32.mxu1 %v2319_v56 }
 0x331   :  { %2750 = vmatmul.mubr.f32.gmra.mrb[134].mxu1 %v2318_v34 }
 0x332   :  { %3640 = vmatprep.mubr.msk.f32.mxu1 %vm897_vm0, %v2245_v35  ;;  %v2340_v35 = vpop.permute.xlu0 %2339 }
 0x335   :  { %3641 = vmatmul.mubr.msk.f32.vlgmr.msra.gmra.mrb[136].mxu1 %vm897_vm0, %v2250_v36 }
 0x336   :  { %3643 = vmatprep.mubr.msk.f32.mxu1 %vm897_vm0, %v2255_v2  ;;  %v2350_v2 = vpop.permute.xlu0 %2349 }
 0x339   :  { %3644 = vmatmul.mubr.msk.f32.gmra.mrb[138].mxu1 %vm897_vm0, %v2260_v14 }
 0x33a   :  { %3646 = vmatprep.mubr.msk.f32.mxu1 %vm897_vm0, %v2265_v16 }
 0x33d   :  { %3647 = vmatmul.mubr.msk.f32.gmra.mrb[140].mxu1 %vm897_vm0, %v2270_v18 }
 0x33e   :  { %3649 = vmatprep.mubr.msk.f32.mxu1 %vm897_vm0, %v2275_v19 }
 0x341   :  { %3650 = vmatmul.mubr.msk.f32.gmra.mrb[142].mxu1 %vm897_vm0, %v2280_v22 }
 0x342   :  { %3652 = vmatprep.mubr.msk.f32.mxu1 %vm897_vm0, %v2285_v24  ;;  %v2345_v24 = vpop.permute.xlu1 %2344 }
 0x345   :  { %3653 = vmatmul.mubr.msk.f32.gmra.mrb[144].mxu1 %vm897_vm0, %v2290_v29 }
 0x346   :  { %3655 = vmatprep.mubr.msk.f32.mxu1 %vm897_vm0, %v2295_v39 }
 0x348   :  { %v3396_v37 = vpop.f32.mrb[72].mxu1 }
 0x349   :  { %v3397_v13 = vpop.f32.mrb[73].mxu1  ;;  %3656 = vmatmul.mubr.msk.f32.gmra.mrb[146].mxu1 %vm897_vm0, %v2300_v40 }
 0x34a   :  { %v3398_v20 = vadd.f32 %v3397_v13, %v3396_v37  ;;  %3658 = vmatprep.mubr.msk.f32.mxu1 %vm897_vm0, %v2305_v41  ;;  %v2360_v41 = vpop.permute.xlu0 %2359 }
 0x34c   :  { %v3399_v38 = vpop.f32.mrb[74].mxu1  ;;  %v2532_v16 = vadd.f32 %v3398_v20, %v2340_v35 }
 0x34d   :  { %v3400_v60 = vpop.f32.mrb[75].mxu1  ;;  %3659 = vmatmul.mubr.msk.f32.gmra.mrb[148].mxu1 %vm897_vm0, %v2310_v21 }
 0x34e   :  { %v3401_v3 = vadd.f32 %v3400_v60, %v3399_v38  ;;  %3661 = vmatprep.mubr.msk.f32.mxu1 %vm897_vm0, %v2315_v25  ;;  %v2355_v60 = vpop.permute.xlu1 %2354  ;;  %v2370_v20 = vpop.permute.xlu0 %2369 }
 0x350   :  { %v3402_v7 = vpop.f32.mrb[76].mxu1  ;;  %v2537_v39 = vadd.f32 %v3401_v3, %v2345_v24 }
 0x351   :  { %v3403_v10 = vpop.f32.mrb[77].mxu1  ;;  %3662 = vmatmul.mubr.msk.f32.gmra.mrb[150].mxu1 %vm897_vm0, %v2320_v6 }
 0x352   :  { %v3404_v15 = vadd.f32 %v3403_v10, %v3402_v7 }
 0x354   :  { %v3405_v42 = vpop.f32.mrb[78].mxu1  ;;  %v2542_v25 = vadd.f32 %v3404_v15, %v2350_v2  ;;  %v2365_v15 = vpop.permute.xlu1 %2364 }
 0x355   :  { %v3406_v43 = vpop.f32.mrb[79].mxu1 }
 0x356   :  { %v3407_v44 = vadd.f32 %v3406_v43, %v3405_v42 }
 0x358   :  { %v3408_v45 = vpop.f32.mrb[80].mxu1  ;;  %v2547_v42 = vadd.f32 %v3407_v44, %v2355_v60 }
 0x359   :  { %v3409_v50 = vpop.f32.mrb[81].mxu1 }
 0x35a   :  { %v3410_v55 = vadd.f32 %v3409_v50, %v3408_v45 }
 0x35c   :  { %v3411_v58 = vpop.f32.mrb[82].mxu1 }
 0x35d   :  { %v3412_v59 = vpop.f32.mrb[83].mxu1 }
 0x35e   :  { %v5037_v1 = vadd.f32 %v3412_v59, %v3411_v58  ;;  %v2552_v58 = vadd.f32 %v3410_v55, %v2360_v41 }
 0x360   :  { %v3414_v62 = vpop.f32.mrb[84].mxu1 }
 0x361   :  { %v3415_v46 = vpop.f32.mrb[85].mxu1 }
 0x362   :  { %v5039_v49 = vadd.f32 %v3415_v46, %v3414_v62  ;;  %v2380_v62 = vpop.permute.xlu0 %2379 }
 0x364   :  { %v3417_v54 = vpop.f32.mrb[86].mxu1 }
 0x365   :  { %v3418_v57 = vpop.f32.mrb[87].mxu1 }
 0x366   :  { %v5041_v61 = vadd.f32 %v3418_v57, %v3417_v54  ;;  %v5072_v44 = vpop.permute.xlu0 %2998 }
 0x368   :  { %v3420_v63 = vpop.f32.mrb[88].mxu1 }
 0x369   :  { %v3421_v0 = vpop.f32.mrb[89].mxu1 }
 0x36a   :  { %v5043_v4 = vadd.f32 %v3421_v0, %v3420_v63  ;;  %v2557_v63 = vadd.f32 %v5037_v1, %v2365_v15 }
 0x36c   :  { %v3423_v5 = vpop.f32.mrb[90].mxu1 }
 0x36d   :  { %v3424_v8 = vpop.f32.mrb[91].mxu1 }
 0x36e   :  { %v5045_v9 = vadd.f32 %v3424_v8, %v3423_v5 }
 0x370   :  { %v3426_v11 = vpop.f32.mrb[92].mxu1 }
 0x371   :  { %v3427_v12 = vpop.f32.mrb[93].mxu1 }
 0x372   :  { %v5047_v17 = vadd.f32 %v3427_v12, %v3426_v11  ;;  %v2562_v12 = vadd.f32 %v5039_v49, %v2370_v20 }
 0x374   :  { %v3429_v23 = vpop.f32.mrb[94].mxu1 }
 0x375   :  { %v3430_v26 = vpop.f32.mrb[95].mxu1 }
 0x376   :  { %v5049_v27 = vadd.f32 %v3430_v26, %v3429_v23 }
 0x378   :  { %v3432_v28 = vpop.f32.mrb[96].mxu1 }
 0x379   :  { %v3433_v30 = vpop.f32.mrb[97].mxu1 }
 0x37a   :  { %v5051_v31 = vadd.f32 %v3433_v30, %v3432_v28  ;;  %v2375_v28 = vpop.permute.xlu1 %2374 }
 0x37c   :  { %v3435_v32 = vpop.f32.mrb[98].mxu1 }
 0x37d   :  { %v3436_v33 = vpop.f32.mrb[99].mxu1 }
 0x37e   :  { %v5053_v47 = vadd.f32 %v3436_v33, %v3435_v32  ;;  %v2567_v32 = vadd.f32 %v5041_v61, %v2375_v28 }
 0x380   :  { %v3438_v48 = vpop.f32.mrb[100].mxu1 }
 0x381   :  { %v3439_v51 = vpop.f32.mrb[101].mxu1 }
 0x382   :  { %v5055_v52 = vadd.f32 %v3439_v51, %v3438_v48  ;;  %v2390_v48 = vpop.permute.xlu0 %2389 }
 0x384   :  { %v3441_v53 = vpop.f32.mrb[102].mxu1 }
 0x385   :  { %v3442_v56 = vpop.f32.mrb[103].mxu1 }
 0x386   :  { %v5057_v34 = vadd.f32 %v3442_v56, %v3441_v53  ;;  %v2572_v56 = vadd.f32 %v5043_v4, %v2380_v62 }
 0x3c8   :  { %v3476_v36 = vpop.f32.mrb[104].mxu1 }
 0x3c9   :  { %v3477_v14 = vpop.f32.mrb[105].mxu1 }
 0x3ca   :  { %v3478_v18 = vadd.f32 %v3477_v14, %v3476_v36  ;;  %v2385_v36 = vpop.permute.xlu1 %2384  ;;  %v2395_v14 = vpop.permute.xlu0 %2394 }
 0x3cc   :  { %v3479_v19 = vpop.f32.mrb[106].mxu1  ;;  %v5059_v22 = vadd.f32 %v3478_v18, %v2532_v16  ;;  %v2577_v18 = vadd.f32 %v5045_v9, %v2385_v36 }
 0x3cd   :  { %v3480_v29 = vpop.f32.mrb[107].mxu1 }
 0x3ce   :  { %v3481_v40 = vadd.f32 %v3480_v29, %v3479_v19  ;;  %v2400_v41 = vpop.permute.xlu0 %2399  ;;  %v3004_v60 = vpop.permute.xlu1 %3003 }
 0x3d0   :  { %v3482_v37 = vpop.f32.mrb[108].mxu1  ;;  %v5061_v13 = vadd.f32 %v3481_v40, %v2537_v39  ;;  %v2582_v39 = vadd.f32 %v5047_v17, %v2390_v48 }
 0x3d1   :  { %v3483_v21 = vpop.f32.mrb[109].mxu1 }
 0x3d2   :  { %v3484_v38 = vadd.f32 %v3483_v21, %v3482_v37  ;;  %v2405_v9 = vpop.permute.xlu0 %2404 }
 0x3d4   :  { %v3485_v6 = vpop.f32.mrb[110].mxu1  ;;  %v5063_v7 = vadd.f32 %v3484_v38, %v2542_v25  ;;  %v2587_v25 = vadd.f32 %v5049_v27, %v2395_v14 }
 0x3d5   :  { %v3486_v10 = vpop.f32.mrb[111].mxu1 }
 0x3d6   :  { %v3487_v43 = vadd.f32 %v3486_v10, %v3485_v6  ;;  %v2410_v27 = vpop.permute.xlu0 %2409 }
 0x3d8   :  { %v3488_v45 = vpop.f32.mrb[112].mxu1  ;;  %v5065_v50 = vadd.f32 %v3487_v43, %v2547_v42  ;;  %v2592_v42 = vadd.f32 %v5051_v31, %v2400_v41 }
 0x3d9   :  { %v3489_v3 = vpop.f32.mrb[113].mxu1 }
 0x3da   :  { %v3490_v59 = vadd.f32 %v3489_v3, %v3488_v45 }
 0x3dc   :  { %v3491_v46 = vpop.f32.mrb[114].mxu1  ;;  %v5067_v54 = vadd.f32 %v3490_v59, %v2552_v58  ;;  %v5095_v58 = vpop.permute.xlu1 %3008  ;;  %v2597_v59 = vadd.f32 %v5053_v47, %v2405_v9 }
 0x3dd   :  { %v3492_v57 = vpop.f32.mrb[115].mxu1 }
 0x3de   :  { %v3493_v0 = vadd.f32 %v3492_v57, %v3491_v46 }
 0x3e0   :  { %v3494_v5 = vpop.f32.mrb[116].mxu1  ;;  %v5070_v8 = vadd.f32 %v3493_v0, %v2557_v63  ;;  %v2602_v63 = vadd.f32 %v5055_v52, %v2410_v27 }
 0x3e1   :  { %v3495_v11 = vpop.f32.mrb[117].mxu1 }
 0x3e2   :  { %v3496_v23 = vadd.f32 %v3495_v11, %v3494_v5  ;;  %v3014_v5 = vpop.permute.xlu1 %3013 }
 0x3e4   :  { %v3497_v55 = vpop.f32.mrb[118].mxu1  ;;  %v5075_v26 = vadd.f32 %v3496_v23, %v2562_v12  ;;  %v2415_v12 = vpop.permute.xlu0 %2414 }
 0x3e5   :  { %v3498_v30 = vpop.f32.mrb[119].mxu1 }
 0x3e6   :  { %v3499_v33 = vadd.f32 %v3498_v30, %v3497_v55  ;;  %v2607_v55 = vadd.f32 %v5057_v34, %v2415_v12  ;;  %v5107_v48 = vpop.permute.xlu1 %3018 }
 0x3e8   :  { %v3500_v1 = vpop.f32.mrb[120].mxu1  ;;  %v5078_v51 = vadd.f32 %v3499_v33, %v2567_v32 }
 0x3e9   :  { %v3501_v53 = vpop.f32.mrb[121].mxu1 }
 0x3ea   :  { %v3502_v35 = vadd.f32 %v3501_v53, %v3500_v1 }
 0x3ec   :  { %v3503_v2 = vpop.f32.mrb[122].mxu1  ;;  %v5081_v49 = vadd.f32 %v3502_v35, %v2572_v56 }
 0x3ed   :  { %v3504_v16 = vpop.f32.mrb[123].mxu1 }
 0x3ee   :  { %v3505_v19 = vadd.f32 %v3504_v16, %v3503_v2 }
 0x3f0   :  { %v3506_v24 = vpop.f32.mrb[124].mxu1  ;;  %v5084_v61 = vadd.f32 %v3505_v19, %v2577_v18  ;;  %v3024_v19 = vpop.permute.xlu1 %3023 }
 0x3f1   :  { %v3507_v29 = vpop.f32.mrb[125].mxu1 }
 0x3f2   :  { %v3508_v40 = vadd.f32 %v3507_v29, %v3506_v24 }
 0x3f4   :  { %v3509_v37 = vpop.f32.mrb[126].mxu1  ;;  %v5087_v4 = vadd.f32 %v3508_v40, %v2582_v39 }
 0x3f5   :  { %v3510_v21 = vpop.f32.mrb[127].mxu1 }
 0x3f6   :  { %v3511_v38 = vadd.f32 %v3510_v21, %v3509_v37 }
 0x3f8   :  { %v3512_v6 = vpop.f32.mrb[128].mxu1  ;;  %v5090_v20 = vadd.f32 %v3511_v38, %v2587_v25 }
 0x3f9   :  { %v3513_v10 = vpop.f32.mrb[129].mxu1 }
 0x3fa   :  { %v3514_v43 = vadd.f32 %v3513_v10, %v3512_v6 }
 0x3fc   :  { %v3515_v45 = vpop.f32.mrb[130].mxu1  ;;  %v5093_v17 = vadd.f32 %v3514_v43, %v2592_v42 }
 0x3fd   :  { %v3516_v3 = vpop.f32.mrb[131].mxu1 }
 0x3fe   :  { %v3517_v62 = vadd.f32 %v3516_v3, %v3515_v45 }
 0x400   :  { %v3518_v46 = vpop.f32.mrb[132].mxu1  ;;  %v5098_v15 = vadd.f32 %v3517_v62, %v2597_v59 }
 0x401   :  { %v3519_v57 = vpop.f32.mrb[133].mxu1 }
 0x402   :  { %v3520_v0 = vadd.f32 %v3519_v57, %v3518_v46 }
 0x404   :  { %v3521_v31 = vpop.f32.mrb[134].mxu1  ;;  %v5101_v11 = vadd.f32 %v3520_v0, %v2602_v63 }
 0x405   :  { %v3522_v23 = vpop.f32.mrb[135].mxu1 }
 0x406   :  { %v3523_v28 = vadd.f32 %v3522_v23, %v3521_v31 }
 0x408   :  { %v3642_v30 = vpop.f32.mrb[136].mxu1  ;;  %v5104_v47 = vadd.f32 %v3523_v28, %v2607_v55 }
 0x409   :  { %v2827_v32 = vadd.f32 %v3642_v30, %v5061_v13  ;;  %v2821_v33 = vpop.f32.mrb[137].mxu1 }
 0x40a   :  { %v2822_v52 = vadd.f32 %v2821_v33, %v5059_v22 }
 0x40b   :  { %v2901_v1 = vadd.f32 3.0, %v2827_v32 }
 0x40c   :  { %v2900_v53 = vadd.f32 3.0, %v2822_v52  ;;  %v3645_v56 = vpop.f32.mrb[138].mxu1 }
 0x40d   :  { %v2917_v35 = vmax.f32 %v2901_v1, 0.0  ;;  %v2837_v36 = vadd.f32 %v3645_v56, %v5065_v50  ;;  %v2831_v2 = vpop.f32.mrb[139].mxu1 }
 0x40e   :  { %v2916_v14 = vmax.f32 %v2900_v53, 0.0  ;;  %v2832_v34 = vadd.f32 %v2831_v2, %v5063_v7 }
 0x40f   :  { %v2933_v16 = vmin.f32 %v2917_v35, 6.0  ;;  %v2903_v18 = vadd.f32 3.0, %v2837_v36 }
 0x410   :  { %v2932_v24 = vmin.f32 %v2916_v14, 6.0  ;;  %v2902_v13 = vadd.f32 3.0, %v2832_v34  ;;  %v3648_v29 = vpop.f32.mrb[140].mxu1 }
 0x411   :  { %v2949_v39 = vmul.f32 %v2933_v16, %v2827_v32  ;;  %v2919_v40 = vmax.f32 %v2903_v18, 0.0  ;;  %v2847_v22 = vadd.f32 %v3648_v29, %v5070_v8  ;;  %v2841_v41 = vpop.f32.mrb[141].mxu1  ;;  %v3029_v8 = vpop.permute.xlu1 %3028 }
 0x412   :  { %v2948_v37 = vmul.f32 %v2932_v24, %v2822_v52  ;;  %v2918_v21 = vmax.f32 %v2902_v13, 0.0  ;;  %v2842_v25 = vadd.f32 %v2841_v41, %v5067_v54 }
 0x413   :  { %v2965_v50 = vmul.f32 0.16666667, %v2949_v39  ;;  %v2935_v38 = vmin.f32 %v2919_v40, 6.0  ;;  %v2905_v6 = vadd.f32 3.0, %v2847_v22 }
 0x414   :  { %v2964_v7 = vmul.f32 0.16666667, %v2948_v37  ;;  %v2934_v9 = vmin.f32 %v2918_v21, 6.0  ;;  %v2904_v10 = vadd.f32 3.0, %v2842_v25  ;;  %v3651_v42 = vpop.f32.mrb[142].mxu1 }
 0x415   :  { %v3077_v43 = vmul.f32 %v3004_v60, %v2965_v50  ;;  %v2951_v45 = vmul.f32 %v2935_v38, %v2837_v36  ;;  %v2921_v3 = vmax.f32 %v2905_v6, 0.0  ;;  %v2857_v59 = vadd.f32 %v3651_v42, %v5078_v51  ;;  %v2851_v62 = vpop.f32.mrb[143].mxu1 }
 0x416   :  { %v3076_v27 = vmul.f32 %v5072_v44, %v2964_v7  ;;  %v2950_v46 = vmul.f32 %v2934_v9, %v2832_v34  ;;  %v2920_v57 = vmax.f32 %v2904_v10, 0.0  ;;  %v2852_v54 = vadd.f32 %v2851_v62, %v5075_v26  ;;  %v3034_v34 = vpop.permute.xlu1 %3033  ;;  %v3039_v62 = vpop.permute.xlu0 %3038 }
 0x417   :  { %v3094_v63 = vsel %vm3092_vm2, %v3077_v43, 0.0  ;;  %v2967_v0 = vmul.f32 0.16666667, %v2951_v45  ;;  %v2937_v31 = vmin.f32 %v2921_v3, 6.0  ;;  %v2907_v12 = vadd.f32 3.0, %v2857_v59 }
 0x418   :  { %v3093_v23 = vsel %vm3092_vm2, %v3076_v27, 0.0  ;;  %v2966_v60 = vmul.f32 0.16666667, %v2950_v46  ;;  %v2936_v55 = vmin.f32 %v2920_v57, 6.0  ;;  %v2906_v28 = vadd.f32 3.0, %v2852_v54  ;;  %v3654_v30 = vpop.f32.mrb[144].mxu1 }
 0x419   :  { %v3095_v51 = vadd.f32 %v3094_v63, %v3093_v23  ;;  %v3079_v32 = vmul.f32 %v3014_v5, %v2967_v0  ;;  %v2953_v33 = vmul.f32 %v2937_v31, %v2847_v22  ;;  %v2923_v52 = vmax.f32 %v2907_v12, 0.0  ;;  %v2861_v44 = vpop.f32.mrb[145].mxu1 }
 0x41a   :  { %v3078_v1 = vmul.f32 %v5095_v58, %v2966_v60  ;;  %v2952_v53 = vmul.f32 %v2936_v55, %v2842_v25  ;;  %v2922_v26 = vmax.f32 %v2906_v28, 0.0  ;;  %v2867_v56 = vadd.f32 %v3654_v30, %v5084_v61 }
 0x41b   :  { %v3098_v35 = vsel %vm3092_vm2, %v3079_v32, 0.0  ;;  %v2969_v36 = vmul.f32 0.16666667, %v2953_v33  ;;  %v2939_v2 = vmin.f32 %v2923_v52, 6.0  ;;  %v2862_v14 = vadd.f32 %v2861_v44, %v5081_v49 }
 0x41c   :  { %v3096_v16 = vsel %vm3092_vm2, %v3078_v1, 0.0  ;;  %v2968_v18 = vmul.f32 0.16666667, %v2952_v53  ;;  %v2938_v5 = vmin.f32 %v2922_v26, 6.0  ;;  %v2909_v24 = vadd.f32 3.0, %v2867_v56  ;;  %v3657_v13 = vpop.f32.mrb[146].mxu1 }
 0x41d   :  { %v3097_v29 = vadd.f32 %v3096_v16, %v3095_v51  ;;  %v3081_v39 = vmul.f32 %v3024_v19, %v2969_v36  ;;  %v2955_v58 = vmul.f32 %v2939_v2, %v2857_v59  ;;  %v2908_v40 = vadd.f32 3.0, %v2862_v14  ;;  %v2871_v22 = vpop.f32.mrb[147].mxu1  ;;  %v3044_v59 = vpop.permute.xlu1 %3043 }
 0x41e   :  { %v3080_v61 = vmul.f32 %v5107_v48, %v2968_v18  ;;  %v2954_v41 = vmul.f32 %v2938_v5, %v2852_v54  ;;  %v2925_v37 = vmax.f32 %v2909_v24, 0.0  ;;  %v2877_v21 = vadd.f32 %v3657_v13, %v5090_v20  ;;  %v3049_v36 = vpop.permute.xlu0 %3048 }
 0x41f   :  { %v3102_v49 = vsel %vm3092_vm2, %v3081_v39, 0.0  ;;  %v3099_v25 = vadd.f32 %v3098_v35, %v3097_v29  ;;  %v2971_v50 = vmul.f32 0.16666667, %v2955_v58  ;;  %v2924_v38 = vmax.f32 %v2908_v40, 0.0 }
 0x420   :  { %v3100_v6 = vsel %vm3092_vm2, %v3080_v61, 0.0  ;;  %v2970_v7 = vmul.f32 0.16666667, %v2954_v41  ;;  %v2941_v9 = vmin.f32 %v2925_v37, 6.0  ;;  %v2911_v10 = vadd.f32 3.0, %v2877_v21  ;;  %v3660_v19 = vpop.f32.mrb[148].mxu1 }
 0x421   :  { %v3101_v42 = vadd.f32 %v3100_v6, %v3099_v25  ;;  %v3083_v43 = vmul.f32 %v3034_v34, %v2971_v50  ;;  %v2940_v45 = vmin.f32 %v2924_v38, 6.0  ;;  %v2872_v48 = vadd.f32 %v2871_v22, %v5087_v4  ;;  %v2881_v3 = vpop.f32.mrb[149].mxu1  ;;  %v3054_v35 = vpop.permute.xlu1 %3053 }
 0x422   :  { %v3082_v20 = vmul.f32 %v3029_v8, %v2970_v7  ;;  %v2957_v27 = vmul.f32 %v2941_v9, %v2867_v56  ;;  %v2927_v46 = vmax.f32 %v2911_v10, 0.0  ;;  %v2887_v57 = vadd.f32 %v3660_v19, %v5098_v15  ;;  %v3059_v38 = vpop.permute.xlu0 %3058 }
 0x423   :  { %v3106_v54 = vsel %vm3092_vm2, %v3083_v43, 0.0  ;;  %v3103_v63 = vadd.f32 %v3102_v49, %v3101_v42  ;;  %v2956_v0 = vmul.f32 %v2940_v45, %v2862_v14  ;;  %v2910_v31 = vadd.f32 3.0, %v2872_v48 }
 0x424   :  { %v3104_v12 = vsel %vm3092_vm2, %v3082_v20, 0.0  ;;  %v2973_v23 = vmul.f32 0.16666667, %v2957_v27  ;;  %v2943_v60 = vmin.f32 %v2927_v46, 6.0  ;;  %v2913_v55 = vadd.f32 3.0, %v2887_v57  ;;  %v3663_v28 = vpop.f32.mrb[150].mxu1 }
 0x425   :  { %v3105_v4 = vadd.f32 %v3104_v12, %v3103_v63  ;;  %v2972_v30 = vmul.f32 0.16666667, %v2956_v0  ;;  %v2926_v51 = vmax.f32 %v2910_v31, 0.0  ;;  %v2882_v8 = vadd.f32 %v2881_v3, %v5093_v17  ;;  %v2891_v32 = vpop.f32.mrb[151].mxu1  ;;  %v3064_v50 = vpop.permute.xlu1 %3063 }
 0x426   :  { %v3085_v33 = vmul.f32 %v3044_v59, %v2973_v23  ;;  %v2959_v52 = vmul.f32 %v2943_v60, %v2877_v21  ;;  %v2929_v15 = vmax.f32 %v2913_v55, 0.0  ;;  %v2897_v44 = vadd.f32 %v3663_v28, %v5104_v47  ;;  %v3069_v27 = vpop.permute.xlu0 %3068 }
 0x427   :  { %v3084_v1 = vmul.f32 %v3039_v62, %v2972_v30  ;;  %v3107_v53 = vadd.f32 %v3106_v54, %v3105_v4  ;;  %v2942_v26 = vmin.f32 %v2926_v51, 6.0  ;;  %v2912_v56 = vadd.f32 3.0, %v2882_v8 }
 0x428   :  { %v2975_v2 = vmul.f32 0.16666667, %v2959_v52  ;;  %v2945_v14 = vmin.f32 %v2929_v15, 6.0  ;;  %v2915_v34 = vadd.f32 3.0, %v2897_v44  ;;  %v2892_v17 = vadd.f32 %v2891_v32, %v5101_v11 }
 0x429   :  { %v3108_v16 = vsel %vm3092_vm2, %v3084_v1, 0.0  ;;  %v2958_v18 = vmul.f32 %v2942_v26, %v2872_v48  ;;  %v2928_v5 = vmax.f32 %v2912_v56, 0.0  ;;  %v3110_v47 = vsel %vm3092_vm2, %v3085_v33, 0.0  ;;  %v3074_v20 = vpop.permute.xlu1 %3073 }
 0x42a   :  { %v3109_v24 = vadd.f32 %v3108_v16, %v3107_v53  ;;  %v2961_v13 = vmul.f32 %v2945_v14, %v2887_v57  ;;  %v2931_v29 = vmax.f32 %v2915_v34, 0.0  ;;  %v2914_v40 = vadd.f32 3.0, %v2892_v17  ;;  %v3134_v33 = vpop.permute.xlu0 %3133 }
 0x42b   :  { %v2974_v39 = vmul.f32 0.16666667, %v2958_v18  ;;  %v2944_v58 = vmin.f32 %v2928_v5, 6.0  ;;  %v3087_v22 = vmul.f32 %v3054_v35, %v2975_v2  ;;  %v3136_v60 = vlaneseq }
 0x42c   :  { %v3111_v61 = vadd.f32 %v3110_v47, %v3109_v24  ;;  %v2947_v41 = vmin.f32 %v2931_v29, 6.0  ;;  %v2977_v21 = vmul.f32 0.16666667, %v2961_v13  ;;  %v2930_v25 = vmax.f32 %v2914_v40, 0.0 }
 0x42d   :  { %v3086_v37 = vmul.f32 %v3049_v36, %v2974_v39  ;;  %v2960_v49 = vmul.f32 %v2944_v58, %v2882_v8  ;;  %v3114_v10 = vsel %vm3092_vm2, %v3087_v22, 0.0  ;;  %v3137_v4 = vshrl.u32 %v3136_v60, 7 }
 0x42e   :  { %v2963_v6 = vmul.f32 %v2947_v41, %v2897_v44  ;;  %v2946_v9 = vmin.f32 %v2930_v25, 6.0  ;;  %v3089_v42 = vmul.f32 %v3064_v50, %v2977_v21 }
 0x42f   :  { %v3112_v11 = vsel %vm3092_vm2, %v3086_v37, 0.0  ;;  %v2976_v7 = vmul.f32 0.16666667, %v2960_v49  ;;  %v3138_v8 = vsub.s32 0, %v3137_v4 }
 0x430   :  { %v3113_v19 = vadd.f32 %v3112_v11, %v3111_v61  ;;  %v2979_v45 = vmul.f32 0.16666667, %v2963_v6  ;;  %v2962_v48 = vmul.f32 %v2946_v9, %v2892_v17  ;;  %v3118_v57 = vsel %vm3092_vm2, %v3089_v42, 0.0 }
 0x431   :  { %v3088_v43 = vmul.f32 %v3059_v38, %v2976_v7  ;;  %v3139_v15 = vrot.slane %v3134_v33, %v3138_v8 }
 0x432   :  { %v3115_v3 = vadd.f32 %v3114_v10, %v3113_v19  ;;  %v2978_v62 = vmul.f32 0.16666667, %v2962_v48  ;;  %v3091_v54 = vmul.f32 %v3074_v20, %v2979_v45 }
 0x433   :  { %v3116_v59 = vsel %vm3092_vm2, %v3088_v43, 0.0 }
 0x434   :  { %v3117_v46 = vadd.f32 %v3116_v59, %v3115_v3  ;;  %v3090_v63 = vmul.f32 %v3069_v27, %v2978_v62  ;;  %v3122_v23 = vsel %vm3092_vm2, %v3091_v54, 0.0 }
 0x436   :  { %v3119_v0 = vadd.f32 %v3118_v57, %v3117_v46  ;;  %v3120_v31 = vsel %vm3092_vm2, %v3090_v63, 0.0 }
 0x438   :  { %v3121_v12 = vadd.f32 %v3120_v31, %v3119_v0 }
 0x43a   :  { %v3123_v55 = vadd.f32 %v3122_v23, %v3121_v12 }
 0x43c   :  { %v3124_v28 = vrot.slane %v3123_v55, 4 }
 0x43e   :  { %v3125_v30 = vadd.f32 %v3124_v28, %v3123_v55 }
 0x440   :  { %v3126_v51 = vrot.slane %v3125_v30, 2 }
 0x442   :  { %v3127_v32 = vadd.f32 %v3126_v51, %v3125_v30 }
 0x444   :  { %v3128_v52 = vrot.slane %v3127_v32, 1 }
 0x446   :  { %v3129_v44 = vadd.f32 %v3128_v52, %v3127_v32 }
 0x448   :  { %v3140_v1 = vadd.f32 %v3139_v15, %v3129_v44 }
 0x44a   :  { %v3325_v53 = vmul.f32 -1.442695, %v3140_v1 }
 0x44c   :  { %3858 = vpow2.f32 %v3325_v53 }
 0x456   :  { %v3859_v26 = vpop.eup %3858 }
 0x457   :  { %v3144_v56 = vadd.f32 1.0, %v3859_v26 }
 0x459   :  { %3860 = vrcp.f32 %v3144_v56 }
 0x463   :  { %v3861_v35 = vpop.eup %3860 }
 0x464   :  { %3148 = vst.msk [vmem:[#allocation3] sm:$0x1] %vm3147_vm3, %v3861_v35 }
 0x465   :  { %3873 = shalt.err (!%p3870_p4)
}
 0x466   :  { %s3874_s28 = scalar_lea.hbm %s5163_s8, 16 }
 0x467   :  { %p3875_p5 = scmp.ne.s32.totalorder %s5163_s8, %s3874_s28  ;;  %p3878_p6 = scmp.lt.u32.totalorder %s3874_s28, %s5163_s8 }
 0x469   :  { %p3880_p7 = pnand %p3878_p6, %p3875_p5 }
 0x46b   :  { %3883 = shalt.err (!%p3880_p7)
}
 0x46c   :  { %3158 = dma.vmem_to_hbm [thread:$0]  %s3156_s23, 16, %s5163_s8, [#allocation4]  }
 0x46d   :  { %3884 = dma.done.wait [#allocation4], 16  }
 0x46e   :  { %3885 = vsyncadd [#allocation4], 4294967280 }
 0x46f   :  { %3162 = vsyncpa [#allocation4], 1 }

</bundles_post_ra>
